<compile_context>
chip_gen: v5e
topology: v5e:2x2
jax: 0.10.0
libtpu: 0.0.40
codegen_flags: <defaults>
</compile_context>

<pallas_src>
import jax
import jax.numpy as jnp
from jax.experimental import pallas as pl
from jax.experimental.pallas import tpu as pltpu

_TAN22 = 0.4142135623730951   # tan(22.5 deg) for gradient-direction quantization
_LOW2 = 0.1 * 0.1             # TODO(synk): thresholds of the original CannyEdgeDetector are
_HIGH2 = 0.3 * 0.3            #             not in the reference source; fixed values are used.

_PR = 8    # top padding rows (keeps dy=0 accesses sublane-aligned)
_PC = 8    # left padding cols (only 1 is required; 8 keeps a little slack)

_VMEM_BUDGET = 8 * 1024 * 1024   # per-step working set; fits every generation's default limit


def _round_up(x, m):
    return (x + m - 1) // m * m


def _scratch_dims(H, W):
    return _round_up(_PR + H + 1, 8), _round_up(_PC + W + 1, 128)


# ---------------------------------------------------------------------------
# In-kernel stencil helpers (all operate on a zero-bordered VMEM scratch).
# ---------------------------------------------------------------------------

def _zero_border(pad_ref, P, H, W):
    """Zero only the 1-wide frame around the interior (interior is overwritten
    by every stage, the rest of the scratch is never read)."""
    zrow = jnp.zeros((P, 1, W + 2), jnp.float32)
    pad_ref[:, pl.ds(_PR - 1, 1), pl.ds(_PC - 1, W + 2)] = zrow
    pad_ref[:, pl.ds(_PR + H, 1), pl.ds(_PC - 1, W + 2)] = zrow
    zcol = jnp.zeros((P, H, 1), jnp.float32)
    pad_ref[:, pl.ds(_PR, H), pl.ds(_PC - 1, 1)] = zcol
    pad_ref[:, pl.ds(_PR, H), pl.ds(_PC + W, 1)] = zcol


def _put(pad_ref, v, H, W):
    pad_ref[:, pl.ds(_PR, H), pl.ds(_PC, W)] = v


def _tap(pad_ref, dy, dx, H, W):
    """Interior view shifted by (dy, dx); zeros outside the image."""
    return pad_ref[:, pl.ds(_PR + dy, H), pl.ds(_PC + dx, W)]


def _canny_block(x, pad_ref):
    """Gauss(3) -> Sobel -> Canny (NMS + double threshold) for a (P, H, W) block."""
    P, H, W = x.shape
    _zero_border(pad_ref, P, H, W)

    # 1) Gaussian blur: separable (1/16) [1,2,1]^T x [1,2,1], zero-padded 'same'.
    _put(pad_ref, x, H, W)
    t = (_tap(pad_ref, 0, -1, H, W) + 2.0 * _tap(pad_ref, 0, 0, H, W)
         + _tap(pad_ref, 0, 1, H, W))                         # horizontal smooth
    _put(pad_ref, t, H, W)
    g = (_tap(pad_ref, -1, 0, H, W) + 2.0 * _tap(pad_ref, 0, 0, H, W)
         + _tap(pad_ref, 1, 0, H, W)) * (1.0 / 16.0)          # vertical smooth

    # 2) Sobel gradients (separable), fresh zero padding of g.
    _put(pad_ref, g, H, W)
    up = _tap(pad_ref, -1, 0, H, W)
    mid = _tap(pad_ref, 0, 0, H, W)
    dn = _tap(pad_ref, 1, 0, H, W)
    vs = up + 2.0 * mid + dn        # vertical smooth of g
    vd = dn - up                    # vertical diff of g
    _put(pad_ref, vs, H, W)
    gx = _tap(pad_ref, 0, 1, H, W) - _tap(pad_ref, 0, -1, H, W)
    _put(pad_ref, vd, H, W)
    gy = (_tap(pad_ref, 0, -1, H, W) + 2.0 * _tap(pad_ref, 0, 0, H, W)
          + _tap(pad_ref, 0, 1, H, W))
    mag2 = gx * gx + gy * gy        # squared gradient magnitude (sqrt not needed)

    # 3) Canny: non-maximum suppression along the quantized gradient direction,
    #    then double threshold (strong=1.0, weak=0.5, else 0.0).
    ax, ay = jnp.abs(gx), jnp.abs(gy)
    horiz = ay <= _TAN22 * ax                 # ~  0 deg -> compare (i, j +/- 1)
    vert = ax <= _TAN22 * ay                  # ~ 90 deg -> compare (i +/- 1, j)
    diag = jnp.logical_not(horiz | vert)
    d45 = diag & ((gx * gy) >= 0.0)           # ~ 45 deg -> (i+1,j+1)/(i-1,j-1)

    _put(pad_ref, mag2, H, W)
    n_l = _tap(pad_ref, 0, -1, H, W)
    n_r = _tap(pad_ref, 0, 1, H, W)
    n_u = _tap(pad_ref, -1, 0, H, W)
    n_d = _tap(pad_ref, 1, 0, H, W)
    n_ul = _tap(pad_ref, -1, -1, H, W)
    n_ur = _tap(pad_ref, -1, 1, H, W)
    n_dl = _tap(pad_ref, 1, -1, H, W)
    n_dr = _tap(pad_ref, 1, 1, H, W)

    n1 = jnp.where(horiz, n_l, jnp.where(vert, n_u, jnp.where(d45, n_dr, n_dl)))
    n2 = jnp.where(horiz, n_r, jnp.where(vert, n_d, jnp.where(d45, n_ul, n_ur)))
    keep = (mag2 >= n1) & (mag2 >= n2)

    # TODO(synk): hysteresis (iterative weak->strong edge linking) has no clean
    # single-pass Pallas equivalent; the pipeline stops at the double threshold.
    return jnp.where(keep & (mag2 >= _HIGH2), 1.0,
                     jnp.where(keep & (mag2 >= _LOW2), 0.5, 0.0))


# ---------------------------------------------------------------------------
# Kernels
# ---------------------------------------------------------------------------

def _edges_kernel(x_ref, o_ref, pad_ref):
    o_ref[...] = _canny_block(x_ref[...], pad_ref).astype(o_ref.dtype)


def _loss_kernel(x_ref, t_ref, o_ref, pad_ref):
    e = _canny_block(x_ref[...], pad_ref)
    d = e - t_ref[...].astype(jnp.float32)
    o_ref[...] = jnp.sum(d * d, axis=(0, 1, 2), keepdims=True)


# ---------------------------------------------------------------------------
# Wrappers
# ---------------------------------------------------------------------------

def _plan(N, H, W, extra_bytes_per_plane):
    """Planes per grid step (from a conservative VMEM budget) + scratch dims."""
    rows, cols = _scratch_dims(H, W)
    per_plane = rows * cols * 4 + extra_bytes_per_plane
    P = int(max(1, min(N, _VMEM_BUDGET // max(per_plane, 1))))
    return P, rows, cols


def _to_chunked_planes(x, P):
    """Pad the plane axis up to a multiple of P (zero planes contribute nothing)."""
    N = x.shape[0]
    Np = _round_up(N, P)
    if Np != N:
        pad = jnp.zeros((Np - N,) + x.shape[1:], x.dtype)
        x = jnp.concatenate([x, pad], axis=0)
    return x, Np


def canny_edges(x, out_dtype=jnp.float32):
    """Applies f = Gauss(3) -> Sobel -> Canny.  x: (B, C, H, W) -> (B, C, H, W)."""
    B, C, H, W = x.shape
    N = B * C
    planes = x.reshape(N, H, W).astype(jnp.float32)
    out_bytes = jnp.dtype(out_dtype).itemsize
    P, rows, cols = _plan(N, H, W, 2 * H * W * 4 + 2 * H * W * out_bytes)
    planes, Np = _to_chunked_planes(planes, P)
    n_chunks = Np // P

    out = pl.pallas_call(
        _edges_kernel,
        out_shape=jax.ShapeDtypeStruct((Np, H, W), out_dtype),
        grid_spec=pltpu.PrefetchScalarGridSpec(
            num_scalar_prefetch=0,
            grid=(n_chunks,),
            in_specs=[pl.BlockSpec((P, H, W), lambda i: (i, 0, 0))],
            out_specs=pl.BlockSpec((P, H, W), lambda i: (i, 0, 0)),
            scratch_shapes=[pltpu.VMEM((P, rows, cols), jnp.float32)]),
        compiler_params=pltpu.CompilerParams(dimension_semantics=("parallel",)),
    )(planes)
    return out[:N].reshape(B, C, H, W)


def canny_edge_loss(inp, target_edges):
    """F.mse_loss(f(inp), target_edges) with f fused into the reduction kernel."""
    B, C, H, W = inp.shape
    N = B * C
    planes = inp.reshape(N, H, W).astype(jnp.float32)
    tgt = target_edges.reshape(N, H, W)
    if tgt.dtype not in (jnp.bfloat16, jnp.float32):
        tgt = tgt.astype(jnp.float32)
    tbytes = jnp.dtype(tgt.dtype).itemsize

    P, rows, cols = _plan(N, H, W, 2 * H * W * 4 + 2 * H * W * tbytes)
    planes, Np = _to_chunked_planes(planes, P)
    tgt, _ = _to_chunked_planes(tgt, P)
    n_chunks = Np // P

    partials = pl.pallas_call(
        _loss_kernel,
        out_shape=jax.ShapeDtypeStruct((n_chunks, 1, 1), jnp.float32),
        grid_spec=pltpu.PrefetchScalarGridSpec(
            num_scalar_prefetch=0,
            grid=(n_chunks,),
            in_specs=[pl.BlockSpec((P, H, W), lambda i: (i, 0, 0)),
                      pl.BlockSpec((P, H, W), lambda i: (i, 0, 0))],
            out_specs=pl.BlockSpec((1, 1, 1), lambda i: (i, 0, 0)),
            scratch_shapes=[pltpu.VMEM((P, rows, cols), jnp.float32)]),
        compiler_params=pltpu.CompilerParams(dimension_semantics=("parallel",)),
    )(planes, tgt)
    return jnp.sum(partials) / jnp.float32(N * H * W)


class CannyEdgeLoss:
    """JAX/Pallas port of cast.loss.l2.CannyEdgeLoss (forward pass)."""

    def __init__(self, target, device=None):
        # __init__: self.target = f(target), computed once, no grad.
        # Stored in bf16: the edge map only takes {0, 0.5, 1.0}, all exact in bf16,
        # halving HBM traffic / VMEM footprint of one loss-kernel input.
        del device
        self.target = canny_edges(target, out_dtype=jnp.bfloat16)

    def __call__(self, inp):
        # forward: F.mse_loss(f(inp), self.target)
        return canny_edge_loss(inp, self.target)


if __name__ == "__main__":
    B, C, H, W = 2, 4, 16, 16
    key = jax.random.PRNGKey(0)
    k_tgt, k_inp = jax.random.split(key)
    target = jax.random.uniform(k_tgt, (B, C, H, W), dtype=jnp.float32)
    inp = jax.random.uniform(k_inp, (B, C, H, W), dtype=jnp.float32)

    loss_mod = CannyEdgeLoss(target)
    loss = loss_mod(inp)
    jax.block_until_ready(loss)

    # sanity: loss of the target against itself must vanish
    self_loss = loss_mod(target)
    jax.block_until_ready(self_loss)
    assert float(self_loss) < 1e-6, f"self-loss should be ~0, got {float(self_loss)}"
    assert loss.shape == () and loss.dtype == jnp.float32

    print("KERNEL_OK")
</pallas_src>

<mosaic_0001>
module attributes {stable_mosaic.version = 11 : i64} {
  func.func @_edges_kernel(%arg0: i32, %arg1: memref<8x16x16xf32, #tpu.memory_space<vmem>>, %arg2: memref<8x16x16xbf16, #tpu.memory_space<vmem>>, %arg3: memref<8x32x128xf32, #tpu.memory_space<vmem>>) attributes {dimension_semantics = [#tpu.dimension_semantics<parallel>], iteration_bounds = array<i64: 1>, scalar_prefetch = 0 : i64, scratch_operands = 1 : i64, tpu.core_type = #tpu.core_type<tc>, window_params = [{transform_indices = @transform_0, window_bounds = array<i64: 8, 16, 16>}, {transform_indices = @transform_1, window_bounds = array<i64: 8, 16, 16>}]} {
    %c0 = arith.constant 0 : index
    %c0_0 = arith.constant 0 : index
    %c0_1 = arith.constant 0 : index
    %0 = vector.load %arg1[%c0, %c0_0, %c0_1] : memref<8x16x16xf32, #tpu.memory_space<vmem>>, vector<8x16x16xf32>
    %cst = arith.constant 0.000000e+00 : f32
    %1 = vector.broadcast %cst : f32 to vector<8x1x18xf32>
    %c0_2 = arith.constant 0 : index
    %c7 = arith.constant 7 : index
    %c7_3 = arith.constant 7 : index
    %2 = vector.load %arg3[%c0_2, %c7, %c7_3] : memref<8x32x128xf32, #tpu.memory_space<vmem>>, vector<8x1x18xf32>
    tpu.vector_store %arg3[%c0_2, %c7, %c7_3], %1 {strides = array<i32>} : memref<8x32x128xf32, #tpu.memory_space<vmem>>, vector<8x1x18xf32>,
    %c0_4 = arith.constant 0 : index
    %c24 = arith.constant 24 : index
    %c7_5 = arith.constant 7 : index
    %3 = vector.load %arg3[%c0_4, %c24, %c7_5] : memref<8x32x128xf32, #tpu.memory_space<vmem>>, vector<8x1x18xf32>
    tpu.vector_store %arg3[%c0_4, %c24, %c7_5], %1 {strides = array<i32>} : memref<8x32x128xf32, #tpu.memory_space<vmem>>, vector<8x1x18xf32>,
    %cst_6 = arith.constant 0.000000e+00 : f32
    %4 = vector.broadcast %cst_6 : f32 to vector<8x16x1xf32>
    %c0_7 = arith.constant 0 : index
    %c8 = arith.constant 8 : index
    %c7_8 = arith.constant 7 : index
    %5 = vector.load %arg3[%c0_7, %c8, %c7_8] : memref<8x32x128xf32, #tpu.memory_space<vmem>>, vector<8x16x1xf32>
    tpu.vector_store %arg3[%c0_7, %c8, %c7_8], %4 {strides = array<i32>} : memref<8x32x128xf32, #tpu.memory_space<vmem>>, vector<8x16x1xf32>,
    %c0_9 = arith.constant 0 : index
    %c8_10 = arith.constant 8 : index
    %c24_11 = arith.constant 24 : index
    %6 = vector.load %arg3[%c0_9, %c8_10, %c24_11] : memref<8x32x128xf32, #tpu.memory_space<vmem>>, vector<8x16x1xf32>
    tpu.vector_store %arg3[%c0_9, %c8_10, %c24_11], %4 {strides = array<i32>} : memref<8x32x128xf32, #tpu.memory_space<vmem>>, vector<8x16x1xf32>,
    %c0_12 = arith.constant 0 : index
    %c8_13 = arith.constant 8 : index
    %c8_14 = arith.constant 8 : index
    %7 = vector.load %arg3[%c0_12, %c8_13, %c8_14] : memref<8x32x128xf32, #tpu.memory_space<vmem>>, vector<8x16x16xf32>
    tpu.vector_store %arg3[%c0_12, %c8_13, %c8_14], %0 {strides = array<i32>} : memref<8x32x128xf32, #tpu.memory_space<vmem>>, vector<8x16x16xf32>,
    %c0_15 = arith.constant 0 : index
    %c8_16 = arith.constant 8 : index
    %c7_17 = arith.constant 7 : index
    %8 = vector.load %arg3[%c0_15, %c8_16, %c7_17] : memref<8x32x128xf32, #tpu.memory_space<vmem>>, vector<8x16x16xf32>
    %c0_18 = arith.constant 0 : index
    %c8_19 = arith.constant 8 : index
    %c8_20 = arith.constant 8 : index
    %9 = vector.load %arg3[%c0_18, %c8_19, %c8_20] : memref<8x32x128xf32, #tpu.memory_space<vmem>>, vector<8x16x16xf32>
    %cst_21 = arith.constant 2.000000e+00 : f32
    %10 = vector.broadcast %cst_21 : f32 to vector<8x16x16xf32>
    %11 = arith.mulf %10, %9 : vector<8x16x16xf32>
    %12 = arith.addf %8, %11 : vector<8x16x16xf32>
    %c0_22 = arith.constant 0 : index
    %c8_23 = arith.constant 8 : index
    %c9 = arith.constant 9 : index
    %13 = vector.load %arg3[%c0_22, %c8_23, %c9] : memref<8x32x128xf32, #tpu.memory_space<vmem>>, vector<8x16x16xf32>
    %14 = arith.addf %12, %13 : vector<8x16x16xf32>
    %c0_24 = arith.constant 0 : index
    %c8_25 = arith.constant 8 : index
    %c8_26 = arith.constant 8 : index
    %15 = vector.load %arg3[%c0_24, %c8_25, %c8_26] : memref<8x32x128xf32, #tpu.memory_space<vmem>>, vector<8x16x16xf32>
    tpu.vector_store %arg3[%c0_24, %c8_25, %c8_26], %14 {strides = array<i32>} : memref<8x32x128xf32, #tpu.memory_space<vmem>>, vector<8x16x16xf32>,
    %c0_27 = arith.constant 0 : index
    %c7_28 = arith.constant 7 : index
    %c8_29 = arith.constant 8 : index
    %16 = vector.load %arg3[%c0_27, %c7_28, %c8_29] : memref<8x32x128xf32, #tpu.memory_space<vmem>>, vector<8x16x16xf32>
    %c0_30 = arith.constant 0 : index
    %c8_31 = arith.constant 8 : index
    %c8_32 = arith.constant 8 : index
    %17 = vector.load %arg3[%c0_30, %c8_31, %c8_32] : memref<8x32x128xf32, #tpu.memory_space<vmem>>, vector<8x16x16xf32>
    %cst_33 = arith.constant 2.000000e+00 : f32
    %18 = vector.broadcast %cst_33 : f32 to vector<8x16x16xf32>
    %19 = arith.mulf %18, %17 : vector<8x16x16xf32>
    %20 = arith.addf %16, %19 : vector<8x16x16xf32>
    %c0_34 = arith.constant 0 : index
    %c9_35 = arith.constant 9 : index
    %c8_36 = arith.constant 8 : index
    %21 = vector.load %arg3[%c0_34, %c9_35, %c8_36] : memref<8x32x128xf32, #tpu.memory_space<vmem>>, vector<8x16x16xf32>
    %22 = arith.addf %20, %21 : vector<8x16x16xf32>
    %cst_37 = arith.constant 6.250000e-02 : f32
    %23 = vector.broadcast %cst_37 : f32 to vector<8x16x16xf32>
    %24 = arith.mulf %22, %23 : vector<8x16x16xf32>
    %c0_38 = arith.constant 0 : index
    %c8_39 = arith.constant 8 : index
    %c8_40 = arith.constant 8 : index
    %25 = vector.load %arg3[%c0_38, %c8_39, %c8_40] : memref<8x32x128xf32, #tpu.memory_space<vmem>>, vector<8x16x16xf32>
    tpu.vector_store %arg3[%c0_38, %c8_39, %c8_40], %24 {strides = array<i32>} : memref<8x32x128xf32, #tpu.memory_space<vmem>>, vector<8x16x16xf32>,
    %c0_41 = arith.constant 0 : index
    %c7_42 = arith.constant 7 : index
    %c8_43 = arith.constant 8 : index
    %26 = vector.load %arg3[%c0_41, %c7_42, %c8_43] : memref<8x32x128xf32, #tpu.memory_space<vmem>>, vector<8x16x16xf32>
    %c0_44 = arith.constant 0 : index
    %c8_45 = arith.constant 8 : index
    %c8_46 = arith.constant 8 : index
    %27 = vector.load %arg3[%c0_44, %c8_45, %c8_46] : memref<8x32x128xf32, #tpu.memory_space<vmem>>, vector<8x16x16xf32>
    %c0_47 = arith.constant 0 : index
    %c9_48 = arith.constant 9 : index
    %c8_49 = arith.constant 8 : index
    %28 = vector.load %arg3[%c0_47, %c9_48, %c8_49] : memref<8x32x128xf32, #tpu.memory_space<vmem>>, vector<8x16x16xf32>
    %cst_50 = arith.constant 2.000000e+00 : f32
    %29 = vector.broadcast %cst_50 : f32 to vector<8x16x16xf32>
    %30 = arith.mulf %29, %27 : vector<8x16x16xf32>
    %31 = arith.addf %26, %30 : vector<8x16x16xf32>
    %32 = arith.addf %31, %28 : vector<8x16x16xf32>
    %33 = arith.subf %28, %26 : vector<8x16x16xf32>
    %c0_51 = arith.constant 0 : index
    %c8_52 = arith.constant 8 : index
    %c8_53 = arith.constant 8 : index
    %34 = vector.load %arg3[%c0_51, %c8_52, %c8_53] : memref<8x32x128xf32, #tpu.memory_space<vmem>>, vector<8x16x16xf32>
    tpu.vector_store %arg3[%c0_51, %c8_52, %c8_53], %32 {strides = array<i32>} : memref<8x32x128xf32, #tpu.memory_space<vmem>>, vector<8x16x16xf32>,
    %c0_54 = arith.constant 0 : index
    %c8_55 = arith.constant 8 : index
    %c9_56 = arith.constant 9 : index
    %35 = vector.load %arg3[%c0_54, %c8_55, %c9_56] : memref<8x32x128xf32, #tpu.memory_space<vmem>>, vector<8x16x16xf32>
    %c0_57 = arith.constant 0 : index
    %c8_58 = arith.constant 8 : index
    %c7_59 = arith.constant 7 : index
    %36 = vector.load %arg3[%c0_57, %c8_58, %c7_59] : memref<8x32x128xf32, #tpu.memory_space<vmem>>, vector<8x16x16xf32>
    %37 = arith.subf %35, %36 : vector<8x16x16xf32>
    %c0_60 = arith.constant 0 : index
    %c8_61 = arith.constant 8 : index
    %c8_62 = arith.constant 8 : index
    %38 = vector.load %arg3[%c0_60, %c8_61, %c8_62] : memref<8x32x128xf32, #tpu.memory_space<vmem>>, vector<8x16x16xf32>
    tpu.vector_store %arg3[%c0_60, %c8_61, %c8_62], %33 {strides = array<i32>} : memref<8x32x128xf32, #tpu.memory_space<vmem>>, vector<8x16x16xf32>,
    %c0_63 = arith.constant 0 : index
    %c8_64 = arith.constant 8 : index
    %c7_65 = arith.constant 7 : index
    %39 = vector.load %arg3[%c0_63, %c8_64, %c7_65] : memref<8x32x128xf32, #tpu.memory_space<vmem>>, vector<8x16x16xf32>
    %c0_66 = arith.constant 0 : index
    %c8_67 = arith.constant 8 : index
    %c8_68 = arith.constant 8 : index
    %40 = vector.load %arg3[%c0_66, %c8_67, %c8_68] : memref<8x32x128xf32, #tpu.memory_space<vmem>>, vector<8x16x16xf32>
    %cst_69 = arith.constant 2.000000e+00 : f32
    %41 = vector.broadcast %cst_69 : f32 to vector<8x16x16xf32>
    %42 = arith.mulf %41, %40 : vector<8x16x16xf32>
    %43 = arith.addf %39, %42 : vector<8x16x16xf32>
    %c0_70 = arith.constant 0 : index
    %c8_71 = arith.constant 8 : index
    %c9_72 = arith.constant 9 : index
    %44 = vector.load %arg3[%c0_70, %c8_71, %c9_72] : memref<8x32x128xf32, #tpu.memory_space<vmem>>, vector<8x16x16xf32>
    %45 = arith.addf %43, %44 : vector<8x16x16xf32>
    %46 = arith.mulf %37, %37 : vector<8x16x16xf32>
    %47 = arith.mulf %45, %45 : vector<8x16x16xf32>
    %48 = arith.addf %46, %47 : vector<8x16x16xf32>
    %49 = math.absf %37 : vector<8x16x16xf32>
    %50 = math.absf %45 : vector<8x16x16xf32>
    %cst_73 = arith.constant 0.414213568 : f32
    %51 = vector.broadcast %cst_73 : f32 to vector<8x16x16xf32>
    %52 = arith.mulf %51, %49 : vector<8x16x16xf32>
    %53 = arith.cmpf ole, %50, %52 : vector<8x16x16xf32>
    %cst_74 = arith.constant 0.414213568 : f32
    %54 = vector.broadcast %cst_74 : f32 to vector<8x16x16xf32>
    %55 = arith.mulf %54, %50 : vector<8x16x16xf32>
    %56 = arith.cmpf ole, %49, %55 : vector<8x16x16xf32>
    %57 = arith.ori %53, %56 : vector<8x16x16xi1>
    %cst_75 = arith.constant dense<true> : vector<8x16x16xi1>
    %58 = arith.xori %57, %cst_75 : vector<8x16x16xi1>
    %59 = arith.mulf %37, %45 : vector<8x16x16xf32>
    %cst_76 = arith.constant 0.000000e+00 : f32
    %60 = vector.broadcast %cst_76 : f32 to vector<8x16x16xf32>
    %61 = arith.cmpf oge, %59, %60 : vector<8x16x16xf32>
    %62 = arith.andi %58, %61 : vector<8x16x16xi1>
    %c0_77 = arith.constant 0 : index
    %c8_78 = arith.constant 8 : index
    %c8_79 = arith.constant 8 : index
    %63 = vector.load %arg3[%c0_77, %c8_78, %c8_79] : memref<8x32x128xf32, #tpu.memory_space<vmem>>, vector<8x16x16xf32>
    tpu.vector_store %arg3[%c0_77, %c8_78, %c8_79], %48 {strides = array<i32>} : memref<8x32x128xf32, #tpu.memory_space<vmem>>, vector<8x16x16xf32>,
    %c0_80 = arith.constant 0 : index
    %c8_81 = arith.constant 8 : index
    %c7_82 = arith.constant 7 : index
    %64 = vector.load %arg3[%c0_80, %c8_81, %c7_82] : memref<8x32x128xf32, #tpu.memory_space<vmem>>, vector<8x16x16xf32>
    %c0_83 = arith.constant 0 : index
    %c8_84 = arith.constant 8 : index
    %c9_85 = arith.constant 9 : index
    %65 = vector.load %arg3[%c0_83, %c8_84, %c9_85] : memref<8x32x128xf32, #tpu.memory_space<vmem>>, vector<8x16x16xf32>
    %c0_86 = arith.constant 0 : index
    %c7_87 = arith.constant 7 : index
    %c8_88 = arith.constant 8 : index
    %66 = vector.load %arg3[%c0_86, %c7_87, %c8_88] : memref<8x32x128xf32, #tpu.memory_space<vmem>>, vector<8x16x16xf32>
    %c0_89 = arith.constant 0 : index
    %c9_90 = arith.constant 9 : index
    %c8_91 = arith.constant 8 : index
    %67 = vector.load %arg3[%c0_89, %c9_90, %c8_91] : memref<8x32x128xf32, #tpu.memory_space<vmem>>, vector<8x16x16xf32>
    %c0_92 = arith.constant 0 : index
    %c7_93 = arith.constant 7 : index
    %c7_94 = arith.constant 7 : index
    %68 = vector.load %arg3[%c0_92, %c7_93, %c7_94] : memref<8x32x128xf32, #tpu.memory_space<vmem>>, vector<8x16x16xf32>
    %c0_95 = arith.constant 0 : index
    %c7_96 = arith.constant 7 : index
    %c9_97 = arith.constant 9 : index
    %69 = vector.load %arg3[%c0_95, %c7_96, %c9_97] : memref<8x32x128xf32, #tpu.memory_space<vmem>>, vector<8x16x16xf32>
    %c0_98 = arith.constant 0 : index
    %c9_99 = arith.constant 9 : index
    %c7_100 = arith.constant 7 : index
    %70 = vector.load %arg3[%c0_98, %c9_99, %c7_100] : memref<8x32x128xf32, #tpu.memory_space<vmem>>, vector<8x16x16xf32>
    %c0_101 = arith.constant 0 : index
    %c9_102 = arith.constant 9 : index
    %c9_103 = arith.constant 9 : index
    %71 = vector.load %arg3[%c0_101, %c9_102, %c9_103] : memref<8x32x128xf32, #tpu.memory_space<vmem>>, vector<8x16x16xf32>
    %72 = arith.select %62, %71, %70 : vector<8x16x16xi1>, vector<8x16x16xf32>
    %73 = arith.select %56, %66, %72 : vector<8x16x16xi1>, vector<8x16x16xf32>
    %74 = arith.select %53, %64, %73 : vector<8x16x16xi1>, vector<8x16x16xf32>
    %75 = arith.select %62, %68, %69 : vector<8x16x16xi1>, vector<8x16x16xf32>
    %76 = arith.select %56, %67, %75 : vector<8x16x16xi1>, vector<8x16x16xf32>
    %77 = arith.select %53, %65, %76 : vector<8x16x16xi1>, vector<8x16x16xf32>
    %78 = arith.cmpf oge, %48, %74 : vector<8x16x16xf32>
    %79 = arith.cmpf oge, %48, %77 : vector<8x16x16xf32>
    %80 = arith.andi %78, %79 : vector<8x16x16xi1>
    %cst_104 = arith.constant 9.000000e-02 : f32
    %81 = vector.broadcast %cst_104 : f32 to vector<8x16x16xf32>
    %82 = arith.cmpf oge, %48, %81 : vector<8x16x16xf32>
    %83 = arith.andi %80, %82 : vector<8x16x16xi1>
    %cst_105 = arith.constant 0.00999999977 : f32
    %84 = vector.broadcast %cst_105 : f32 to vector<8x16x16xf32>
    %85 = arith.cmpf oge, %48, %84 : vector<8x16x16xf32>
    %86 = arith.andi %80, %85 : vector<8x16x16xi1>
    %cst_106 = arith.constant 5.000000e-01 : f32
    %cst_107 = arith.constant 0.000000e+00 : f32
    %87 = vector.broadcast %cst_106 : f32 to vector<8x16x16xf32>
    %88 = vector.broadcast %cst_107 : f32 to vector<8x16x16xf32>
    %89 = arith.select %86, %87, %88 : vector<8x16x16xi1>, vector<8x16x16xf32>
    %cst_108 = arith.constant 1.000000e+00 : f32
    %90 = vector.broadcast %cst_108 : f32 to vector<8x16x16xf32>
    %91 = arith.select %83, %90, %89 : vector<8x16x16xi1>, vector<8x16x16xf32>
    %92 = arith.truncf %91 : vector<8x16x16xf32> to vector<8x16x16xbf16>
    %c0_109 = arith.constant 0 : index
    %c0_110 = arith.constant 0 : index
    %c0_111 = arith.constant 0 : index
    %93 = vector.load %arg2[%c0_109, %c0_110, %c0_111] : memref<8x16x16xbf16, #tpu.memory_space<vmem>>, vector<8x16x16xbf16>
    tpu.vector_store %arg2[%c0_109, %c0_110, %c0_111], %92 {strides = array<i32>} : memref<8x16x16xbf16, #tpu.memory_space<vmem>>, vector<8x16x16xbf16>,
    return
  }
  func.func @transform_0(%arg0: i32) -> (i32, i32, i32) {
    %c0_i32 = arith.constant 0 : i32
    %c0_i32_0 = arith.constant 0 : i32
    %c0_i32_1 = arith.constant 0 : i32
    return %arg0, %c0_i32, %c0_i32_0 : i32, i32, i32
  }
  func.func @transform_1(%arg0: i32) -> (i32, i32, i32) {
    %c0_i32 = arith.constant 0 : i32
    %c0_i32_0 = arith.constant 0 : i32
    %c0_i32_1 = arith.constant 0 : i32
    return %arg0, %c0_i32, %c0_i32_0 : i32, i32, i32
  }
}

</mosaic_0001>

<bundles_post_ra>
// kernel: tpu_custom_call.1
= control target key start
LH: loop header
LB: loop body
LE: loop exit
PB: predicated region body
PF: predicated region fallthrough
CT: control target
= control target key end

     0   :  { %6 = vsyncpa [#allocation4], 0  ;;  %s5457_s0 = inlined_call_operand.hbm [shape: f32[8,16,16], index: 0, kind: input, shape index: {}]   ;;  %s5458_s1 = inlined_call_operand.hbm [shape: bf16[8,16,16], index: 1, kind: output, shape index: {}]  }
   0x1   :  { %7 = vsyncpa [#allocation5], 0  ;;  %s12_s8 = sshll.u32 %s5457_s0, 4  ;;  %s2835_s9 = smov [#allocation3]   ;;  %s13_s8 = int_to_ptr.hbm [resolvable:$true] %s12_s8 }
   0x2   :  { %s14_s10 = sshll.u32 %s2835_s9, 4  ;;  %s2836_s11 = smov 128   ;;  %s15_s10 = int_to_ptr.vmem [resolvable:$true] %s14_s10 }
   0x3   :  { %s2837_s12 = smov 8  }
   0x4   :  { %20 = dma.hbm_to_vmem [thread:$0]  %s13_s8, 2048, %s15_s10, [#allocation4], %s2836_s11, %s2836_s11, %s2837_s12  }
   0x5   :  { %2831 = dma.done.wait [#allocation4], 2048  }
   0x6   :  { %2832 = vsyncadd [#allocation4], 4294965248  ;;  %v27_v0 = vld [vmem:[#allocation3 + $0x10] sm:$0xff]  ;;  %v25_v1 = vld [vmem:[#allocation3] sm:$0xff]  ;;  %vm58_vm0 = vcmask 64568   ;;  %vm75_vm1 = vcmask 203968  }
   0x7   :  { %112 = vrot.lane.b32.xlu1 %v27_v0, %s2837_s12  ;;  %108 = vrot.lane.b32.xlu0 %v25_v1, %s2837_s12  ;;  %v29_v2 = vld [vmem:[#allocation3 + $0x20] sm:$0xff]  ;;  %v28_v3 = vld [vmem:[#allocation3 + $0x18] sm:$0xff]  ;;  %v26_v4 = vld [vmem:[#allocation3 + $0x8] sm:$0xff]  ;;  %v5459_v6 = vmov 0.0   ;;  %vm156_vm2 = vcmask 195648   ;;  %s2839_s0 = smov 126  }
   0x8   :  { %116 = vrot.lane.b32.xlu2 %v29_v2, %s2837_s12  ;;  %v30_v5 = vld [vmem:[#allocation3 + $0x28] sm:$0xff]  ;;  %63 = vst.msk [vmem:[#allocation2 + $0x48] sm:$0xff] %vm58_vm0, %v5459_v6  ;;  %v31_v7 = vld [vmem:[#allocation3 + $0x30] sm:$0xff]  ;;  %v32_v8 = vld [vmem:[#allocation3 + $0x38] sm:$0xff]  ;;  %s2840_s13 = smov 127   ;;  %s2841_s14 = smov 1  }
   0x9   :  { %80 = vst.msk [vmem:[#allocation2 + $0x48] sm:$0xff] %vm75_vm1, %v5459_v6  ;;  %v33_v9 = vld [vmem:[#allocation3 + $0x40] sm:$0xff]  ;;  %v34_v10 = vld [vmem:[#allocation3 + $0x48] sm:$0xff]  ;;  %v35_v11 = vld [vmem:[#allocation3 + $0x50] sm:$0xff]  ;;  %vm41_vm3 = vcmask 196664   ;;  %s2842_s15 = smov 2  }
   0xa   :  { %59 = vst.msk [vmem:[#allocation2 + $0x8] sm:$0xff] %vm58_vm0, %v5459_v6  ;;  %v36_v12 = vld [vmem:[#allocation3 + $0x58] sm:$0xff]  ;;  %v37_v13 = vld [vmem:[#allocation3 + $0x60] sm:$0xff]  ;;  %v38_v14 = vld [vmem:[#allocation3 + $0x68] sm:$0xff]  ;;  %s2845_s16 = smov 119   ;;  %s2846_s17 = smov [#allocation6]  }
   0xb   :  { %60 = vst.msk [vmem:[#allocation2 + $0x10] sm:$0xff] %vm58_vm0, %v5459_v6  ;;  %v39_v15 = vld [vmem:[#allocation3 + $0x70] sm:$0xff]  ;;  %v40_v16 = vld [vmem:[#allocation3 + $0x78] sm:$0xff]  ;;  %s2754_s18 = sshll.u32 %s2846_s17, 4  ;;  %s2756_s21 = sshll.u32 %s5458_s1, 4  ;;  %s2755_s18 = int_to_ptr.vmem [resolvable:$true] %s2754_s18  ;;  %s2757_s21 = int_to_ptr.hbm [resolvable:$true] %s2756_s21 }
   0xc   :  { %61 = vst.msk [vmem:[#allocation2 + $0x28] sm:$0xff] %vm58_vm0, %v5459_v6  ;;  %s2847_s22 = smov 64   ;;  %s2848_s23 = smov 4  }
   0xd   :  { %62 = vst.msk [vmem:[#allocation2 + $0x30] sm:$0xff] %vm58_vm0, %v5459_v6 }
   0xe   :  { %64 = vst.msk [vmem:[#allocation2 + $0x50] sm:$0xff] %vm58_vm0, %v5459_v6 }
   0xf   :  { %114 = vrot.lane.b32.xlu1 %v28_v3, %s2837_s12  ;;  %110 = vrot.lane.b32.xlu0 %v26_v4, %s2837_s12  ;;  %65 = vst.msk [vmem:[#allocation2 + $0x68] sm:$0xff] %vm58_vm0, %v5459_v6 }
  0x10   :  { %118 = vrot.lane.b32.xlu2 %v30_v5, %s2837_s12  ;;  %66 = vst.msk [vmem:[#allocation2 + $0x70] sm:$0xff] %vm58_vm0, %v5459_v6 }
  0x11   :  { %67 = vst.msk [vmem:[#allocation2 + $0x88] sm:$0xff] %vm58_vm0, %v5459_v6 }
  0x12   :  { %68 = vst.msk [vmem:[#allocation2 + $0x90] sm:$0xff] %vm58_vm0, %v5459_v6 }
  0x13   :  { %69 = vst.msk [vmem:[#allocation2 + $0xa8] sm:$0xff] %vm58_vm0, %v5459_v6 }
  0x14   :  { %70 = vst.msk [vmem:[#allocation2 + $0xb0] sm:$0xff] %vm58_vm0, %v5459_v6 }
  0x15   :  { %71 = vst.msk [vmem:[#allocation2 + $0xc8] sm:$0xff] %vm58_vm0, %v5459_v6 }
  0x16   :  { %72 = vst.msk [vmem:[#allocation2 + $0xd0] sm:$0xff] %vm58_vm0, %v5459_v6 }
  0x17   :  { %120 = vrot.lane.b32.xlu0 %v31_v7, %s2837_s12  ;;  %122 = vrot.lane.b32.xlu1 %v32_v8, %s2837_s12  ;;  %73 = vst.msk [vmem:[#allocation2 + $0xe8] sm:$0xff] %vm58_vm0, %v5459_v6 }
  0x18   :  { %124 = vrot.lane.b32.xlu2 %v33_v9, %s2837_s12  ;;  %74 = vst.msk [vmem:[#allocation2 + $0xf0] sm:$0xff] %vm58_vm0, %v5459_v6 }
  0x19   :  { %78 = vst.msk [vmem:[#allocation2 + $0x28] sm:$0xff] %vm75_vm1, %v5459_v6 }
  0x1a   :  { %76 = vst.msk [vmem:[#allocation2 + $0x8] sm:$0xff] %vm75_vm1, %v5459_v6 }
  0x1b   :  { %77 = vst.msk [vmem:[#allocation2 + $0x10] sm:$0xff] %vm75_vm1, %v5459_v6 }
  0x1c   :  { %79 = vst.msk [vmem:[#allocation2 + $0x30] sm:$0xff] %vm75_vm1, %v5459_v6 }
  0x1d   :  { %81 = vst.msk [vmem:[#allocation2 + $0x50] sm:$0xff] %vm75_vm1, %v5459_v6 }
  0x1e   :  { %82 = vst.msk [vmem:[#allocation2 + $0x68] sm:$0xff] %vm75_vm1, %v5459_v6 }
  0x1f   :  { %126 = vrot.lane.b32.xlu0 %v34_v10, %s2837_s12  ;;  %128 = vrot.lane.b32.xlu1 %v35_v11, %s2837_s12  ;;  %83 = vst.msk [vmem:[#allocation2 + $0x70] sm:$0xff] %vm75_vm1, %v5459_v6 }
  0x20   :  { %130 = vrot.lane.b32.xlu2 %v36_v12, %s2837_s12  ;;  %84 = vst.msk [vmem:[#allocation2 + $0x88] sm:$0xff] %vm75_vm1, %v5459_v6 }
  0x21   :  { %85 = vst.msk [vmem:[#allocation2 + $0x90] sm:$0xff] %vm75_vm1, %v5459_v6 }
  0x22   :  { %86 = vst.msk [vmem:[#allocation2 + $0xa8] sm:$0xff] %vm75_vm1, %v5459_v6 }
  0x23   :  { %87 = vst.msk [vmem:[#allocation2 + $0xb0] sm:$0xff] %vm75_vm1, %v5459_v6 }
  0x24   :  { %88 = vst.msk [vmem:[#allocation2 + $0xc8] sm:$0xff] %vm75_vm1, %v5459_v6 }
  0x25   :  { %89 = vst.msk [vmem:[#allocation2 + $0xd0] sm:$0xff] %vm75_vm1, %v5459_v6 }
  0x26   :  { %90 = vst.msk [vmem:[#allocation2 + $0xe8] sm:$0xff] %vm75_vm1, %v5459_v6 }
  0x27   :  { %132 = vrot.lane.b32.xlu0 %v37_v13, %s2837_s12  ;;  %134 = vrot.lane.b32.xlu1 %v38_v14, %s2837_s12  ;;  %91 = vst.msk [vmem:[#allocation2 + $0xf0] sm:$0xff] %vm75_vm1, %v5459_v6 }
  0x28   :  { %136 = vrot.lane.b32.xlu2 %v39_v15, %s2837_s12  ;;  %50 = vst.msk [vmem:[#allocation2 + $0x18] sm:$0x1] %vm41_vm3, %v5459_v6 }
  0x29   :  { %42 = vst.msk [vmem:[#allocation2 + $0x7] sm:$0x1] %vm41_vm3, %v5459_v6 }
  0x2a   :  { %43 = vst.msk [vmem:[#allocation2 + $0x27] sm:$0x1] %vm41_vm3, %v5459_v6 }
  0x2b   :  { %44 = vst.msk [vmem:[#allocation2 + $0x47] sm:$0x1] %vm41_vm3, %v5459_v6 }
  0x2c   :  { %45 = vst.msk [vmem:[#allocation2 + $0x67] sm:$0x1] %vm41_vm3, %v5459_v6 }
  0x2d   :  { %46 = vst.msk [vmem:[#allocation2 + $0x87] sm:$0x1] %vm41_vm3, %v5459_v6 }
  0x2e   :  { %47 = vst.msk [vmem:[#allocation2 + $0xa7] sm:$0x1] %vm41_vm3, %v5459_v6 }
  0x2f   :  { %138 = vrot.lane.b32.xlu0 %v40_v16, %s2837_s12  ;;  %48 = vst.msk [vmem:[#allocation2 + $0xc7] sm:$0x1] %vm41_vm3, %v5459_v6 }
  0x30   :  { %49 = vst.msk [vmem:[#allocation2 + $0xe7] sm:$0x1] %vm41_vm3, %v5459_v6 }
  0x31   :  { %51 = vst.msk [vmem:[#allocation2 + $0x38] sm:$0x1] %vm41_vm3, %v5459_v6 }
  0x32   :  { %52 = vst.msk [vmem:[#allocation2 + $0x58] sm:$0x1] %vm41_vm3, %v5459_v6 }
  0x33   :  { %53 = vst.msk [vmem:[#allocation2 + $0x78] sm:$0x1] %vm41_vm3, %v5459_v6 }
  0x34   :  { %54 = vst.msk [vmem:[#allocation2 + $0x98] sm:$0x1] %vm41_vm3, %v5459_v6 }
  0x35   :  { %55 = vst.msk [vmem:[#allocation2 + $0xb8] sm:$0x1] %vm41_vm3, %v5459_v6 }
  0x36   :  { %56 = vst.msk [vmem:[#allocation2 + $0xd8] sm:$0x1] %vm41_vm3, %v5459_v6 }
  0x37   :  { %57 = vst.msk [vmem:[#allocation2 + $0xf8] sm:$0x1] %vm41_vm3, %v5459_v6 }
  0x62   :  { %v117_v17 = vpop.permute.xlu2 %116 }
  0x63   :  { %161 = vst.msk [vmem:[#allocation2 + $0x48] sm:$0xff] %vm156_vm2, %v117_v17 }
  0x6a   :  { %v119_v18 = vpop.permute.xlu2 %118  ;;  %v2981_v37 = vld [vmem:[#allocation2 + $0x48] sm:$0xff] }
  0x6b   :  { %162 = vst.msk [vmem:[#allocation2 + $0x50] sm:$0xff] %vm156_vm2, %v119_v18  ;;  %v193_v55 = vmul.f32 2.0, %v2981_v37 }
  0x72   :  { %v125_v19 = vpop.permute.xlu2 %124  ;;  %v2960_v28 = vld [vmem:[#allocation2 + $0x50] sm:$0xff] }
  0x73   :  { %165 = vst.msk [vmem:[#allocation2 + $0x88] sm:$0xff] %vm156_vm2, %v125_v19  ;;  %v194_v54 = vmul.f32 2.0, %v2960_v28 }
  0x79   :  { %v113_v20 = vpop.permute.xlu1 %112  ;;  %v109_v21 = vpop.permute.xlu0 %108 }
  0x7a   :  { %159 = vst.msk [vmem:[#allocation2 + $0x28] sm:$0xff] %vm156_vm2, %v113_v20  ;;  %v131_v22 = vpop.permute.xlu2 %130  ;;  %v2974_v33 = vld [vmem:[#allocation2 + $0x88] sm:$0xff] }
  0x7b   :  { %157 = vst.msk [vmem:[#allocation2 + $0x8] sm:$0xff] %vm156_vm2, %v109_v21  ;;  %v197_v57 = vmul.f32 2.0, %v2974_v33 }
  0x7c   :  { %168 = vst.msk [vmem:[#allocation2 + $0xb0] sm:$0xff] %vm156_vm2, %v131_v22 }
  0x81   :  { %v115_v23 = vpop.permute.xlu1 %114  ;;  %v111_v24 = vpop.permute.xlu0 %110  ;;  %v2949_v25 = vld [vmem:[#allocation2 + $0x28] sm:$0xff] }
  0x82   :  { %160 = vst.msk [vmem:[#allocation2 + $0x30] sm:$0xff] %vm156_vm2, %v115_v23  ;;  %305 = vrot.lane.b32.xlu1 %v2949_v25, %s2839_s0  ;;  %v2954_v26 = vld [vmem:[#allocation2 + $0x8] sm:$0xff]  ;;  %v137_v27 = vpop.permute.xlu2 %136  ;;  %v191_v51 = vmul.f32 2.0, %v2949_v25 }
  0x83   :  { %158 = vst.msk [vmem:[#allocation2 + $0x10] sm:$0xff] %vm156_vm2, %v111_v24  ;;  %301 = vrot.lane.b32.xlu2 %v2954_v26, %s2839_s0  ;;  %v2988_v38 = vld [vmem:[#allocation2 + $0xb0] sm:$0xff]  ;;  %v189_v47 = vmul.f32 2.0, %v2954_v26 }
  0x84   :  { %171 = vst.msk [vmem:[#allocation2 + $0xe8] sm:$0xff] %vm156_vm2, %v137_v27  ;;  %v200_v60 = vmul.f32 2.0, %v2988_v38 }
  0x89   :  { %v121_v29 = vpop.permute.xlu0 %120  ;;  %v2962_v30 = vld [vmem:[#allocation2 + $0x30] sm:$0xff]  ;;  %v123_v31 = vpop.permute.xlu1 %122 }
  0x8a   :  { %163 = vst.msk [vmem:[#allocation2 + $0x68] sm:$0xff] %vm156_vm2, %v121_v29  ;;  %311 = vrot.lane.b32.xlu1 %v2960_v28, %s2839_s0  ;;  %v2967_v32 = vld [vmem:[#allocation2 + $0x10] sm:$0xff]  ;;  %v192_v50 = vmul.f32 2.0, %v2962_v30 }
  0x8b   :  { %307 = vrot.lane.b32.xlu2 %v2962_v30, %s2839_s0  ;;  %303 = vrot.lane.b32.xlu0 %v2967_v32, %s2839_s0  ;;  %164 = vst.msk [vmem:[#allocation2 + $0x70] sm:$0xff] %vm156_vm2, %v123_v31  ;;  %v3002_v43 = vld [vmem:[#allocation2 + $0xe8] sm:$0xff]  ;;  %v190_v52 = vmul.f32 2.0, %v2967_v32 }
  0x8c   :  { %v203_v63 = vmul.f32 2.0, %v3002_v43 }
  0x91   :  { %v127_v34 = vpop.permute.xlu0 %126  ;;  %v2976_v35 = vld [vmem:[#allocation2 + $0x68] sm:$0xff]  ;;  %v129_v36 = vpop.permute.xlu1 %128 }
  0x92   :  { %166 = vst.msk [vmem:[#allocation2 + $0x90] sm:$0xff] %vm156_vm2, %v127_v34  ;;  %317 = vrot.lane.b32.xlu1 %v2974_v33, %s2839_s0  ;;  %v2990_v39 = vld [vmem:[#allocation2 + $0x70] sm:$0xff]  ;;  %v195_v53 = vmul.f32 2.0, %v2976_v35 }
  0x93   :  { %309 = vrot.lane.b32.xlu0 %v2981_v37, %s2839_s0  ;;  %313 = vrot.lane.b32.xlu2 %v2976_v35, %s2839_s0  ;;  %167 = vst.msk [vmem:[#allocation2 + $0xa8] sm:$0xff] %vm156_vm2, %v129_v36  ;;  %v196_v58 = vmul.f32 2.0, %v2990_v39 }
  0x99   :  { %v133_v40 = vpop.permute.xlu0 %132  ;;  %v2992_v41 = vld [vmem:[#allocation2 + $0x90] sm:$0xff]  ;;  %v135_v42 = vpop.permute.xlu1 %134 }
  0x9a   :  { %169 = vst.msk [vmem:[#allocation2 + $0xc8] sm:$0xff] %vm156_vm2, %v133_v40  ;;  %323 = vrot.lane.b32.xlu1 %v2988_v38, %s2839_s0  ;;  %v3004_v44 = vld [vmem:[#allocation2 + $0xa8] sm:$0xff]  ;;  %v198_v56 = vmul.f32 2.0, %v2992_v41 }
  0x9b   :  { %315 = vrot.lane.b32.xlu0 %v2990_v39, %s2839_s0  ;;  %319 = vrot.lane.b32.xlu2 %v2992_v41, %s2839_s0  ;;  %170 = vst.msk [vmem:[#allocation2 + $0xd0] sm:$0xff] %vm156_vm2, %v135_v42  ;;  %v199_v61 = vmul.f32 2.0, %v3004_v44 }
  0xa1   :  { %v139_v45 = vpop.permute.xlu0 %138  ;;  %v3006_v46 = vld [vmem:[#allocation2 + $0xc8] sm:$0xff] }
  0xa2   :  { %172 = vst.msk [vmem:[#allocation2 + $0xf0] sm:$0xff] %vm156_vm2, %v139_v45  ;;  %329 = vrot.lane.b32.xlu1 %v3002_v43, %s2839_s0  ;;  %v3016_v48 = vld [vmem:[#allocation2 + $0xd0] sm:$0xff]  ;;  %v201_v59 = vmul.f32 2.0, %v3006_v46 }
  0xa3   :  { %321 = vrot.lane.b32.xlu0 %v3004_v44, %s2839_s0  ;;  %325 = vrot.lane.b32.xlu2 %v3006_v46, %s2839_s0  ;;  %v202_v0 = vmul.f32 2.0, %v3016_v48 }
  0xa9   :  { %v3018_v49 = vld [vmem:[#allocation2 + $0xf0] sm:$0xff] }
  0xaa   :  { %221 = vrot.lane.b32.xlu1 %v189_v47, %s2840_s13  ;;  %v204_v62 = vmul.f32 2.0, %v3018_v49 }
  0xab   :  { %327 = vrot.lane.b32.xlu0 %v3016_v48, %s2839_s0  ;;  %331 = vrot.lane.b32.xlu2 %v3018_v49, %s2839_s0 }
  0xb2   :  { %227 = vrot.lane.b32.xlu1 %v192_v50, %s2840_s13 }
  0xb3   :  { %225 = vrot.lane.b32.xlu0 %v191_v51, %s2840_s13  ;;  %223 = vrot.lane.b32.xlu2 %v190_v52, %s2840_s13 }
  0xba   :  { %233 = vrot.lane.b32.xlu1 %v195_v53, %s2840_s13 }
  0xbb   :  { %231 = vrot.lane.b32.xlu0 %v194_v54, %s2840_s13  ;;  %229 = vrot.lane.b32.xlu2 %v193_v55, %s2840_s13 }
  0xc2   :  { %239 = vrot.lane.b32.xlu1 %v198_v56, %s2840_s13 }
  0xc3   :  { %237 = vrot.lane.b32.xlu0 %v197_v57, %s2840_s13  ;;  %235 = vrot.lane.b32.xlu2 %v196_v58, %s2840_s13 }
  0xca   :  { %245 = vrot.lane.b32.xlu1 %v201_v59, %s2840_s13 }
  0xcb   :  { %243 = vrot.lane.b32.xlu0 %v200_v60, %s2840_s13  ;;  %241 = vrot.lane.b32.xlu2 %v199_v61, %s2840_s13 }
  0xd2   :  { %251 = vrot.lane.b32.xlu1 %v204_v62, %s2840_s13 }
  0xd3   :  { %249 = vrot.lane.b32.xlu0 %v203_v63, %s2840_s13  ;;  %247 = vrot.lane.b32.xlu2 %v202_v0, %s2840_s13 }
  0xdd   :  { %v302_v1 = vpop.permute.xlu2 %301 }
  0xe5   :  { %v308_v2 = vpop.permute.xlu2 %307 }
  0xed   :  { %v314_v3 = vpop.permute.xlu2 %313 }
  0xf4   :  { %v306_v4 = vpop.permute.xlu1 %305 }
  0xf5   :  { %v3055_v5 = vpop.permute.xlu2 %319 }
  0xfc   :  { %v312_v7 = vpop.permute.xlu1 %311 }
  0xfd   :  { %v3057_v8 = vpop.permute.xlu2 %325  ;;  %v304_v9 = vpop.permute.xlu0 %303 }
 0x104   :  { %v3059_v10 = vpop.permute.xlu1 %317 }
 0x105   :  { %v3061_v11 = vpop.permute.xlu2 %331  ;;  %v310_v12 = vpop.permute.xlu0 %309 }
 0x10c   :  { %v3063_v13 = vpop.permute.xlu1 %323 }
 0x10d   :  { %v224_v14 = vpop.permute.xlu2 %223  ;;  %v316_v15 = vpop.permute.xlu0 %315 }
 0x10e   :  { %v270_v16 = vadd.f32 %v224_v14, %v2967_v32 }
 0x110   :  { %v350_v17 = vadd.f32 %v304_v9, %v270_v16 }
 0x112   :  { %383 = vrot.lane.b32.xlu1 %v350_v17, %s2841_s14 }
 0x114   :  { %v3067_v18 = vpop.permute.xlu1 %329 }
 0x115   :  { %v230_v19 = vpop.permute.xlu2 %229  ;;  %v322_v20 = vpop.permute.xlu0 %321 }
 0x116   :  { %v273_v21 = vadd.f32 %v230_v19, %v2981_v37 }
 0x118   :  { %v353_v22 = vadd.f32 %v310_v12, %v273_v21 }
 0x11a   :  { %389 = vrot.lane.b32.xlu1 %v353_v22, %s2841_s14 }
 0x11c   :  { %v222_v23 = vpop.permute.xlu1 %221 }
 0x11d   :  { %v269_v24 = vadd.f32 %v222_v23, %v2954_v26  ;;  %v236_v27 = vpop.permute.xlu2 %235  ;;  %v328_v29 = vpop.permute.xlu0 %327 }
 0x11e   :  { %v276_v31 = vadd.f32 %v236_v27, %v2990_v39 }
 0x11f   :  { %v349_v32 = vadd.f32 %v302_v1, %v269_v24 }
 0x120   :  { %v356_v34 = vadd.f32 %v316_v15, %v276_v31 }
 0x121   :  { %381 = vrot.lane.b32.xlu0 %v349_v32, %s2841_s14 }
 0x122   :  { %395 = vrot.lane.b32.xlu1 %v356_v34, %s2841_s14 }
 0x124   :  { %v228_v36 = vpop.permute.xlu1 %227 }
 0x125   :  { %v272_v40 = vadd.f32 %v228_v36, %v2962_v30  ;;  %v242_v37 = vpop.permute.xlu2 %241  ;;  %v226_v42 = vpop.permute.xlu0 %225 }
 0x126   :  { %v279_v45 = vadd.f32 %v242_v37, %v3004_v44  ;;  %v271_v47 = vadd.f32 %v226_v42, %v2949_v25 }
 0x127   :  { %v352_v26 = vadd.f32 %v308_v2, %v272_v40 }
 0x128   :  { %v359_v50 = vadd.f32 %v322_v20, %v279_v45  ;;  %v351_v51 = vadd.f32 %v306_v4, %v271_v47 }
 0x129   :  { %387 = vrot.lane.b32.xlu0 %v352_v26, %s2841_s14 }
 0x12a   :  { %401 = vrot.lane.b32.xlu1 %v359_v50, %s2841_s14  ;;  %385 = vrot.lane.b32.xlu2 %v351_v51, %s2841_s14 }
 0x12c   :  { %v234_v30 = vpop.permute.xlu1 %233 }
 0x12d   :  { %v275_v39 = vadd.f32 %v234_v30, %v2976_v35  ;;  %v248_v25 = vpop.permute.xlu2 %247  ;;  %v232_v44 = vpop.permute.xlu0 %231 }
 0x12e   :  { %v282_v52 = vadd.f32 %v248_v25, %v3016_v48  ;;  %v274_v53 = vadd.f32 %v232_v44, %v2960_v28 }
 0x12f   :  { %v355_v54 = vadd.f32 %v314_v3, %v275_v39 }
 0x130   :  { %v362_v55 = vadd.f32 %v328_v29, %v282_v52  ;;  %v354_v56 = vadd.f32 %v312_v7, %v274_v53 }
 0x131   :  { %393 = vrot.lane.b32.xlu0 %v355_v54, %s2841_s14 }
 0x132   :  { %407 = vrot.lane.b32.xlu1 %v362_v55, %s2841_s14  ;;  %391 = vrot.lane.b32.xlu2 %v354_v56, %s2841_s14 }
 0x134   :  { %v240_v28 = vpop.permute.xlu1 %239 }
 0x135   :  { %v278_v35 = vadd.f32 %v240_v28, %v2992_v41  ;;  %v238_v48 = vpop.permute.xlu0 %237 }
 0x136   :  { %v277_v57 = vadd.f32 %v238_v48, %v2974_v33 }
 0x137   :  { %v358_v58 = vadd.f32 %v3055_v5, %v278_v35 }
 0x138   :  { %v357_v59 = vadd.f32 %v3059_v10, %v277_v57 }
 0x139   :  { %399 = vrot.lane.b32.xlu0 %v358_v58, %s2841_s14 }
 0x13a   :  { %397 = vrot.lane.b32.xlu2 %v357_v59, %s2841_s14 }
 0x13c   :  { %v246_v33 = vpop.permute.xlu1 %245 }
 0x13d   :  { %v281_v41 = vadd.f32 %v246_v33, %v3006_v46  ;;  %v244_v60 = vpop.permute.xlu0 %243 }
 0x13e   :  { %v280_v61 = vadd.f32 %v244_v60, %v2988_v38 }
 0x13f   :  { %v361_v62 = vadd.f32 %v3057_v8, %v281_v41 }
 0x140   :  { %v360_v63 = vadd.f32 %v3063_v13, %v280_v61 }
 0x141   :  { %405 = vrot.lane.b32.xlu0 %v361_v62, %s2841_s14 }
 0x142   :  { %403 = vrot.lane.b32.xlu2 %v360_v63, %s2841_s14 }
 0x144   :  { %v252_v0 = vpop.permute.xlu1 %251 }
 0x145   :  { %v284_v1 = vadd.f32 %v252_v0, %v3018_v49  ;;  %v250_v2 = vpop.permute.xlu0 %249 }
 0x146   :  { %v283_v3 = vadd.f32 %v250_v2, %v3002_v43 }
 0x147   :  { %v364_v4 = vadd.f32 %v3061_v11, %v284_v1 }
 0x148   :  { %v363_v46 = vadd.f32 %v3067_v18, %v283_v3 }
 0x149   :  { %411 = vrot.lane.b32.xlu0 %v364_v4, %s2841_s14 }
 0x14a   :  { %409 = vrot.lane.b32.xlu2 %v363_v46, %s2841_s14 }
 0x184   :  { %v384_v38 = vpop.permute.xlu1 %383  ;;  %v386_v5 = vpop.permute.xlu2 %385 }
 0x185   :  { %430 = vst.msk [vmem:[#allocation2 + $0x10] sm:$0xff] %vm156_vm2, %v384_v38 }
 0x186   :  { %431 = vst.msk [vmem:[#allocation2 + $0x28] sm:$0xff] %vm156_vm2, %v386_v5 }
 0x18c   :  { %v390_v7 = vpop.permute.xlu1 %389  ;;  %v392_v8 = vpop.permute.xlu2 %391  ;;  %v462_v15 = vld [vmem:[#allocation2 + $0x10] sm:$0xff] }
 0x18d   :  { %433 = vst.msk [vmem:[#allocation2 + $0x48] sm:$0xff] %vm156_vm2, %v390_v7  ;;  %v478_v22 = vmul.f32 2.0, %v462_v15  ;;  %v463_v24 = vld [vmem:[#allocation2 + $0x28] sm:$0xff]  ;;  %v510_v45 = vld [vmem:[#allocation2 + $0x11] sm:$0xff] }
 0x18e   :  { %434 = vst.msk [vmem:[#allocation2 + $0x50] sm:$0xff] %vm156_vm2, %v392_v8  ;;  %v479_v26 = vmul.f32 2.0, %v463_v24  ;;  %v447_v44 = vld [vmem:[#allocation2 + $0x27] sm:$0xff] }
 0x190   :  { %v495_v52 = vadd.f32 %v479_v26, %v447_v44 }
 0x193   :  { %v382_v43 = vpop.permute.xlu0 %381 }
 0x194   :  { %v465_v49 = vld [vmem:[#allocation2 + $0x48] sm:$0xff]  ;;  %v396_v9 = vpop.permute.xlu1 %395  ;;  %v398_v10 = vpop.permute.xlu2 %397  ;;  %429 = vst.msk [vmem:[#allocation2 + $0x8] sm:$0xff] %vm156_vm2, %v382_v43 }
 0x195   :  { %v481_v11 = vmul.f32 2.0, %v465_v49  ;;  %v466_v12 = vld [vmem:[#allocation2 + $0x50] sm:$0xff]  ;;  %436 = vst.msk [vmem:[#allocation2 + $0x70] sm:$0xff] %vm156_vm2, %v396_v9  ;;  %v449_v13 = vld [vmem:[#allocation2 + $0x47] sm:$0xff] }
 0x196   :  { %v482_v14 = vmul.f32 2.0, %v466_v12  ;;  %437 = vst.msk [vmem:[#allocation2 + $0x88] sm:$0xff] %vm156_vm2, %v398_v10  ;;  %v450_v17 = vld [vmem:[#allocation2 + $0x4f] sm:$0xff] }
 0x197   :  { %v497_v16 = vadd.f32 %v481_v11, %v449_v13  ;;  %v513_v19 = vld [vmem:[#allocation2 + $0x49] sm:$0xff]  ;;  %v514_v20 = vld [vmem:[#allocation2 + $0x51] sm:$0xff] }
 0x198   :  { %v498_v18 = vadd.f32 %v482_v14, %v450_v17 }
 0x199   :  { %v529_v21 = vadd.f32 %v513_v19, %v497_v16 }
 0x19a   :  { %v530_v23 = vadd.f32 %v514_v20, %v498_v18 }
 0x19b   :  { %v545_v27 = vmul.f32 0.0625, %v529_v21  ;;  %v446_v29 = vld [vmem:[#allocation2 + $0xf] sm:$0xff]  ;;  %v388_v32 = vpop.permute.xlu0 %387  ;;  %v445_v47 = vld [vmem:[#allocation2 + $0x7] sm:$0xff] }
 0x19c   :  { %v461_v31 = vld [vmem:[#allocation2 + $0x8] sm:$0xff]  ;;  %v546_v34 = vmul.f32 0.0625, %v530_v23  ;;  %v494_v40 = vadd.f32 %v478_v22, %v446_v29  ;;  %v402_v37 = vpop.permute.xlu1 %401  ;;  %v404_v42 = vpop.permute.xlu2 %403  ;;  %432 = vst.msk [vmem:[#allocation2 + $0x30] sm:$0xff] %vm156_vm2, %v388_v32  ;;  %v468_v14 = vld [vmem:[#allocation2 + $0x70] sm:$0xff] }
 0x19d   :  { %v477_v36 = vmul.f32 2.0, %v461_v31  ;;  %561 = vst.msk [vmem:[#allocation2 + $0x48] sm:$0xff] %vm156_vm2, %v545_v27  ;;  %v509_v30 = vld [vmem:[#allocation2 + $0x9] sm:$0xff]  ;;  %v484_v31 = vmul.f32 2.0, %v468_v14 }
 0x19e   :  { %562 = vst.msk [vmem:[#allocation2 + $0x50] sm:$0xff] %vm156_vm2, %v546_v34  ;;  %v526_v51 = vadd.f32 %v510_v45, %v494_v40  ;;  %v469_v40 = vld [vmem:[#allocation2 + $0x88] sm:$0xff] }
 0x19f   :  { %v493_v50 = vadd.f32 %v477_v36, %v445_v47  ;;  %439 = vst.msk [vmem:[#allocation2 + $0xa8] sm:$0xff] %vm156_vm2, %v402_v37 }
 0x1a0   :  { %v542_v25 = vmul.f32 0.0625, %v526_v51  ;;  %440 = vst.msk [vmem:[#allocation2 + $0xb0] sm:$0xff] %vm156_vm2, %v404_v42 }
 0x1a1   :  { %v525_v39 = vadd.f32 %v509_v30, %v493_v50 }
 0x1a2   :  { %558 = vst.msk [vmem:[#allocation2 + $0x10] sm:$0xff] %vm156_vm2, %v542_v25  ;;  %v516_v25 = vld [vmem:[#allocation2 + $0x71] sm:$0xff] }
 0x1a3   :  { %v541_v53 = vmul.f32 0.0625, %v525_v39  ;;  %v464_v54 = vld [vmem:[#allocation2 + $0x30] sm:$0xff]  ;;  %v394_v56 = vpop.permute.xlu0 %393 }
 0x1a4   :  { %v511_v55 = vld [vmem:[#allocation2 + $0x29] sm:$0xff]  ;;  %v480_v28 = vmul.f32 2.0, %v464_v54  ;;  %v408_v48 = vpop.permute.xlu1 %407  ;;  %v410_v57 = vpop.permute.xlu2 %409  ;;  %v512_v4 = vld [vmem:[#allocation2 + $0x31] sm:$0xff]  ;;  %435 = vst.msk [vmem:[#allocation2 + $0x68] sm:$0xff] %vm156_vm2, %v394_v56  ;;  %v485_v54 = vmul.f32 2.0, %v469_v40 }
 0x1a5   :  { %557 = vst.msk [vmem:[#allocation2 + $0x8] sm:$0xff] %vm156_vm2, %v541_v53  ;;  %v527_v35 = vadd.f32 %v511_v55, %v495_v52  ;;  %v593_v58 = vld [vmem:[#allocation2 + $0x48] sm:$0xff]  ;;  %v594_v59 = vld [vmem:[#allocation2 + $0x50] sm:$0xff] }
 0x1a6   :  { %v448_v33 = vld [vmem:[#allocation2 + $0x2f] sm:$0xff]  ;;  %442 = vst.msk [vmem:[#allocation2 + $0xd0] sm:$0xff] %vm156_vm2, %v408_v48  ;;  %v625_v41 = vmul.f32 2.0, %v593_v58  ;;  %v626_v60 = vmul.f32 2.0, %v594_v59  ;;  %v3153_v0 = vld [vmem:[#allocation2 + $0x47] sm:$0xff] }
 0x1a7   :  { %v471_v61 = vld [vmem:[#allocation2 + $0xa8] sm:$0xff]  ;;  %v496_v62 = vadd.f32 %v480_v28, %v448_v33  ;;  %v543_v63 = vmul.f32 0.0625, %v527_v35  ;;  %443 = vst.msk [vmem:[#allocation2 + $0xe8] sm:$0xff] %vm156_vm2, %v410_v57  ;;  %v472_v3 = vld [vmem:[#allocation2 + $0xb0] sm:$0xff] }
 0x1a8   :  { %v3155_v1 = vld [vmem:[#allocation2 + $0x4f] sm:$0xff]  ;;  %v487_v2 = vmul.f32 2.0, %v471_v61  ;;  %v641_v46 = vadd.f32 %v625_v41, %v3153_v0  ;;  %v455_v7 = vld [vmem:[#allocation2 + $0xa7] sm:$0xff]  ;;  %v488_v8 = vmul.f32 2.0, %v472_v3 }
 0x1a9   :  { %v3159_v38 = vld [vmem:[#allocation2 + $0x49] sm:$0xff]  ;;  %v642_v5 = vadd.f32 %v626_v60, %v3155_v1  ;;  %v528_v43 = vadd.f32 %v512_v4, %v496_v62  ;;  %559 = vst.msk [vmem:[#allocation2 + $0x28] sm:$0xff] %vm156_vm2, %v543_v63  ;;  %v3163_v49 = vld [vmem:[#allocation2 + $0x51] sm:$0xff] }
 0x1aa   :  { %v503_v9 = vadd.f32 %v487_v2, %v455_v7  ;;  %v456_v10 = vld [vmem:[#allocation2 + $0xaf] sm:$0xff]  ;;  %v657_v12 = vadd.f32 %v641_v46, %v3159_v38  ;;  %v673_v35 = vsub.f32 %v3159_v38, %v3153_v0  ;;  %v674_v61 = vsub.f32 %v3163_v49, %v3155_v1  ;;  %v453_v62 = vld [vmem:[#allocation2 + $0x87] sm:$0xff] }
 0x1ab   :  { %v590_v11 = vld [vmem:[#allocation2 + $0x10] sm:$0xff]  ;;  %v658_v13 = vadd.f32 %v642_v5, %v3163_v49  ;;  %v504_v15 = vadd.f32 %v488_v8, %v456_v10  ;;  %v544_v17 = vmul.f32 0.0625, %v528_v43  ;;  %v400_v23 = vpop.permute.xlu0 %399  ;;  %v467_v47 = vld [vmem:[#allocation2 + $0x68] sm:$0xff]  ;;  %v501_v2 = vadd.f32 %v485_v54, %v453_v62 }
 0x1ac   :  { %v519_v16 = vld [vmem:[#allocation2 + $0xa9] sm:$0xff]  ;;  %v622_v18 = vmul.f32 2.0, %v590_v11  ;;  %v520_v21 = vld [vmem:[#allocation2 + $0xb1] sm:$0xff]  ;;  %689 = vst.msk [vmem:[#allocation2 + $0x48] sm:$0xff] %vm156_vm2, %v657_v12  ;;  %v483_v51 = vmul.f32 2.0, %v467_v47 }
 0x1ad   :  { %v3167_v19 = vld [vmem:[#allocation2 + $0xf] sm:$0xff]  ;;  %v535_v22 = vadd.f32 %v519_v16, %v503_v9  ;;  %690 = vst.msk [vmem:[#allocation2 + $0x50] sm:$0xff] %vm156_vm2, %v658_v13  ;;  %v536_v27 = vadd.f32 %v520_v21, %v504_v15  ;;  %v3172_v32 = vld [vmem:[#allocation2 + $0x7] sm:$0xff] }
 0x1ae   :  { %v589_v20 = vld [vmem:[#allocation2 + $0x8] sm:$0xff]  ;;  %v638_v29 = vadd.f32 %v622_v18, %v3167_v19  ;;  %560 = vst.msk [vmem:[#allocation2 + $0x30] sm:$0xff] %vm156_vm2, %v544_v17  ;;  %v3175_v36 = vld [vmem:[#allocation2 + $0x11] sm:$0xff] }
 0x1af   :  { %v621_v24 = vmul.f32 2.0, %v589_v20  ;;  %v551_v34 = vmul.f32 0.0625, %v535_v22  ;;  %v552_v42 = vmul.f32 0.0625, %v536_v27  ;;  %v452_v45 = vld [vmem:[#allocation2 + $0x6f] sm:$0xff]  ;;  %438 = vst.msk [vmem:[#allocation2 + $0x90] sm:$0xff] %vm156_vm2, %v400_v23  ;;  %v451_v52 = vld [vmem:[#allocation2 + $0x67] sm:$0xff]  ;;  %v670_v11 = vsub.f32 %v3175_v36, %v3167_v19 }
 0x1b0   :  { %v654_v26 = vadd.f32 %v638_v29, %v3175_v36  ;;  %v3180_v50 = vld [vmem:[#allocation2 + $0x9] sm:$0xff]  ;;  %v500_v30 = vadd.f32 %v484_v31, %v452_v45  ;;  %v499_v55 = vadd.f32 %v483_v51, %v451_v52 }
 0x1b1   :  { %v637_v37 = vadd.f32 %v621_v24, %v3172_v32  ;;  %567 = vst.msk [vmem:[#allocation2 + $0xa8] sm:$0xff] %vm156_vm2, %v551_v34  ;;  %v591_v39 = vld [vmem:[#allocation2 + $0x28] sm:$0xff]  ;;  %v474_v49 = vld [vmem:[#allocation2 + $0xd0] sm:$0xff]  ;;  %v669_v12 = vsub.f32 %v3180_v50, %v3172_v32 }
 0x1b2   :  { %568 = vst.msk [vmem:[#allocation2 + $0xb0] sm:$0xff] %vm156_vm2, %v552_v42  ;;  %v623_v53 = vmul.f32 2.0, %v591_v39  ;;  %v532_v56 = vadd.f32 %v516_v25, %v500_v30  ;;  %v3186_v28 = vld [vmem:[#allocation2 + $0x27] sm:$0xff]  ;;  %v490_v27 = vmul.f32 2.0, %v474_v49  ;;  %v522_v39 = vld [vmem:[#allocation2 + $0xd1] sm:$0xff] }
 0x1b3   :  { %v653_v44 = vadd.f32 %v637_v37, %v3180_v50  ;;  %686 = vst.msk [vmem:[#allocation2 + $0x10] sm:$0xff] %vm156_vm2, %v654_v26  ;;  %v515_v48 = vld [vmem:[#allocation2 + $0x69] sm:$0xff]  ;;  %v406_v41 = vpop.permute.xlu0 %405 }
 0x1b4   :  { %v639_v57 = vadd.f32 %v623_v53, %v3186_v28  ;;  %v3192_v58 = vld [vmem:[#allocation2 + $0x48] sm:$0xff]  ;;  %v531_v59 = vadd.f32 %v515_v48, %v499_v55  ;;  %v548_v33 = vmul.f32 0.0625, %v532_v56  ;;  %v3195_v60 = vld [vmem:[#allocation2 + $0x50] sm:$0xff]  ;;  %441 = vst.msk [vmem:[#allocation2 + $0xc8] sm:$0xff] %vm156_vm2, %v406_v41 }
 0x1b5   :  { %685 = vst.msk [vmem:[#allocation2 + $0x8] sm:$0xff] %vm156_vm2, %v653_v44  ;;  %v592_v63 = vld [vmem:[#allocation2 + $0x30] sm:$0xff]  ;;  %v475_v47 = vld [vmem:[#allocation2 + $0xe8] sm:$0xff] }
 0x1b6   :  { %801 = vst.msk [vmem:[#allocation2 + $0x48] sm:$0xff] %vm156_vm2, %v673_v35  ;;  %v3199_v0 = vld [vmem:[#allocation2 + $0x29] sm:$0xff]  ;;  %v624_v3 = vmul.f32 2.0, %v592_v63  ;;  %v547_v4 = vmul.f32 0.0625, %v531_v59  ;;  %v3213_v14 = vld [vmem:[#allocation2 + $0x31] sm:$0xff]  ;;  %v491_v48 = vmul.f32 2.0, %v475_v47 }
 0x1b7   :  { %564 = vst.msk [vmem:[#allocation2 + $0x70] sm:$0xff] %vm156_vm2, %v548_v33  ;;  %v470_v46 = vld [vmem:[#allocation2 + $0x90] sm:$0xff]  ;;  %v655_v38 = vadd.f32 %v639_v57, %v3199_v0  ;;  %v671_v35 = vsub.f32 %v3199_v0, %v3186_v28 }
 0x1b8   :  { %v3204_v5 = vld [vmem:[#allocation2 + $0x2f] sm:$0xff]  ;;  %v486_v7 = vmul.f32 2.0, %v470_v46  ;;  %802 = vst.msk [vmem:[#allocation2 + $0x50] sm:$0xff] %vm156_vm2, %v674_v61  ;;  %v3230_v31 = vld [vmem:[#allocation2 + $0xa7] sm:$0xff] }
 0x1b9   :  { %v517_v8 = vld [vmem:[#allocation2 + $0x89] sm:$0xff]  ;;  %v640_v43 = vadd.f32 %v624_v3, %v3204_v5  ;;  %563 = vst.msk [vmem:[#allocation2 + $0x68] sm:$0xff] %vm156_vm2, %v547_v4  ;;  %v518_v21 = vld [vmem:[#allocation2 + $0x91] sm:$0xff]  ;;  %v672_v28 = vsub.f32 %v3213_v14, %v3204_v5 }
 0x1ba   :  { %v600_v1 = vld [vmem:[#allocation2 + $0xb0] sm:$0xff]  ;;  %v533_v10 = vadd.f32 %v517_v8, %v501_v2  ;;  %687 = vst.msk [vmem:[#allocation2 + $0x28] sm:$0xff] %vm156_vm2, %v655_v38  ;;  %v599_v17 = vld [vmem:[#allocation2 + $0xa8] sm:$0xff] }
 0x1bb   :  { %v454_v9 = vld [vmem:[#allocation2 + $0x8f] sm:$0xff]  ;;  %v632_v13 = vmul.f32 2.0, %v600_v1  ;;  %v656_v20 = vadd.f32 %v640_v43, %v3213_v14  ;;  %v631_v23 = vmul.f32 2.0, %v599_v17  ;;  %v412_v40 = vpop.permute.xlu0 %411  ;;  %v457_v25 = vld [vmem:[#allocation2 + $0xc7] sm:$0xff] }
 0x1bc   :  { %v502_v15 = vadd.f32 %v486_v7, %v454_v9  ;;  %v3215_v16 = vld [vmem:[#allocation2 + $0x10] sm:$0xff]  ;;  %v549_v22 = vmul.f32 0.0625, %v533_v10  ;;  %v3224_v19 = vld [vmem:[#allocation2 + $0x8] sm:$0xff]  ;;  %444 = vst.msk [vmem:[#allocation2 + $0xf0] sm:$0xff] %vm156_vm2, %v412_v40 }
 0x1bd   :  { %v3218_v18 = vld [vmem:[#allocation2 + $0xaf] sm:$0xff]  ;;  %735 = vrot.lane.b32.xlu2 %v3215_v16, %s2842_s15  ;;  %798 = vst.msk [vmem:[#allocation2 + $0x10] sm:$0xff] %vm156_vm2, %v670_v11  ;;  %733 = vrot.lane.b32.xlu1 %v3224_v19, %s2842_s15  ;;  %v647_v37 = vadd.f32 %v631_v23, %v3230_v31  ;;  %v459_v3 = vld [vmem:[#allocation2 + $0xe7] sm:$0xff] }
 0x1be   :  { %v648_v24 = vadd.f32 %v632_v13, %v3218_v18  ;;  %v534_v29 = vadd.f32 %v518_v21, %v502_v15  ;;  %797 = vst.msk [vmem:[#allocation2 + $0x8] sm:$0xff] %vm156_vm2, %v669_v12  ;;  %v3232_v32 = vld [vmem:[#allocation2 + $0xb1] sm:$0xff]  ;;  %v473_v36 = vld [vmem:[#allocation2 + $0xc8] sm:$0xff]  ;;  %v507_v5 = vadd.f32 %v491_v48, %v459_v3 }
 0x1bf   :  { %688 = vst.msk [vmem:[#allocation2 + $0x30] sm:$0xff] %vm156_vm2, %v656_v20  ;;  %v458_v34 = vld [vmem:[#allocation2 + $0xcf] sm:$0xff]  ;;  %v489_v50 = vmul.f32 2.0, %v473_v36  ;;  %v680_v10 = vsub.f32 %v3232_v32, %v3218_v18 }
 0x1c0   :  { %v3236_v42 = vld [vmem:[#allocation2 + $0xa9] sm:$0xff]  ;;  %v664_v45 = vadd.f32 %v648_v24, %v3232_v32  ;;  %v550_v26 = vmul.f32 0.0625, %v534_v29  ;;  %565 = vst.msk [vmem:[#allocation2 + $0x88] sm:$0xff] %vm156_vm2, %v549_v22  ;;  %v506_v51 = vadd.f32 %v490_v27, %v458_v34  ;;  %v3261_v2 = vld [vmem:[#allocation2 + $0x71] sm:$0xff] }
 0x1c1   :  { %v596_v30 = vld [vmem:[#allocation2 + $0x70] sm:$0xff]  ;;  %v663_v52 = vadd.f32 %v647_v37, %v3236_v42  ;;  %v595_v54 = vld [vmem:[#allocation2 + $0x68] sm:$0xff]  ;;  %v505_v55 = vadd.f32 %v489_v50, %v457_v25  ;;  %v679_v40 = vsub.f32 %v3236_v42, %v3230_v31 }
 0x1c2   :  { %v628_v44 = vmul.f32 2.0, %v596_v30  ;;  %696 = vst.msk [vmem:[#allocation2 + $0xb0] sm:$0xff] %vm156_vm2, %v664_v45  ;;  %v3243_v53 = vld [vmem:[#allocation2 + $0x6f] sm:$0xff]  ;;  %v538_v56 = vadd.f32 %v522_v39, %v506_v51  ;;  %v627_v57 = vmul.f32 2.0, %v595_v54  ;;  %v3251_v61 = vld [vmem:[#allocation2 + $0x67] sm:$0xff] }
 0x1c3   :  { %566 = vst.msk [vmem:[#allocation2 + $0x90] sm:$0xff] %vm156_vm2, %v550_v26  ;;  %v521_v59 = vld [vmem:[#allocation2 + $0xc9] sm:$0xff]  ;;  %v524_v18 = vld [vmem:[#allocation2 + $0xf1] sm:$0xff]  ;;  %v676_v31 = vsub.f32 %v3261_v2, %v3243_v53 }
 0x1c4   :  { %v3248_v33 = vld [vmem:[#allocation2 + $0x28] sm:$0xff]  ;;  %v644_v41 = vadd.f32 %v628_v44, %v3243_v53  ;;  %v537_v62 = vadd.f32 %v521_v59, %v505_v55  ;;  %v554_v63 = vmul.f32 0.0625, %v538_v56  ;;  %v643_v0 = vadd.f32 %v627_v57, %v3251_v61  ;;  %695 = vst.msk [vmem:[#allocation2 + $0xa8] sm:$0xff] %vm156_vm2, %v663_v52  ;;  %v476_v43 = vld [vmem:[#allocation2 + $0xf0] sm:$0xff] }
 0x1c5   :  { %737 = vrot.lane.b32.xlu0 %v3248_v33, %s2842_s15  ;;  %799 = vst.msk [vmem:[#allocation2 + $0x28] sm:$0xff] %vm156_vm2, %v671_v35  ;;  %741 = vrot.lane.b32.xlu2 %v3192_v58, %s2842_s15  ;;  %v3264_v4 = vld [vmem:[#allocation2 + $0x69] sm:$0xff]  ;;  %v492_v11 = vmul.f32 2.0, %v476_v43 }
 0x1c6   :  { %v553_v46 = vmul.f32 0.0625, %v537_v62  ;;  %570 = vst.msk [vmem:[#allocation2 + $0xd0] sm:$0xff] %vm156_vm2, %v554_v63  ;;  %v3267_v38 = vld [vmem:[#allocation2 + $0x30] sm:$0xff]  ;;  %v660_v7 = vadd.f32 %v644_v41, %v3261_v2  ;;  %v659_v8 = vadd.f32 %v643_v0, %v3264_v4  ;;  %v675_v55 = vsub.f32 %v3264_v4, %v3251_v61 }
 0x1c7   :  { %739 = vrot.lane.b32.xlu1 %v3267_v38, %s2842_s15  ;;  %800 = vst.msk [vmem:[#allocation2 + $0x30] sm:$0xff] %vm156_vm2, %v672_v28  ;;  %v597_v1 = vld [vmem:[#allocation2 + $0x88] sm:$0xff] }
 0x1c8   :  { %569 = vst.msk [vmem:[#allocation2 + $0xc8] sm:$0xff] %vm156_vm2, %v553_v46  ;;  %v523_v49 = vld [vmem:[#allocation2 + $0xe9] sm:$0xff]  ;;  %v629_v9 = vmul.f32 2.0, %v597_v1 }
 0x1c9   :  { %691 = vst.msk [vmem:[#allocation2 + $0x68] sm:$0xff] %vm156_vm2, %v659_v8  ;;  %v539_v12 = vadd.f32 %v523_v49, %v507_v5  ;;  %v581_v13 = vld [vmem:[#allocation2 + $0x87] sm:$0xff]  ;;  %v3278_v14 = vld [vmem:[#allocation2 + $0xb0] sm:$0xff] }
 0x1ca   :  { %v598_v15 = vld [vmem:[#allocation2 + $0x90] sm:$0xff]  ;;  %692 = vst.msk [vmem:[#allocation2 + $0x70] sm:$0xff] %vm156_vm2, %v660_v7  ;;  %v645_v21 = vadd.f32 %v629_v9, %v581_v13 }
 0x1cb   :  { %v613_v17 = vld [vmem:[#allocation2 + $0x89] sm:$0xff]  ;;  %v630_v22 = vmul.f32 2.0, %v598_v15  ;;  %v555_v24 = vmul.f32 0.0625, %v539_v12  ;;  %808 = vst.msk [vmem:[#allocation2 + $0xb0] sm:$0xff] %vm156_vm2, %v680_v10  ;;  %v614_v45 = vld [vmem:[#allocation2 + $0x91] sm:$0xff] }
 0x1cc   :  { %v460_v20 = vld [vmem:[#allocation2 + $0xef] sm:$0xff]  ;;  %v661_v29 = vadd.f32 %v645_v21, %v613_v17  ;;  %v677_v59 = vsub.f32 %v613_v17, %v581_v13 }
 0x1cd   :  { %v508_v23 = vadd.f32 %v492_v11, %v460_v20  ;;  %v582_v27 = vld [vmem:[#allocation2 + $0x8f] sm:$0xff]  ;;  %743 = vrot.lane.b32.xlu0 %v3195_v60, %s2842_s15  ;;  %571 = vst.msk [vmem:[#allocation2 + $0xe8] sm:$0xff] %vm156_vm2, %v555_v24 }
 0x1ce   :  { %v3284_v32 = vld [vmem:[#allocation2 + $0xa8] sm:$0xff]  ;;  %v646_v34 = vadd.f32 %v630_v22, %v582_v27  ;;  %v602_v37 = vld [vmem:[#allocation2 + $0xd0] sm:$0xff]  ;;  %693 = vst.msk [vmem:[#allocation2 + $0x88] sm:$0xff] %vm156_vm2, %v661_v29  ;;  %v678_v63 = vsub.f32 %v614_v45, %v582_v27 }
 0x1cf   :  { %v540_v36 = vadd.f32 %v524_v18, %v508_v23  ;;  %v634_v47 = vmul.f32 2.0, %v602_v37  ;;  %v586_v50 = vld [vmem:[#allocation2 + $0xcf] sm:$0xff]  ;;  %807 = vst.msk [vmem:[#allocation2 + $0xa8] sm:$0xff] %vm156_vm2, %v679_v40  ;;  %v585_v52 = vld [vmem:[#allocation2 + $0xc7] sm:$0xff] }
 0x1d0   :  { %v662_v26 = vadd.f32 %v646_v34, %v614_v45  ;;  %v601_v51 = vld [vmem:[#allocation2 + $0xc8] sm:$0xff]  ;;  %v618_v54 = vld [vmem:[#allocation2 + $0xd1] sm:$0xff] }
 0x1d1   :  { %v556_v30 = vmul.f32 0.0625, %v540_v36  ;;  %v633_v39 = vmul.f32 2.0, %v601_v51  ;;  %v3291_v25 = vld [vmem:[#allocation2 + $0x68] sm:$0xff]  ;;  %v650_v44 = vadd.f32 %v634_v47, %v586_v50  ;;  %v3296_v42 = vld [vmem:[#allocation2 + $0x70] sm:$0xff]  ;;  %v682_v5 = vsub.f32 %v618_v54, %v586_v50 }
 0x1d2   :  { %694 = vst.msk [vmem:[#allocation2 + $0x90] sm:$0xff] %vm156_vm2, %v662_v26  ;;  %745 = vrot.lane.b32.xlu1 %v3291_v25, %s2842_s15  ;;  %747 = vrot.lane.b32.xlu2 %v3296_v42, %s2842_s15  ;;  %v617_v48 = vld [vmem:[#allocation2 + $0xc9] sm:$0xff] }
 0x1d3   :  { %v649_v56 = vadd.f32 %v633_v39, %v585_v52  ;;  %572 = vst.msk [vmem:[#allocation2 + $0xf0] sm:$0xff] %vm156_vm2, %v556_v30  ;;  %v666_v35 = vadd.f32 %v650_v44, %v618_v54  ;;  %v681_v8 = vsub.f32 %v617_v48, %v585_v52  ;;  %v3343_v17 = vld [vmem:[#allocation2 + $0x28] sm:$0xff]  ;;  %v3353_v21 = vld [vmem:[#allocation2 + $0x10] sm:$0xff] }
 0x1d4   :  { %804 = vst.msk [vmem:[#allocation2 + $0x70] sm:$0xff] %vm156_vm2, %v676_v31  ;;  %v603_v57 = vld [vmem:[#allocation2 + $0xe8] sm:$0xff]  ;;  %v3355_v22 = vld [vmem:[#allocation2 + $0x50] sm:$0xff]  ;;  %v831_v51 = vmul.f32 2.0, %v3343_v17  ;;  %v830_v44 = vmul.f32 2.0, %v3353_v21 }
 0x1d5   :  { %v665_v53 = vadd.f32 %v649_v56, %v617_v48  ;;  %803 = vst.msk [vmem:[#allocation2 + $0x68] sm:$0xff] %vm156_vm2, %v675_v55  ;;  %v3307_v41 = vld [vmem:[#allocation2 + $0x88] sm:$0xff]  ;;  %v635_v61 = vmul.f32 2.0, %v603_v57  ;;  %v3361_v23 = vld [vmem:[#allocation2 + $0x30] sm:$0xff]  ;;  %v834_v52 = vmul.f32 2.0, %v3355_v22 }
 0x1d6   :  { %698 = vst.msk [vmem:[#allocation2 + $0xd0] sm:$0xff] %vm156_vm2, %v666_v35  ;;  %749 = vrot.lane.b32.xlu0 %v3307_v41, %s2842_s15  ;;  %v587_v62 = vld [vmem:[#allocation2 + $0xe7] sm:$0xff]  ;;  %v3379_v34 = vld [vmem:[#allocation2 + $0xb0] sm:$0xff]  ;;  %v832_v30 = vmul.f32 2.0, %v3361_v23 }
 0x1d7   :  { %697 = vst.msk [vmem:[#allocation2 + $0xc8] sm:$0xff] %vm156_vm2, %v665_v53  ;;  %v651_v28 = vadd.f32 %v635_v61, %v587_v62  ;;  %v3349_v20 = vld [vmem:[#allocation2 + $0x8] sm:$0xff]  ;;  %v840_v57 = vmul.f32 2.0, %v3379_v34 }
 0x1d8   :  { %805 = vst.msk [vmem:[#allocation2 + $0x88] sm:$0xff] %vm156_vm2, %v677_v59  ;;  %v3365_v24 = vld [vmem:[#allocation2 + $0x48] sm:$0xff]  ;;  %v829_v47 = vmul.f32 2.0, %v3349_v20 }
 0x1d9   :  { %v3314_v0 = vld [vmem:[#allocation2 + $0x90] sm:$0xff]  ;;  %v3389_v40 = vld [vmem:[#allocation2 + $0xa8] sm:$0xff]  ;;  %v833_v55 = vmul.f32 2.0, %v3365_v24 }
 0x1da   :  { %v604_v2 = vld [vmem:[#allocation2 + $0xf0] sm:$0xff]  ;;  %751 = vrot.lane.b32.xlu1 %v3314_v0, %s2842_s15  ;;  %806 = vst.msk [vmem:[#allocation2 + $0x90] sm:$0xff] %vm156_vm2, %v678_v63  ;;  %753 = vrot.lane.b32.xlu2 %v3284_v32, %s2842_s15  ;;  %v839_v63 = vmul.f32 2.0, %v3389_v40 }
 0x1db   :  { %v619_v3 = vld [vmem:[#allocation2 + $0xe9] sm:$0xff]  ;;  %v636_v4 = vmul.f32 2.0, %v604_v2  ;;  %v620_v49 = vld [vmem:[#allocation2 + $0xf1] sm:$0xff] }
 0x1dc   :  { %v667_v46 = vadd.f32 %v651_v28, %v619_v3  ;;  %v588_v7 = vld [vmem:[#allocation2 + $0xef] sm:$0xff]  ;;  %v683_v11 = vsub.f32 %v619_v3, %v587_v62 }
 0x1dd   :  { %v652_v1 = vadd.f32 %v636_v4, %v588_v7  ;;  %v3321_v43 = vld [vmem:[#allocation2 + $0xd0] sm:$0xff]  ;;  %v684_v13 = vsub.f32 %v620_v49, %v588_v7  ;;  %v3373_v18 = vld [vmem:[#allocation2 + $0x68] sm:$0xff] }
 0x1de   :  { %699 = vst.msk [vmem:[#allocation2 + $0xe8] sm:$0xff] %vm156_vm2, %v667_v46  ;;  %v3325_v9 = vld [vmem:[#allocation2 + $0xc8] sm:$0xff]  ;;  %755 = vrot.lane.b32.xlu0 %v3278_v14, %s2842_s15  ;;  %v3377_v29 = vld [vmem:[#allocation2 + $0x70] sm:$0xff]  ;;  %v835_v31 = vmul.f32 2.0, %v3373_v18 }
 0x1df   :  { %810 = vst.msk [vmem:[#allocation2 + $0xd0] sm:$0xff] %vm156_vm2, %v682_v5  ;;  %v668_v10 = vadd.f32 %v652_v1, %v620_v49  ;;  %v3367_v27 = vld [vmem:[#allocation2 + $0x88] sm:$0xff]  ;;  %v836_v53 = vmul.f32 2.0, %v3377_v29 }
 0x1e0   :  { %809 = vst.msk [vmem:[#allocation2 + $0xc8] sm:$0xff] %vm156_vm2, %v681_v8  ;;  %v837_v56 = vmul.f32 2.0, %v3367_v27 }
 0x1e1   :  { %700 = vst.msk [vmem:[#allocation2 + $0xf0] sm:$0xff] %vm156_vm2, %v668_v10  ;;  %v3385_v36 = vld [vmem:[#allocation2 + $0x90] sm:$0xff] }
 0x1e2   :  { %757 = vrot.lane.b32.xlu1 %v3325_v9, %s2842_s15  ;;  %759 = vrot.lane.b32.xlu2 %v3321_v43, %s2842_s15  ;;  %v838_v35 = vmul.f32 2.0, %v3385_v36 }
 0x1e5   :  { %v3335_v12 = vld [vmem:[#allocation2 + $0xe8] sm:$0xff] }
 0x1e6   :  { %811 = vst.msk [vmem:[#allocation2 + $0xe8] sm:$0xff] %vm156_vm2, %v683_v11  ;;  %761 = vrot.lane.b32.xlu0 %v3335_v12, %s2842_s15  ;;  %v3402_v26 = vld [vmem:[#allocation2 + $0xd0] sm:$0xff] }
 0x1e7   :  { %v3397_v45 = vld [vmem:[#allocation2 + $0xc8] sm:$0xff] }
 0x1e8   :  { %v3340_v15 = vld [vmem:[#allocation2 + $0xf0] sm:$0xff]  ;;  %v841_v59 = vmul.f32 2.0, %v3397_v45 }
 0x1e9   :  { %812 = vst.msk [vmem:[#allocation2 + $0xf0] sm:$0xff] %vm156_vm2, %v684_v13 }
 0x1ea   :  { %763 = vrot.lane.b32.xlu1 %v3340_v15, %s2842_s15  ;;  %945 = vrot.lane.b32.xlu2 %v3343_v17, %s2839_s0 }
 0x1ed   :  { %v3391_v37 = vld [vmem:[#allocation2 + $0xe8] sm:$0xff] }
 0x1ee   :  { %941 = vrot.lane.b32.xlu0 %v3349_v20, %s2839_s0  ;;  %v843_v3 = vmul.f32 2.0, %v3391_v37 }
 0x1f0   :  { %v3407_v50 = vld [vmem:[#allocation2 + $0xf0] sm:$0xff] }
 0x1f1   :  { %v844_v46 = vmul.f32 2.0, %v3407_v50 }
 0x1f2   :  { %943 = vrot.lane.b32.xlu1 %v3353_v21, %s2839_s0  ;;  %951 = vrot.lane.b32.xlu2 %v3355_v22, %s2839_s0 }
 0x1f6   :  { %947 = vrot.lane.b32.xlu0 %v3361_v23, %s2839_s0 }
 0x1fa   :  { %949 = vrot.lane.b32.xlu1 %v3365_v24, %s2839_s0  ;;  %957 = vrot.lane.b32.xlu2 %v3367_v27, %s2839_s0 }
 0x1fe   :  { %953 = vrot.lane.b32.xlu0 %v3373_v18, %s2839_s0 }
 0x202   :  { %955 = vrot.lane.b32.xlu1 %v3377_v29, %s2839_s0  ;;  %963 = vrot.lane.b32.xlu2 %v3379_v34, %s2839_s0 }
 0x206   :  { %959 = vrot.lane.b32.xlu0 %v3385_v36, %s2839_s0 }
 0x20a   :  { %961 = vrot.lane.b32.xlu1 %v3389_v40, %s2839_s0  ;;  %969 = vrot.lane.b32.xlu2 %v3391_v37, %s2839_s0 }
 0x20e   :  { %965 = vrot.lane.b32.xlu0 %v3397_v45, %s2839_s0 }
 0x212   :  { %967 = vrot.lane.b32.xlu1 %v3402_v26, %s2839_s0  ;;  %861 = vrot.lane.b32.xlu2 %v829_v47, %s2840_s13 }
 0x216   :  { %971 = vrot.lane.b32.xlu0 %v3407_v50, %s2839_s0 }
 0x217   :  { %v736_v39 = vpop.permute.xlu2 %735 }
 0x218   :  { %v3447_v8 = vsub.f32 %v3215_v16, %v736_v39 }
 0x21a   :  { %865 = vrot.lane.b32.xlu1 %v831_v51, %s2840_s13  ;;  %867 = vrot.lane.b32.xlu2 %v832_v30, %s2840_s13  ;;  %v5489_v47 = vand.u32 2147483647, %v3447_v8 }
 0x21e   :  { %863 = vrot.lane.b32.xlu0 %v830_v44, %s2840_s13 }
 0x21f   :  { %v742_v54 = vpop.permute.xlu2 %741 }
 0x222   :  { %871 = vrot.lane.b32.xlu1 %v834_v52, %s2840_s13  ;;  %873 = vrot.lane.b32.xlu2 %v835_v31, %s2840_s13 }
 0x226   :  { %869 = vrot.lane.b32.xlu0 %v833_v55, %s2840_s13 }
 0x22a   :  { %877 = vrot.lane.b32.xlu1 %v837_v56, %s2840_s13  ;;  %879 = vrot.lane.b32.xlu2 %v838_v35, %s2840_s13 }
 0x22c   :  { %v748_v48 = vpop.permute.xlu2 %747 }
 0x22e   :  { %875 = vrot.lane.b32.xlu0 %v836_v53, %s2840_s13 }
 0x22f   :  { %v734_v61 = vpop.permute.xlu1 %733 }
 0x230   :  { %v3440_v4 = vsub.f32 %v3224_v19, %v734_v61 }
 0x232   :  { %883 = vrot.lane.b32.xlu1 %v840_v57, %s2840_s13  ;;  %885 = vrot.lane.b32.xlu2 %v841_v59, %s2840_s13  ;;  %v5485_v49 = vand.u32 2147483647, %v3440_v4  ;;  %v3490_v57 = vsub.f32 %v3296_v42, %v748_v48 }
 0x234   :  { %v754_v62 = vpop.permute.xlu2 %753  ;;  %v1149_v16 = vmul.f32 0.41421357, %v5485_v49  ;;  %v5482_v48 = vand.u32 2147483647, %v3490_v57 }
 0x236   :  { %881 = vrot.lane.b32.xlu0 %v839_v63, %s2840_s13 }
 0x237   :  { %v738_v28 = vpop.permute.xlu0 %737 }
 0x238   :  { %v3436_v2 = vsub.f32 %v3248_v33, %v738_v28  ;;  %v842_v33 = vmul.f32 2.0, %v3402_v26 }
 0x239   :  { %v740_v7 = vpop.permute.xlu1 %739 }
 0x23a   :  { %889 = vrot.lane.b32.xlu1 %v843_v3, %s2840_s13  ;;  %891 = vrot.lane.b32.xlu2 %v844_v46, %s2840_s13  ;;  %v5483_v5 = vand.u32 2147483647, %v3436_v2  ;;  %v3458_v13 = vsub.f32 %v3267_v38, %v740_v7  ;;  %v1150_v38 = vmul.f32 0.41421357, %v5489_v47 }
 0x23c   :  { %v760_v1 = vpop.permute.xlu2 %759  ;;  %v1151_v11 = vmul.f32 0.41421357, %v5483_v5  ;;  %v5480_v44 = vand.u32 2147483647, %v3458_v13 }
 0x23e   :  { %887 = vrot.lane.b32.xlu0 %v842_v33, %s2840_s13  ;;  %v1152_v55 = vmul.f32 0.41421357, %v5480_v44  ;;  %v3513_v33 = vsub.f32 %v3284_v32, %v754_v62 }
 0x23f   :  { %v744_v19 = vpop.permute.xlu0 %743 }
 0x240   :  { %v3453_v10 = vsub.f32 %v3195_v60, %v744_v19  ;;  %v3467_v60 = vsub.f32 %v3192_v58, %v742_v54  ;;  %v1156_v19 = vmul.f32 0.41421357, %v5482_v48  ;;  %v5476_v62 = vand.u32 2147483647, %v3513_v33 }
 0x242   :  { %1185 = vrot.lane.b32.xlu1 %v1151_v11, %s2839_s0  ;;  %1181 = vrot.lane.b32.xlu2 %v1149_v16, %s2839_s0  ;;  %v5478_v30 = vand.u32 2147483647, %v3453_v10  ;;  %v5486_v54 = vand.u32 2147483647, %v3467_v60 }
 0x244   :  { %v746_v51 = vpop.permute.xlu1 %745  ;;  %v3469_v39 = vpop.permute.xlu2 %945  ;;  %v1154_v52 = vmul.f32 0.41421357, %v5478_v30  ;;  %v1153_v59 = vmul.f32 0.41421357, %v5486_v54 }
 0x245   :  { %v3478_v31 = vsub.f32 %v3291_v25, %v746_v51 }
 0x246   :  { %1183 = vrot.lane.b32.xlu0 %v1150_v38, %s2839_s0 }
 0x247   :  { %v5473_v61 = vand.u32 2147483647, %v3478_v31 }
 0x248   :  { %v750_v58 = vpop.permute.xlu0 %749 }
 0x249   :  { %v3484_v56 = vsub.f32 %v3307_v41, %v750_v58  ;;  %v1155_v28 = vmul.f32 0.41421357, %v5473_v61  ;;  %v3536_v58 = vsub.f32 %v3321_v43, %v760_v1 }
 0x24a   :  { %1191 = vrot.lane.b32.xlu1 %v1154_v52, %s2839_s0  ;;  %1187 = vrot.lane.b32.xlu2 %v1152_v55, %s2839_s0 }
 0x24b   :  { %v5467_v53 = vand.u32 2147483647, %v3484_v56  ;;  %v5466_v1 = vand.u32 2147483647, %v3536_v58 }
 0x24c   :  { %v752_v35 = vpop.permute.xlu1 %751  ;;  %v3492_v25 = vpop.permute.xlu2 %951 }
 0x24d   :  { %v1157_v41 = vmul.f32 0.41421357, %v5467_v53  ;;  %v3501_v63 = vsub.f32 %v3314_v0, %v752_v35  ;;  %v1159_v35 = vmul.f32 0.41421357, %v5476_v62 }
 0x24e   :  { %1189 = vrot.lane.b32.xlu0 %v1153_v59, %s2839_s0 }
 0x24f   :  { %v5465_v11 = vand.u32 2147483647, %v3501_v63 }
 0x250   :  { %v756_v42 = vpop.permute.xlu0 %755 }
 0x251   :  { %v3507_v3 = vsub.f32 %v3278_v14, %v756_v42  ;;  %v1158_v51 = vmul.f32 0.41421357, %v5465_v11 }
 0x252   :  { %1197 = vrot.lane.b32.xlu1 %v1157_v41, %s2839_s0  ;;  %1193 = vrot.lane.b32.xlu2 %v1155_v28, %s2839_s0 }
 0x253   :  { %v5464_v7 = vand.u32 2147483647, %v3507_v3 }
 0x254   :  { %v758_v46 = vpop.permute.xlu1 %757  ;;  %v3515_v0 = vpop.permute.xlu2 %957 }
 0x255   :  { %v1160_v14 = vmul.f32 0.41421357, %v5464_v7  ;;  %v3524_v16 = vsub.f32 %v3325_v9, %v758_v46 }
 0x256   :  { %1195 = vrot.lane.b32.xlu0 %v1156_v19, %s2839_s0  ;;  %v1162_v19 = vmul.f32 0.41421357, %v5466_v1 }
 0x257   :  { %v5462_v59 = vand.u32 2147483647, %v3524_v16 }
 0x258   :  { %v762_v32 = vpop.permute.xlu0 %761 }
 0x259   :  { %v3530_v38 = vsub.f32 %v3335_v12, %v762_v32  ;;  %v1161_v28 = vmul.f32 0.41421357, %v5462_v59 }
 0x25a   :  { %1203 = vrot.lane.b32.xlu1 %v1160_v14, %s2839_s0  ;;  %1199 = vrot.lane.b32.xlu2 %v1158_v51, %s2839_s0 }
 0x25b   :  { %v5461_v55 = vand.u32 2147483647, %v3530_v38 }
 0x25c   :  { %v764_v52 = vpop.permute.xlu1 %763  ;;  %v3538_v9 = vpop.permute.xlu2 %963 }
 0x25d   :  { %v1163_v12 = vmul.f32 0.41421357, %v5461_v55  ;;  %v3547_v41 = vsub.f32 %v3340_v15, %v764_v52 }
 0x25e   :  { %1201 = vrot.lane.b32.xlu0 %v1159_v35, %s2839_s0 }
 0x25f   :  { %v5463_v14 = vand.u32 2147483647, %v3547_v41 }
 0x260   :  { %v942_v43 = vpop.permute.xlu0 %941 }
 0x261   :  { %v1164_v15 = vmul.f32 0.41421357, %v5463_v14 }
 0x262   :  { %1209 = vrot.lane.b32.xlu1 %v1163_v12, %s2839_s0  ;;  %1205 = vrot.lane.b32.xlu2 %v1161_v28, %s2839_s0 }
 0x264   :  { %v944_v42 = vpop.permute.xlu1 %943  ;;  %v3554_v46 = vpop.permute.xlu2 %969 }
 0x266   :  { %1207 = vrot.lane.b32.xlu0 %v1162_v19, %s2839_s0 }
 0x268   :  { %v948_v51 = vpop.permute.xlu0 %947 }
 0x26a   :  { %1211 = vrot.lane.b32.xlu2 %v1164_v15, %s2839_s0 }
 0x26c   :  { %v950_v32 = vpop.permute.xlu1 %949  ;;  %v862_v52 = vpop.permute.xlu2 %861 }
 0x26d   :  { %v909_v35 = vadd.f32 %v862_v52, %v3349_v20 }
 0x26f   :  { %v3564_v12 = vadd.f32 %v942_v43, %v909_v35 }
 0x270   :  { %v954_v28 = vpop.permute.xlu0 %953 }
 0x272   :  { %1453 = vrot.lane.b32.xlu2 %v3564_v12, %s2842_s15 }
 0x274   :  { %v956_v6 = vpop.permute.xlu1 %955  ;;  %v868_v55 = vpop.permute.xlu2 %867 }
 0x275   :  { %v912_v19 = vadd.f32 %v868_v55, %v3361_v23 }
 0x277   :  { %v3569_v59 = vadd.f32 %v948_v51, %v912_v19 }
 0x278   :  { %v960_v14 = vpop.permute.xlu0 %959 }
 0x27a   :  { %1459 = vrot.lane.b32.xlu2 %v3569_v59, %s2842_s15 }
 0x27c   :  { %v962_v15 = vpop.permute.xlu1 %961  ;;  %v874_v7 = vpop.permute.xlu2 %873 }
 0x27d   :  { %v915_v20 = vadd.f32 %v874_v7, %v3373_v18 }
 0x27f   :  { %v3574_v43 = vadd.f32 %v954_v28, %v915_v20 }
 0x280   :  { %v966_v52 = vpop.permute.xlu0 %965 }
 0x281   :  { %5678 = vst [vmem:[#allocation9_spill] sm:$0xff] %v3574_v43 }
 0x282   :  { %1465 = vrot.lane.b32.xlu2 %v3574_v43, %s2842_s15 }
 0x284   :  { %v968_v35 = vpop.permute.xlu1 %967  ;;  %v880_v11 = vpop.permute.xlu2 %879 }
 0x285   :  { %v918_v23 = vadd.f32 %v880_v11, %v3385_v36 }
 0x287   :  { %v3579_v55 = vadd.f32 %v960_v14, %v918_v23 }
 0x288   :  { %v972_v51 = vpop.permute.xlu0 %971 }
 0x289   :  { %5679 = vst [vmem:[#allocation10_spill] sm:$0xff] %v3579_v55 }
 0x28a   :  { %1471 = vrot.lane.b32.xlu2 %v3579_v55, %s2842_s15 }
 0x28c   :  { %v866_v19 = vpop.permute.xlu1 %865  ;;  %v886_v1 = vpop.permute.xlu2 %885 }
 0x28d   :  { %v911_v18 = vadd.f32 %v866_v19, %v3343_v17  ;;  %v921_v7 = vadd.f32 %v886_v1, %v3397_v45 }
 0x28f   :  { %v3586_v28 = vadd.f32 %v3469_v39, %v911_v18  ;;  %v3588_v20 = vadd.f32 %v966_v52, %v921_v7 }
 0x290   :  { %v864_v53 = vpop.permute.xlu0 %863 }
 0x291   :  { %5680 = vst [vmem:[#allocation11_spill] sm:$0xff] %v3588_v20  ;;  %1457 = vrot.lane.b32.xlu1 %v3586_v28, %s2842_s15  ;;  %v910_v36 = vadd.f32 %v864_v53, %v3353_v21 }
 0x292   :  { %1477 = vrot.lane.b32.xlu2 %v3588_v20, %s2842_s15 }
 0x293   :  { %v3595_v11 = vadd.f32 %v944_v42, %v910_v36 }
 0x294   :  { %v872_v14 = vpop.permute.xlu1 %871  ;;  %v892_v17 = vpop.permute.xlu2 %891 }
 0x295   :  { %v914_v45 = vadd.f32 %v872_v14, %v3355_v22  ;;  %v924_v39 = vadd.f32 %v892_v17, %v3407_v50  ;;  %1455 = vrot.lane.b32.xlu0 %v3595_v11, %s2842_s15 }
 0x297   :  { %v3602_v1 = vadd.f32 %v3492_v25, %v914_v45  ;;  %v3604_v52 = vadd.f32 %v972_v51, %v924_v39  ;;  %v1022_v51 = vmul.f32 %v3595_v11, %v3595_v11 }
 0x298   :  { %v870_v21 = vpop.permute.xlu0 %869 }
 0x299   :  { %5681 = vst [vmem:[#allocation12_spill] sm:$0xff] %v3602_v1  ;;  %1463 = vrot.lane.b32.xlu1 %v3602_v1, %s2842_s15  ;;  %v913_v53 = vadd.f32 %v870_v21, %v3365_v24 }
 0x29a   :  { %5682 = vst [vmem:[#allocation13_spill] sm:$0xff] %v3604_v52  ;;  %1483 = vrot.lane.b32.xlu2 %v3604_v52, %s2842_s15 }
 0x29b   :  { %v3611_v22 = vadd.f32 %v950_v32, %v913_v53 }
 0x29c   :  { %v878_v50 = vpop.permute.xlu1 %877  ;;  %v3613_v42 = vpop.permute.xlu2 %1181 }
 0x29d   :  { %v917_v23 = vadd.f32 %v878_v50, %v3367_v27  ;;  %1461 = vrot.lane.b32.xlu0 %v3611_v22, %s2842_s15  ;;  %v1025_v36 = vmul.f32 %v3611_v22, %v3611_v22  ;;  %v1024_v50 = vmul.f32 %v3569_v59, %v3569_v59 }
 0x29f   :  { %v3619_v25 = vadd.f32 %v3515_v0, %v917_v23 }
 0x2a0   :  { %v876_v24 = vpop.permute.xlu0 %875 }
 0x2a1   :  { %5683 = vst [vmem:[#allocation14_spill] sm:$0xff] %v3619_v25  ;;  %1469 = vrot.lane.b32.xlu1 %v3619_v25, %s2842_s15  ;;  %v916_v32 = vadd.f32 %v876_v24, %v3377_v29  ;;  %v5471_v24 = vand.u32 2147483647, %v3586_v28 }
 0x2a2   :  { %1055 = vrot.lane.b32.xlu2 %v1022_v51, %s2842_s15  ;;  %v1026_v51 = vmul.f32 %v3602_v1, %v3602_v1 }
 0x2a3   :  { %v3627_v19 = vadd.f32 %v956_v6, %v916_v32 }
 0x2a4   :  { %v884_v27 = vpop.permute.xlu1 %883  ;;  %v3629_v18 = vpop.permute.xlu2 %1187 }
 0x2a5   :  { %v920_v7 = vadd.f32 %v884_v27, %v3379_v34  ;;  %1467 = vrot.lane.b32.xlu0 %v3627_v19, %s2842_s15  ;;  %v1028_v39 = vmul.f32 %v3627_v19, %v3627_v19  ;;  %v1027_v27 = vmul.f32 %v3574_v43, %v3574_v43 }
 0x2a7   :  { %v3635_v0 = vadd.f32 %v3538_v9, %v920_v7  ;;  %v1247_v7 = vmul.f32 0.41421357, %v5471_v24 }
 0x2a8   :  { %v882_v14 = vpop.permute.xlu0 %881 }
 0x2a9   :  { %5684 = vst [vmem:[#allocation15_spill] sm:$0xff] %v3635_v0  ;;  %1475 = vrot.lane.b32.xlu1 %v3635_v0, %s2842_s15  ;;  %v919_v6 = vadd.f32 %v882_v14, %v3389_v40  ;;  %v5470_v14 = vand.u32 2147483647, %v3602_v1 }
 0x2aa   :  { %1061 = vrot.lane.b32.xlu2 %v1025_v36, %s2842_s15  ;;  %v1029_v36 = vmul.f32 %v3619_v25, %v3619_v25 }
 0x2ab   :  { %v3643_v29 = vadd.f32 %v962_v15, %v919_v6 }
 0x2ac   :  { %v890_v34 = vpop.permute.xlu1 %889  ;;  %v3645_v17 = vpop.permute.xlu2 %1193 }
 0x2ad   :  { %5685 = vst [vmem:[#allocation16_spill] sm:$0xff] %v3645_v17  ;;  %v923_v45 = vadd.f32 %v890_v34, %v3391_v37  ;;  %1473 = vrot.lane.b32.xlu0 %v3643_v29, %s2842_s15  ;;  %v1031_v53 = vmul.f32 %v3643_v29, %v3643_v29  ;;  %v1030_v34 = vmul.f32 %v3579_v55, %v3579_v55 }
 0x2af   :  { %v3651_v9 = vadd.f32 %v3554_v46, %v923_v45  ;;  %v1021_v46 = vmul.f32 %v3564_v12, %v3564_v12  ;;  %v1250_v45 = vmul.f32 0.41421357, %v5470_v14 }
 0x2b0   :  { %v888_v21 = vpop.permute.xlu0 %887 }
 0x2b1   :  { %5686 = vst [vmem:[#allocation17_spill] sm:$0xff] %v3651_v9  ;;  %1481 = vrot.lane.b32.xlu1 %v3651_v9, %s2842_s15  ;;  %v922_v40 = vadd.f32 %v888_v21, %v3402_v26  ;;  %v1023_v26 = vmul.f32 %v3586_v28, %v3586_v28  ;;  %v1032_v21 = vmul.f32 %v3635_v0, %v3635_v0 }
 0x2b2   :  { %1067 = vrot.lane.b32.xlu2 %v1028_v39, %s2842_s15 }
 0x2b3   :  { %v3659_v15 = vadd.f32 %v968_v35, %v922_v40  ;;  %v5468_v40 = vand.u32 2147483647, %v3619_v25 }
 0x2b4   :  { %v3661_v37 = vpop.permute.xlu2 %1199  ;;  %v3705_v39 = vpop.permute.xlu1 %1185 }
 0x2b5   :  { %5687 = vst [vmem:[#allocation18_spill] sm:$0xff] %v3659_v15  ;;  %1479 = vrot.lane.b32.xlu0 %v3659_v15, %s2842_s15  ;;  %v1034_v23 = vmul.f32 %v3659_v15, %v3659_v15 }
 0x2b6   :  { %5688 = vst [vmem:[#allocation19_spill] sm:$0xff] %v3661_v37 }
 0x2b9   :  { %1053 = vrot.lane.b32.xlu1 %v1021_v46, %s2842_s15 }
 0x2ba   :  { %1073 = vrot.lane.b32.xlu2 %v1031_v53, %s2842_s15  ;;  %v1033_v53 = vmul.f32 %v3588_v20, %v3588_v20 }
 0x2bc   :  { %v3673_v35 = vpop.permute.xlu2 %1205 }
 0x2bd   :  { %5689 = vst [vmem:[#allocation20_spill] sm:$0xff] %v3673_v35  ;;  %1057 = vrot.lane.b32.xlu0 %v1023_v26, %s2842_s15  ;;  %v3716_v26 = vpop.permute.xlu0 %1183 }
 0x2c1   :  { %1059 = vrot.lane.b32.xlu1 %v1024_v50, %s2842_s15  ;;  %v1253_v50 = vmul.f32 0.41421357, %v5468_v40 }
 0x2c2   :  { %1079 = vrot.lane.b32.xlu2 %v1034_v23, %s2842_s15  ;;  %v1035_v23 = vmul.f32 %v3651_v9, %v3651_v9 }
 0x2c4   :  { %v3685_v32 = vpop.permute.xlu2 %1211 }
 0x2c5   :  { %5690 = vst [vmem:[#allocation21_spill] sm:$0xff] %v3685_v32  ;;  %1063 = vrot.lane.b32.xlu0 %v1026_v51, %s2842_s15  ;;  %v3724_v51 = vpop.permute.xlu1 %1191  ;;  %v5493_v32 = vand.u32 2147483647, %v3604_v52 }
 0x2c6   :  { %5691 = vst [vmem:[#allocation22_spill] sm:$0xff] %v3724_v51 }
 0x2c9   :  { %1065 = vrot.lane.b32.xlu1 %v1027_v27, %s2842_s15  ;;  %v5469_v27 = vand.u32 2147483647, %v3635_v0 }
 0x2ca   :  { %1281 = vrot.lane.b32.xlu2 %v1247_v7, %s2842_s15 }
 0x2cc   :  { %v3697_v6 = vpop.permute.xlu2 %1453 }
 0x2cd   :  { %1069 = vrot.lane.b32.xlu0 %v1029_v36, %s2842_s15  ;;  %v1036_v36 = vmul.f32 %v3604_v52, %v3604_v52  ;;  %v3748_v14 = vpop.permute.xlu1 %1197 }
 0x2ce   :  { %5692 = vst [vmem:[#allocation23_spill] sm:$0xff] %v3748_v14 }
 0x2d1   :  { %1071 = vrot.lane.b32.xlu1 %v1030_v34, %s2842_s15  ;;  %v5472_v34 = vand.u32 2147483647, %v3564_v12 }
 0x2d2   :  { %1287 = vrot.lane.b32.xlu2 %v1250_v45, %s2842_s15  ;;  %v1256_v45 = vmul.f32 0.41421357, %v5469_v27 }
 0x2d4   :  { %v3711_v46 = vpop.permute.xlu2 %1459 }
 0x2d5   :  { %1075 = vrot.lane.b32.xlu0 %v1032_v21, %s2842_s15  ;;  %v3736_v21 = vpop.permute.xlu0 %1189  ;;  %v3766_v62 = vpop.permute.xlu1 %1203 }
 0x2d6   :  { %5693 = vst [vmem:[#allocation24_spill] sm:$0xff] %v3766_v62 }
 0x2d9   :  { %1077 = vrot.lane.b32.xlu1 %v1033_v53, %s2842_s15  ;;  %v5474_v53 = vand.u32 2147483647, %v3595_v11 }
 0x2da   :  { %1293 = vrot.lane.b32.xlu2 %v1253_v50, %s2842_s15  ;;  %v1245_v50 = vmul.f32 0.41421357, %v5472_v34 }
 0x2db   :  { %v1246_v27 = vmul.f32 0.41421357, %v5474_v53 }
 0x2dc   :  { %v3727_v7 = vpop.permute.xlu2 %1465 }
 0x2dd   :  { %1081 = vrot.lane.b32.xlu0 %v1035_v23, %s2842_s15  ;;  %v5475_v23 = vand.u32 2147483647, %v3651_v9  ;;  %v3782_v44 = vpop.permute.xlu1 %1209 }
 0x2de   :  { %5694 = vst [vmem:[#allocation25_spill] sm:$0xff] %v3782_v44 }
 0x2df   :  { %v1259_v24 = vmul.f32 0.41421357, %v5475_v23  ;;  %v5481_v23 = vand.u32 2147483647, %v3574_v43 }
 0x2e1   :  { %1083 = vrot.lane.b32.xlu1 %v1036_v36, %s2842_s15  ;;  %v5477_v36 = vand.u32 2147483647, %v3569_v59 }
 0x2e2   :  { %1299 = vrot.lane.b32.xlu2 %v1256_v45, %s2842_s15  ;;  %v5479_v45 = vand.u32 2147483647, %v3611_v22 }
 0x2e3   :  { %v1248_v34 = vmul.f32 0.41421357, %v5477_v36 }
 0x2e4   :  { %v3743_v40 = vpop.permute.xlu2 %1471  ;;  %v1249_v53 = vmul.f32 0.41421357, %v5479_v45  ;;  %v5487_v45 = vand.u32 2147483647, %v3579_v55 }
 0x2e5   :  { %1277 = vrot.lane.b32.xlu0 %v1245_v50, %s2842_s15  ;;  %v3758_v50 = vpop.permute.xlu0 %1195 }
 0x2e9   :  { %1279 = vrot.lane.b32.xlu1 %v1246_v27, %s2842_s15  ;;  %v1251_v27 = vmul.f32 0.41421357, %v5481_v23  ;;  %v1254_v23 = vmul.f32 0.41421357, %v5487_v45 }
 0x2ea   :  { %1305 = vrot.lane.b32.xlu2 %v1259_v24, %s2842_s15  ;;  %v5484_v24 = vand.u32 2147483647, %v3627_v19 }
 0x2ec   :  { %v3760_v61 = vpop.permute.xlu2 %1477 }
 0x2ed   :  { %1283 = vrot.lane.b32.xlu0 %v1248_v34, %s2842_s15  ;;  %v3772_v36 = vpop.permute.xlu0 %1201  ;;  %v1252_v34 = vmul.f32 0.41421357, %v5484_v24 }
 0x2f1   :  { %1285 = vrot.lane.b32.xlu1 %v1249_v53, %s2842_s15  ;;  %v5488_v53 = vand.u32 2147483647, %v3643_v29 }
 0x2f3   :  { %v1255_v48 = vmul.f32 0.41421357, %v5488_v53  ;;  %v5494_v53 = vmov 0  }
 0x2f4   :  { %v3774_v30 = vpop.permute.xlu2 %1483 }
 0x2f5   :  { %1289 = vrot.lane.b32.xlu0 %v1251_v27, %s2842_s15  ;;  %v5491_v27 = vand.u32 2147483647, %v3588_v20  ;;  %v3790_v5 = vpop.permute.xlu0 %1207 }
 0x2f6   :  { %5695 = vst [vmem:[#allocation26_spill] sm:$0xff] %v3790_v5 }
 0x2f7   :  { %v1257_v54 = vmul.f32 0.41421357, %v5491_v27 }
 0x2f9   :  { %1291 = vrot.lane.b32.xlu1 %v1252_v34, %s2842_s15  ;;  %v5492_v34 = vand.u32 2147483647, %v3659_v15 }
 0x2fc   :  { %v3792_v24 = vpop.permute.xlu2 %1055 }
 0x2fd   :  { %1295 = vrot.lane.b32.xlu0 %v1254_v23, %s2842_s15  ;;  %v1258_v23 = vmul.f32 0.41421357, %v5492_v34  ;;  %v1501_v34 = vmul.f32 %v3697_v6, %v3440_v4 }
 0x2ff   :  { %vm1517_vm7 = vcmp.ge.f32.partialorder %v1501_v34, 0.0 }
 0x301   :  { %1297 = vrot.lane.b32.xlu1 %v1255_v48, %s2842_s15 }
 0x303   :  { %v1458_v49 = vpop.permute.xlu1 %1457 }
 0x304   :  { %v1503_v45 = vmul.f32 %v1458_v49, %v3436_v2  ;;  %v3807_v27 = vpop.permute.xlu2 %1061 }
 0x305   :  { %1301 = vrot.lane.b32.xlu0 %v1257_v54, %s2842_s15  ;;  %v1260_v54 = vmul.f32 0.41421357, %v5493_v32 }
 0x306   :  { %vm1519_vm4 = vcmp.ge.f32.partialorder %v1503_v45, 0.0 }
 0x307   :  { %v1535_v47 = vsel %vm1519_vm4, 1, %v5494_v53  ;;  %v1456_v48 = vpop.permute.xlu0 %1455 }
 0x308   :  { %1553 = vrot.lane.b32.xlu2 %v1535_v47, %s2839_s0  ;;  %v1502_v9 = vmul.f32 %v1456_v48, %v3447_v8 }
 0x309   :  { %1303 = vrot.lane.b32.xlu1 %v1258_v23, %s2842_s15 }
 0x30a   :  { %vm1518_vm5 = vcmp.ge.f32.partialorder %v1502_v9, 0.0 }
 0x30b   :  { %v1464_v49 = vpop.permute.xlu1 %1463  ;;  %v1534_v48 = vsel %vm1518_vm5, 1, %v5494_v53 }
 0x30c   :  { %v1506_v45 = vmul.f32 %v1464_v49, %v3453_v10  ;;  %v3820_v9 = vpop.permute.xlu2 %1067 }
 0x30d   :  { %1307 = vrot.lane.b32.xlu0 %v1260_v54, %s2842_s15  ;;  %v1504_v54 = vmul.f32 %v3711_v46, %v3458_v13 }
 0x30e   :  { %vm1522_vm6 = vcmp.ge.f32.partialorder %v1506_v45, 0.0  ;;  %v1533_v45 = vsel %vm1517_vm7, 1, %v5494_v53 }
 0x30f   :  { %v1538_v47 = vsel %vm1522_vm6, 1, %v5494_v53  ;;  %v1462_v23 = vpop.permute.xlu0 %1461  ;;  %vm1520_vm10 = vcmp.ge.f32.partialorder %v1504_v54, 0.0 }
 0x310   :  { %1559 = vrot.lane.b32.xlu2 %v1538_v47, %s2839_s0  ;;  %v1505_v44 = vmul.f32 %v1462_v23, %v3467_v60  ;;  %v1536_v46 = vsel %vm1520_vm10, 1, %v5494_v53 }
 0x311   :  { %1551 = vrot.lane.b32.xlu1 %v1534_v48, %s2839_s0 }
 0x312   :  { %vm1521_vm8 = vcmp.ge.f32.partialorder %v1505_v44, 0.0 }
 0x313   :  { %v1470_v49 = vpop.permute.xlu1 %1469  ;;  %v1537_v23 = vsel %vm1521_vm8, 1, %v5494_v53 }
 0x314   :  { %v1509_v6 = vmul.f32 %v1470_v49, %v3484_v56 }
 0x315   :  { %1549 = vrot.lane.b32.xlu0 %v1533_v45, %s2839_s0  ;;  %v3836_v45 = vpop.permute.xlu2 %1073 }
 0x316   :  { %vm1525_vm9 = vcmp.ge.f32.partialorder %v1509_v6, 0.0  ;;  %v1507_v6 = vmul.f32 %v3727_v7, %v3478_v31 }
 0x317   :  { %v1541_v47 = vsel %vm1525_vm9, 1, %v5494_v53  ;;  %v1468_v48 = vpop.permute.xlu0 %1467 }
 0x318   :  { %1565 = vrot.lane.b32.xlu2 %v1541_v47, %s2839_s0  ;;  %v1508_v34 = vmul.f32 %v1468_v48, %v3490_v57  ;;  %vm1523_vm13 = vcmp.ge.f32.partialorder %v1507_v6, 0.0 }
 0x319   :  { %1557 = vrot.lane.b32.xlu1 %v1537_v23, %s2839_s0 }
 0x31a   :  { %vm1524_vm11 = vcmp.ge.f32.partialorder %v1508_v34, 0.0 }
 0x31b   :  { %v1476_v49 = vpop.permute.xlu1 %1475  ;;  %v1540_v48 = vsel %vm1524_vm11, 1, %v5494_v53 }
 0x31c   :  { %v1512_v44 = vmul.f32 %v1476_v49, %v3507_v3  ;;  %v1539_v49 = vsel %vm1523_vm13, 1, %v5494_v53 }
 0x31d   :  { %1555 = vrot.lane.b32.xlu0 %v1536_v46, %s2839_s0 }
 0x31e   :  { %vm1528_vm12 = vcmp.ge.f32.partialorder %v1512_v44, 0.0  ;;  %v1510_v44 = vmul.f32 %v3743_v40, %v3501_v63  ;;  %v1006_v40 = vmul.f32 %v3447_v8, %v3447_v8 }
 0x31f   :  { %v1544_v47 = vsel %vm1528_vm12, 1, %v5494_v53  ;;  %v1474_v23 = vpop.permute.xlu0 %1473 }
 0x320   :  { %1571 = vrot.lane.b32.xlu2 %v1544_v47, %s2839_s0  ;;  %v1511_v54 = vmul.f32 %v1474_v23, %v3513_v33  ;;  %v1080_v47 = vpop.permute.xlu2 %1079  ;;  %vm1526_vm0 = vcmp.ge.f32.partialorder %v1510_v44, 0.0 }
 0x321   :  { %1563 = vrot.lane.b32.xlu1 %v1540_v48, %s2839_s0 }
 0x322   :  { %vm1527_vm14 = vcmp.ge.f32.partialorder %v1511_v54, 0.0  ;;  %v1542_v54 = vsel %vm1526_vm0, 1, %v5494_v53 }
 0x323   :  { %v1482_v34 = vpop.permute.xlu1 %1481  ;;  %v1543_v23 = vsel %vm1527_vm14, 1, %v5494_v53 }
 0x324   :  { %v1515_v7 = vmul.f32 %v1482_v34, %v3530_v38  ;;  %v1513_v34 = vmul.f32 %v3760_v61, %v3524_v16  ;;  %v1009_v61 = vmul.f32 %v3467_v60, %v3467_v60 }
 0x325   :  { %1561 = vrot.lane.b32.xlu0 %v1539_v49, %s2839_s0 }
 0x326   :  { %vm1531_vm15 = vcmp.ge.f32.partialorder %v1515_v7, 0.0  ;;  %v3860_v7 = vadd.f32 %v3792_v24, %v1006_v40  ;;  %vm1529_vm3 = vcmp.ge.f32.partialorder %v1513_v34, 0.0  ;;  %v3877_v40 = vadd.f32 %v3807_v27, %v1009_v61 }
 0x327   :  { %v1547_v46 = vsel %vm1531_vm15, 1, %v5494_v53  ;;  %v1480_v32 = vpop.permute.xlu0 %1479  ;;  %v1545_v24 = vsel %vm1529_vm3, 1, %v5494_v53  ;;  %v5699_v27 = vmov 0  }
 0x328   :  { %1577 = vrot.lane.b32.xlu2 %v1547_v46, %s2839_s0  ;;  %v1514_v6 = vmul.f32 %v1480_v32, %v3536_v58  ;;  %5696 = vst [vmem:[#allocation27_spill] sm:$0xff] %v3860_v7  ;;  %v3867_v44 = vpop.permute.xlu2 %1281 }
 0x329   :  { %1569 = vrot.lane.b32.xlu1 %v1543_v23, %s2839_s0  ;;  %v1005_v23 = vmul.f32 %v3440_v4, %v3440_v4  ;;  %5697 = vst [vmem:[#allocation28_spill] sm:$0xff] %v3877_v40 }
 0x32a   :  { %vm1530_vm1 = vcmp.ge.f32.partialorder %v1514_v6, 0.0  ;;  %v1516_v6 = vmul.f32 %v3774_v30, %v3547_v41 }
 0x32b   :  { %v1054_v48 = vpop.permute.xlu1 %1053  ;;  %v1546_v32 = vsel %vm1530_vm1, 1, %v5494_v53  ;;  %v1012_v53 = vmul.f32 %v3490_v57, %v3490_v57 }
 0x32c   :  { %vm1532_vm4 = vcmp.ge.f32.partialorder %v1516_v6, 0.0  ;;  %v1007_v6 = vmul.f32 %v3436_v2, %v3436_v2 }
 0x32d   :  { %1567 = vrot.lane.b32.xlu0 %v1542_v54, %s2839_s0  ;;  %v3880_v54 = vadd.f32 %v1054_v48, %v1005_v23  ;;  %v1548_v61 = vsel %vm1532_vm4, 1, %v5699_v27  ;;  %v1008_v48 = vmul.f32 %v3458_v13, %v3458_v13 }
 0x32f   :  { %v1058_v49 = vpop.permute.xlu0 %1057  ;;  %5698 = vst [vmem:[#allocation29_spill] sm:$0xff] %v3880_v54 }
 0x330   :  { %1631 = vrot.lane.b32.xlu2 %v3860_v7, %s2840_s13  ;;  %v3888_v30 = vpop.permute.xlu2 %1287  ;;  %v1015_v7 = vmul.f32 %v3513_v33, %v3513_v33 }
 0x331   :  { %1575 = vrot.lane.b32.xlu1 %v1546_v32, %s2839_s0 }
 0x333   :  { %v1060_v46 = vpop.permute.xlu1 %1059 }
 0x334   :  { %v3897_v23 = vadd.f32 %v1060_v46, %v1008_v48  ;;  %v3912_v46 = vadd.f32 %v3836_v45, %v1015_v7  ;;  %v1018_v45 = vmul.f32 %v3536_v58, %v3536_v58 }
 0x335   :  { %1573 = vrot.lane.b32.xlu0 %v1545_v24, %s2839_s0  ;;  %v3894_v24 = vadd.f32 %v3820_v9, %v1012_v53  ;;  %v3907_v53 = vadd.f32 %v1058_v49, %v1007_v6  ;;  %v1011_v9 = vmul.f32 %v3478_v31, %v3478_v31  ;;  %v1010_v49 = vmul.f32 %v3453_v10, %v3453_v10 }
 0x336   :  { %5701 = vst [vmem:[#allocation31_spill] sm:$0xff] %v3897_v23 }
 0x337   :  { %v1064_v34 = vpop.permute.xlu0 %1063  ;;  %5700 = vst [vmem:[#allocation30_spill] sm:$0xff] %v3894_v24 }
 0x338   :  { %1637 = vrot.lane.b32.xlu2 %v3877_v40, %s2840_s13  ;;  %5702 = vst [vmem:[#allocation32_spill] sm:$0xff] %v3907_v53  ;;  %v3928_v7 = vadd.f32 %v1064_v34, %v1010_v49  ;;  %v1013_v34 = vmul.f32 %v3484_v56, %v3484_v56 }
 0x339   :  { %1629 = vrot.lane.b32.xlu1 %v3880_v54, %s2840_s13  ;;  %5703 = vst [vmem:[#allocation33_spill] sm:$0xff] %v3912_v46 }
 0x33a   :  { %5705 = vst [vmem:[#allocation35_spill] sm:$0xff] %v3928_v7 }
 0x33b   :  { %v1066_v32 = vpop.permute.xlu1 %1065 }
 0x33c   :  { %v3918_v48 = vadd.f32 %v1066_v32, %v1011_v9  ;;  %v1014_v32 = vmul.f32 %v3501_v63, %v3501_v63  ;;  %v3932_v9 = vadd.f32 %v1080_v47, %v1018_v45  ;;  %v1017_v45 = vmul.f32 %v3524_v16, %v3524_v16 }
 0x33d   :  { %1579 = vrot.lane.b32.xlu0 %v1548_v61, %s2839_s0  ;;  %v3914_v61 = vpop.permute.xlu2 %1293 }
 0x33e   :  { %5704 = vst [vmem:[#allocation34_spill] sm:$0xff] %v3918_v48 }
 0x33f   :  { %v1070_v40 = vpop.permute.xlu0 %1069  ;;  %5706 = vst [vmem:[#allocation36_spill] sm:$0xff] %v3932_v9 }
 0x340   :  { %1643 = vrot.lane.b32.xlu2 %v3894_v24, %s2840_s13  ;;  %v3946_v47 = vadd.f32 %v1070_v40, %v1013_v34  ;;  %v5711_v34 = vand.u32 2147483647, %v3447_v8  ;;  %v1019_v8 = vmul.f32 %v3530_v38, %v3530_v38 }
 0x341   :  { %1635 = vrot.lane.b32.xlu1 %v3897_v23, %s2840_s13 }
 0x342   :  { %5708 = vst [vmem:[#allocation38_spill] sm:$0xff] %v3946_v47 }
 0x343   :  { %v1072_v54 = vpop.permute.xlu1 %1071 }
 0x345   :  { %1633 = vrot.lane.b32.xlu0 %v3907_v53, %s2840_s13  ;;  %v5712_v53 = vmov 0 }
 0x347   :  { %v1076_v24 = vpop.permute.xlu0 %1075 }
 0x348   :  { %1649 = vrot.lane.b32.xlu2 %v3912_v46, %s2840_s13  ;;  %v3936_v46 = vadd.f32 %v1072_v54, %v1014_v32 }
 0x349   :  { %1641 = vrot.lane.b32.xlu1 %v3918_v48, %s2840_s13  ;;  %v3938_v48 = vpop.permute.xlu2 %1299 }
 0x34a   :  { %5707 = vst [vmem:[#allocation37_spill] sm:$0xff] %v3936_v46 }
 0x34b   :  { %v1078_v6 = vpop.permute.xlu1 %1077 }
 0x34c   :  { %v3952_v54 = vadd.f32 %v1078_v6, %v1017_v45  ;;  %v1020_v6 = vmul.f32 %v3547_v41, %v3547_v41 }
 0x34d   :  { %1639 = vrot.lane.b32.xlu0 %v3928_v7, %s2840_s13 }
 0x34e   :  { %5709 = vst [vmem:[#allocation39_spill] sm:$0xff] %v3952_v54 }
 0x34f   :  { %v1082_v23 = vpop.permute.xlu0 %1081 }
 0x350   :  { %1655 = vrot.lane.b32.xlu2 %v3932_v9, %s2840_s13 }
 0x351   :  { %1647 = vrot.lane.b32.xlu1 %v3936_v46, %s2840_s13  ;;  %v3956_v9 = vpop.permute.xlu2 %1305  ;;  %v1016_v46 = vmul.f32 %v3507_v3, %v3507_v3 }
 0x353   :  { %v1084_v49 = vpop.permute.xlu1 %1083  ;;  %v3960_v40 = vadd.f32 %v1076_v24, %v1016_v46 }
 0x354   :  { %v3976_v24 = vadd.f32 %v1084_v49, %v1020_v6  ;;  %v5721_v49 = vand.u32 2147483647, %v3440_v4  ;;  %v5722_v6 = vmov 0  ;;  %v5725_v4 = vand.u32 2147483647, %v3436_v2 }
 0x355   :  { %1645 = vrot.lane.b32.xlu0 %v3946_v47, %s2840_s13  ;;  %5710 = vst [vmem:[#allocation40_spill] sm:$0xff] %v3960_v40  ;;  %v5717_v47 = vand.u32 2147483647, %v3467_v60 }
 0x356   :  { %5715 = vst [vmem:[#allocation42_spill] sm:$0xff] %v3976_v24  ;;  %vm4011_vm8 = vcmp.le.f32.partialorder %v5725_v4, %v3867_v44  ;;  %v5739_v4 = vmov 0 }
 0x357   :  { %v1278_v32 = vpop.permute.xlu0 %1277  ;;  %v1343_v2 = vsel %vm4011_vm8, 1, %v5699_v27 }
 0x358   :  { %vm3994_vm7 = vcmp.le.f32.partialorder %v5721_v49, %v1278_v32  ;;  %v5731_v49 = vmov 0 }
 0x359   :  { %1653 = vrot.lane.b32.xlu1 %v3952_v54, %s2840_s13  ;;  %v3984_v54 = vadd.f32 %v1082_v23, %v1019_v8  ;;  %v5723_v6 = vsel %vm3994_vm7, 4294967295, %v5722_v6  ;;  %v1341_v23 = vsel %vm3994_vm7, 1, %v5699_v27 }
 0x35a   :  { %5724 = vst [vmem:[#allocation45_spill] sm:$0xff] %v5723_v6 }
 0x35b   :  { %v1280_v7 = vpop.permute.xlu1 %1279  ;;  %5716 = vst [vmem:[#allocation43_spill] sm:$0xff] %v3984_v54 }
 0x35c   :  { %vm3964_vm5 = vcmp.le.f32.partialorder %v5711_v34, %v1280_v7 }
 0x35d   :  { %v5713_v53 = vsel %vm3964_vm5, 4294967295, %v5712_v53  ;;  %v1342_v45 = vsel %vm3964_vm5, 1, %v5699_v27  ;;  %1651 = vrot.lane.b32.xlu0 %v3960_v40, %s2840_s13  ;;  %v5718_v40 = vmov 0 }
 0x35e   :  { %5714 = vst [vmem:[#allocation41_spill] sm:$0xff] %v5713_v53  ;;  %1359 = vrot.lane.b32.xlu2 %v1342_v45, %s2839_s0 }
 0x35f   :  { %v1284_v46 = vpop.permute.xlu0 %1283 }
 0x361   :  { %1659 = vrot.lane.b32.xlu1 %v3976_v24, %s2840_s13 }
 0x362   :  { %v3982_v7 = vpop.permute.xlu2 %1553 }
 0x363   :  { %v1286_v34 = vpop.permute.xlu1 %1285 }
 0x364   :  { %vm3988_vm6 = vcmp.le.f32.partialorder %v5717_v47, %v1286_v34  ;;  %v5726_v47 = vmov 0  ;;  %v5730_v34 = vand.u32 2147483647, %v3490_v57 }
 0x365   :  { %v5719_v40 = vsel %vm3988_vm6, 4294967295, %v5718_v40  ;;  %v1345_v45 = vsel %vm3988_vm6, 1, %v5699_v27  ;;  %1657 = vrot.lane.b32.xlu0 %v3984_v54, %s2840_s13  ;;  %v5727_v47 = vsel %vm4011_vm8, 4294967295, %v5726_v47 }
 0x366   :  { %5720 = vst [vmem:[#allocation44_spill] sm:$0xff] %v5719_v40  ;;  %1365 = vrot.lane.b32.xlu2 %v1345_v45, %s2839_s0  ;;  %v5734_v45 = vand.u32 2147483647, %v3458_v13 }
 0x367   :  { %v1290_v60 = vpop.permute.xlu0 %1289  ;;  %5728 = vst [vmem:[#allocation46_spill] sm:$0xff] %v5727_v47 }
 0x368   :  { %vm4025_vm10 = vcmp.le.f32.partialorder %v5734_v45, %v1284_v46  ;;  %v5738_v46 = vand.u32 2147483647, %v3453_v10  ;;  %v5743_v45 = vand.u32 2147483647, %v3513_v33 }
 0x369   :  { %1357 = vrot.lane.b32.xlu1 %v1341_v23, %s2839_s0  ;;  %v5735_v23 = vmov 0  ;;  %v1344_v13 = vsel %vm4025_vm10, 1, %v5699_v27 }
 0x36a   :  { %v4015_v32 = vpop.permute.xlu2 %1559  ;;  %v5736_v23 = vsel %vm4025_vm10, 4294967295, %v5735_v23  ;;  %vm4044_vm11 = vcmp.le.f32.partialorder %v5738_v46, %v3888_v30  ;;  %v5752_v46 = vmov 0 }
 0x36b   :  { %5729 = vst [vmem:[#allocation47_spill] sm:$0xff] %v4015_v32  ;;  %v1292_v8 = vpop.permute.xlu1 %1291  ;;  %v5740_v4 = vsel %vm4044_vm11, 4294967295, %v5739_v4  ;;  %v1346_v10 = vsel %vm4044_vm11, 1, %v5699_v27 }
 0x36c   :  { %vm4019_vm9 = vcmp.le.f32.partialorder %v5730_v34, %v1292_v8  ;;  %5737 = vst [vmem:[#allocation49_spill] sm:$0xff] %v5736_v23 }
 0x36d   :  { %v5732_v49 = vsel %vm4019_vm9, 4294967295, %v5731_v49  ;;  %v1348_v44 = vsel %vm4019_vm9, 1, %v5699_v27  ;;  %1361 = vrot.lane.b32.xlu0 %v1343_v2, %s2839_s0  ;;  %5741 = vst [vmem:[#allocation50_spill] sm:$0xff] %v5740_v4  ;;  %v5744_v2 = vmov 0 }
 0x36e   :  { %5733 = vst [vmem:[#allocation48_spill] sm:$0xff] %v5732_v49  ;;  %1371 = vrot.lane.b32.xlu2 %v1348_v44, %s2839_s0  ;;  %v5747_v44 = vand.u32 2147483647, %v3478_v31 }
 0x36f   :  { %v1296_v57 = vpop.permute.xlu0 %1295 }
 0x370   :  { %vm4058_vm13 = vcmp.le.f32.partialorder %v5747_v44, %v1290_v60  ;;  %v5751_v60 = vand.u32 2147483647, %v3484_v56  ;;  %v5756_v44 = vand.u32 2147483647, %v3536_v58 }
 0x371   :  { %1363 = vrot.lane.b32.xlu1 %v1344_v13, %s2839_s0  ;;  %v5748_v13 = vmov 0  ;;  %v1347_v31 = vsel %vm4058_vm13, 1, %v5699_v27 }
 0x372   :  { %v4048_v8 = vpop.permute.xlu2 %1565  ;;  %v5749_v13 = vsel %vm4058_vm13, 4294967295, %v5748_v13  ;;  %vm4077_vm14 = vcmp.le.f32.partialorder %v5751_v60, %v3914_v61  ;;  %v5765_v60 = vmov 0 }
 0x373   :  { %5742 = vst [vmem:[#allocation51_spill] sm:$0xff] %v4048_v8  ;;  %v1298_v34 = vpop.permute.xlu1 %1297  ;;  %v5753_v46 = vsel %vm4077_vm14, 4294967295, %v5752_v46  ;;  %v1349_v56 = vsel %vm4077_vm14, 1, %v5699_v27 }
 0x374   :  { %vm4052_vm12 = vcmp.le.f32.partialorder %v5743_v45, %v1298_v34  ;;  %5750 = vst [vmem:[#allocation53_spill] sm:$0xff] %v5749_v13 }
 0x375   :  { %v5745_v2 = vsel %vm4052_vm12, 4294967295, %v5744_v2  ;;  %v1351_v30 = vsel %vm4052_vm12, 1, %v5699_v27  ;;  %1367 = vrot.lane.b32.xlu0 %v1346_v10, %s2839_s0  ;;  %5754 = vst [vmem:[#allocation54_spill] sm:$0xff] %v5753_v46  ;;  %v5757_v10 = vmov 0 }
 0x376   :  { %5746 = vst [vmem:[#allocation52_spill] sm:$0xff] %v5745_v2  ;;  %1377 = vrot.lane.b32.xlu2 %v1351_v30, %s2839_s0  ;;  %v5760_v30 = vand.u32 2147483647, %v3501_v63 }
 0x377   :  { %v1302_v33 = vpop.permute.xlu0 %1301 }
 0x378   :  { %vm4091_vm0 = vcmp.le.f32.partialorder %v5760_v30, %v1296_v57  ;;  %v5764_v57 = vand.u32 2147483647, %v3507_v3  ;;  %v5769_v30 = vand.u32 2147483647, %v3524_v16  ;;  %v5773_v16 = vand.u32 2147483647, %v3530_v38 }
 0x379   :  { %1369 = vrot.lane.b32.xlu1 %v1347_v31, %s2839_s0  ;;  %v5761_v31 = vmov 0  ;;  %v1350_v63 = vsel %vm4091_vm0, 1, %v5699_v27 }
 0x37a   :  { %v4081_v34 = vpop.permute.xlu2 %1571  ;;  %v5762_v31 = vsel %vm4091_vm0, 4294967295, %v5761_v31  ;;  %vm4110_vm1 = vcmp.le.f32.partialorder %v5764_v57, %v3938_v48  ;;  %vm4120_vm3 = vcmp.le.f32.partialorder %v5769_v30, %v1302_v33  ;;  %vm4137_vm4 = vcmp.le.f32.partialorder %v5773_v16, %v3956_v9 }
 0x37b   :  { %5755 = vst [vmem:[#allocation55_spill] sm:$0xff] %v4081_v34  ;;  %v1304_v45 = vpop.permute.xlu1 %1303  ;;  %v5766_v60 = vsel %vm4110_vm1, 4294967295, %v5765_v60  ;;  %v1353_v48 = vsel %vm4120_vm3, 1, %v5699_v27  ;;  %v5774_v33 = vmov 0  ;;  %v5777_v30 = vand.u32 2147483647, %v3547_v41 }
 0x37c   :  { %vm4085_vm15 = vcmp.le.f32.partialorder %v5756_v44, %v1304_v45  ;;  %5763 = vst [vmem:[#allocation57_spill] sm:$0xff] %v5762_v31  ;;  %v5775_v33 = vsel %vm4137_vm4, 4294967295, %v5774_v33 }
 0x37d   :  { %v5758_v10 = vsel %vm4085_vm15, 4294967295, %v5757_v10  ;;  %v1354_v61 = vsel %vm4085_vm15, 1, %v5699_v27  ;;  %1373 = vrot.lane.b32.xlu0 %v1349_v56, %s2839_s0  ;;  %5767 = vst [vmem:[#allocation58_spill] sm:$0xff] %v5766_v60  ;;  %v5770_v56 = vmov 0 }
 0x37e   :  { %5759 = vst [vmem:[#allocation56_spill] sm:$0xff] %v5758_v10  ;;  %1383 = vrot.lane.b32.xlu2 %v1354_v61, %s2839_s0  ;;  %v5771_v56 = vsel %vm4120_vm3, 4294967295, %v5770_v56  ;;  %v1352_v61 = vsel %vm4110_vm1, 1, %v5699_v27  ;;  %vm5619_vm3 = vmmov 1  }
 0x37f   :  { %v1308_v58 = vpop.permute.xlu0 %1307  ;;  %5772 = vst [vmem:[#allocation60_spill] sm:$0xff] %v5771_v56 }
 0x380   :  { %5776 = vst [vmem:[#allocation61_spill] sm:$0xff] %v5775_v33  ;;  %vm4146_vm1 = vcmp.le.f32.partialorder %v5777_v30, %v1308_v58 }
 0x381   :  { %1375 = vrot.lane.b32.xlu1 %v1350_v63, %s2839_s0  ;;  %v1356_v9 = vsel %vm4146_vm1, 1, %v5699_v27 }
 0x382   :  { %v4114_v45 = vpop.permute.xlu2 %1577 }
 0x383   :  { %5768 = vst [vmem:[#allocation59_spill] sm:$0xff] %v4114_v45  ;;  %v4116_v44 = vpop.permute.xlu1 %1551 }
 0x384   :  { %vm1582_vm11 = vcmp.ne.s32.totalorder %v4116_v44, 0  ;;  %v5848_v44 = vmov 0 }
 0x385   :  { %1379 = vrot.lane.b32.xlu0 %v1352_v61, %s2839_s0  ;;  %v5778_v61 = vmov 0 }
 0x386   :  { %v5779_v61 = vsel %vm4146_vm1, 4294967295, %v5778_v61 }
 0x387   :  { %v4128_v3 = vpop.permute.xlu0 %1549  ;;  %5780 = vst [vmem:[#allocation62_spill] sm:$0xff] %v5779_v61 }
 0x388   :  { %vm1581_vm12 = vcmp.ne.s32.totalorder %v4128_v3, 0  ;;  %v5866_v3 = vand.u32 2147483647, %v3569_v59 }
 0x389   :  { %1381 = vrot.lane.b32.xlu1 %v1353_v48, %s2839_s0  ;;  %v1355_v48 = vsel %vm4137_vm4, 1, %v5699_v27 }
 0x38a   :  { %v1632_v63 = vpop.permute.xlu2 %1631 }
 0x38b   :  { %1678 = vst.msk [vmem:[#allocation2 + $0x10] sm:$0xff] %vm156_vm2, %v1632_v63  ;;  %v4142_v57 = vpop.permute.xlu1 %1557 }
 0x38d   :  { %1385 = vrot.lane.b32.xlu0 %v1355_v48, %s2839_s0 }
 0x38f   :  { %v4154_v38 = vpop.permute.xlu0 %1555 }
 0x390   :  { %5781 = vst [vmem:[#allocation63_spill] sm:$0xff] %v4154_v38 }
 0x391   :  { %1387 = vrot.lane.b32.xlu1 %v1356_v9, %s2839_s0 }
 0x392   :  { %v1638_v16 = vpop.permute.xlu2 %1637  ;;  %v4163_v58 = vld [vmem:[#allocation2 + $0x11] sm:$0xff] }
 0x393   :  { %1681 = vst.msk [vmem:[#allocation2 + $0x48] sm:$0xff] %vm156_vm2, %v1638_v16  ;;  %v4161_v41 = vpop.permute.xlu1 %1563 }
 0x395   :  { %1759 = vrot.lane.b32.xlu0 %v4163_v58, %s2839_s0 }
 0x397   :  { %v4167_v63 = vpop.permute.xlu0 %1561 }
 0x398   :  { %5782 = vst [vmem:[#allocation64_spill] sm:$0xff] %v4167_v63 }
 0x39a   :  { %v1644_v30 = vpop.permute.xlu2 %1643  ;;  %v4275_v34 = vld [vmem:[#allocation2 + $0x47] sm:$0xff] }
 0x39b   :  { %1684 = vst.msk [vmem:[#allocation2 + $0x70] sm:$0xff] %vm156_vm2, %v1644_v30  ;;  %v4170_v48 = vpop.permute.xlu1 %1569 }
 0x39c   :  { %5795 = vst [vmem:[#allocation77_spill] sm:$0xff] %v4275_v34 }
 0x39f   :  { %v4172_v27 = vpop.permute.xlu0 %1567 }
 0x3a0   :  { %5783 = vst [vmem:[#allocation65_spill] sm:$0xff] %v4172_v27 }
 0x3a2   :  { %v1650_v9 = vpop.permute.xlu2 %1649  ;;  %v4218_v10 = vld [vmem:[#allocation2 + $0x71] sm:$0xff] }
 0x3a3   :  { %1687 = vst.msk [vmem:[#allocation2 + $0xa8] sm:$0xff] %vm156_vm2, %v1650_v9  ;;  %v4175_v16 = vpop.permute.xlu1 %1575 }
 0x3a4   :  { %5784 = vst [vmem:[#allocation66_spill] sm:$0xff] %v4175_v16 }
 0x3a7   :  { %v4177_v24 = vpop.permute.xlu0 %1573 }
 0x3a8   :  { %5785 = vst [vmem:[#allocation67_spill] sm:$0xff] %v4177_v24 }
 0x3aa   :  { %v1656_v54 = vpop.permute.xlu2 %1655  ;;  %v4305_v37 = vld [vmem:[#allocation2 + $0xa7] sm:$0xff] }
 0x3ab   :  { %1690 = vst.msk [vmem:[#allocation2 + $0xd0] sm:$0xff] %vm156_vm2, %v1656_v54  ;;  %v1630_v33 = vpop.permute.xlu1 %1629 }
 0x3ac   :  { %1677 = vst.msk [vmem:[#allocation2 + $0x8] sm:$0xff] %vm156_vm2, %v1630_v33 }
 0x3ad   :  { %5801 = vst [vmem:[#allocation83_spill] sm:$0xff] %v4305_v37 }
 0x3af   :  { %v4181_v61 = vpop.permute.xlu0 %1579 }
 0x3b0   :  { %5786 = vst [vmem:[#allocation68_spill] sm:$0xff] %v4181_v61 }
 0x3b2   :  { %v4247_v49 = vld [vmem:[#allocation2 + $0xd1] sm:$0xff] }
 0x3b3   :  { %v1636_v30 = vpop.permute.xlu1 %1635  ;;  %v4183_v60 = vld [vmem:[#allocation2 + $0x9] sm:$0xff] }
 0x3b4   :  { %1680 = vst.msk [vmem:[#allocation2 + $0x30] sm:$0xff] %vm156_vm2, %v1636_v30  ;;  %1757 = vrot.lane.b32.xlu2 %v4183_v60, %s2839_s0  ;;  %v4261_v61 = vld [vmem:[#allocation2 + $0x7] sm:$0xff]  ;;  %v4263_v45 = vld [vmem:[#allocation2 + $0xf] sm:$0xff] }
 0x3b5   :  { %5791 = vst [vmem:[#allocation73_spill] sm:$0xff] %v4261_v61 }
 0x3b6   :  { %5792 = vst [vmem:[#allocation74_spill] sm:$0xff] %v4263_v45 }
 0x3b7   :  { %v1634_v9 = vpop.permute.xlu0 %1633 }
 0x3b8   :  { %1679 = vst.msk [vmem:[#allocation2 + $0x28] sm:$0xff] %vm156_vm2, %v1634_v9 }
 0x3bb   :  { %v1642_v56 = vpop.permute.xlu1 %1641  ;;  %v4189_v46 = vld [vmem:[#allocation2 + $0x31] sm:$0xff] }
 0x3bc   :  { %1683 = vst.msk [vmem:[#allocation2 + $0x68] sm:$0xff] %vm156_vm2, %v1642_v56  ;;  %1763 = vrot.lane.b32.xlu2 %v4189_v46, %s2839_s0 }
 0x3bf   :  { %v1640_v54 = vpop.permute.xlu0 %1639  ;;  %v4194_v33 = vld [vmem:[#allocation2 + $0x29] sm:$0xff] }
 0x3c0   :  { %1682 = vst.msk [vmem:[#allocation2 + $0x50] sm:$0xff] %vm156_vm2, %v1640_v54  ;;  %1761 = vrot.lane.b32.xlu1 %v4194_v33, %s2839_s0  ;;  %v4273_v24 = vld [vmem:[#allocation2 + $0x2f] sm:$0xff] }
 0x3c1   :  { %5794 = vst [vmem:[#allocation76_spill] sm:$0xff] %v4273_v24 }
 0x3c3   :  { %v1648_v30 = vpop.permute.xlu1 %1647  ;;  %v4199_v31 = vld [vmem:[#allocation2 + $0x69] sm:$0xff] }
 0x3c4   :  { %1686 = vst.msk [vmem:[#allocation2 + $0x90] sm:$0xff] %vm156_vm2, %v1648_v30  ;;  %1769 = vrot.lane.b32.xlu2 %v4199_v31, %s2839_s0  ;;  %v4287_v0 = vld [vmem:[#allocation2 + $0x67] sm:$0xff]  ;;  %v4289_v62 = vld [vmem:[#allocation2 + $0x6f] sm:$0xff] }
 0x3c5   :  { %5797 = vst [vmem:[#allocation79_spill] sm:$0xff] %v4287_v0 }
 0x3c6   :  { %5798 = vst [vmem:[#allocation80_spill] sm:$0xff] %v4289_v62 }
 0x3c7   :  { %v1646_v56 = vpop.permute.xlu0 %1645  ;;  %v4204_v9 = vld [vmem:[#allocation2 + $0x51] sm:$0xff]  ;;  %v4206_v4 = vld [vmem:[#allocation2 + $0x49] sm:$0xff] }
 0x3c8   :  { %1685 = vst.msk [vmem:[#allocation2 + $0x88] sm:$0xff] %vm156_vm2, %v1646_v56  ;;  %1767 = vrot.lane.b32.xlu1 %v4204_v9, %s2839_s0  ;;  %1765 = vrot.lane.b32.xlu0 %v4206_v4, %s2839_s0  ;;  %v4269_v52 = vld [vmem:[#allocation2 + $0x4f] sm:$0xff] }
 0x3c9   :  { %5793 = vst [vmem:[#allocation75_spill] sm:$0xff] %v4269_v52 }
 0x3cb   :  { %v1654_v54 = vpop.permute.xlu1 %1653  ;;  %v4213_v13 = vld [vmem:[#allocation2 + $0x91] sm:$0xff] }
 0x3cc   :  { %1689 = vst.msk [vmem:[#allocation2 + $0xc8] sm:$0xff] %vm156_vm2, %v1654_v54  ;;  %1775 = vrot.lane.b32.xlu2 %v4213_v13, %s2839_s0 }
 0x3cf   :  { %v1652_v30 = vpop.permute.xlu0 %1651  ;;  %v4220_v47 = vld [vmem:[#allocation2 + $0x89] sm:$0xff] }
 0x3d0   :  { %1688 = vst.msk [vmem:[#allocation2 + $0xb0] sm:$0xff] %vm156_vm2, %v1652_v30  ;;  %1771 = vrot.lane.b32.xlu0 %v4218_v10, %s2839_s0  ;;  %1773 = vrot.lane.b32.xlu1 %v4220_v47, %s2839_s0  ;;  %v4283_v35 = vld [vmem:[#allocation2 + $0x87] sm:$0xff]  ;;  %v4303_v55 = vld [vmem:[#allocation2 + $0x8f] sm:$0xff] }
 0x3d1   :  { %5796 = vst [vmem:[#allocation78_spill] sm:$0xff] %v4283_v35 }
 0x3d2   :  { %5800 = vst [vmem:[#allocation82_spill] sm:$0xff] %v4303_v55 }
 0x3d3   :  { %v1660_v56 = vpop.permute.xlu1 %1659  ;;  %v4227_v23 = vld [vmem:[#allocation2 + $0xc9] sm:$0xff] }
 0x3d4   :  { %5787 = vst [vmem:[#allocation69_spill] sm:$0xff] %v4227_v23  ;;  %1781 = vrot.lane.b32.xlu2 %v4227_v23, %s2839_s0  ;;  %v4321_v15 = vld [vmem:[#allocation2 + $0xc7] sm:$0xff]  ;;  %v4323_v5 = vld [vmem:[#allocation2 + $0xcf] sm:$0xff] }
 0x3d5   :  { %1692 = vst.msk [vmem:[#allocation2 + $0xf0] sm:$0xff] %vm156_vm2, %v1660_v56  ;;  %v4245_v56 = vpop.permute.xlu2 %1359 }
 0x3d6   :  { %5804 = vst [vmem:[#allocation86_spill] sm:$0xff] %v4321_v15 }
 0x3d7   :  { %v1658_v54 = vpop.permute.xlu0 %1657  ;;  %v4232_v2 = vld [vmem:[#allocation2 + $0xb1] sm:$0xff]  ;;  %v4234_v6 = vld [vmem:[#allocation2 + $0xa9] sm:$0xff]  ;;  %5805 = vst [vmem:[#allocation87_spill] sm:$0xff] %v4323_v5 }
 0x3d8   :  { %1691 = vst.msk [vmem:[#allocation2 + $0xe8] sm:$0xff] %vm156_vm2, %v1658_v54  ;;  %1779 = vrot.lane.b32.xlu1 %v4232_v2, %s2839_s0  ;;  %1777 = vrot.lane.b32.xlu0 %v4234_v6, %s2839_s0  ;;  %v4255_v54 = vld [vmem:[#allocation2 + $0x27] sm:$0xff]  ;;  %v4297_v8 = vld [vmem:[#allocation2 + $0xaf] sm:$0xff]  ;;  %vm1390_vm2 = vcmp.ne.s32.totalorder %v4245_v56, 0 }
 0x3d9   :  { %5790 = vst [vmem:[#allocation72_spill] sm:$0xff] %v4255_v54 }
 0x3da   :  { %5799 = vst [vmem:[#allocation81_spill] sm:$0xff] %v4297_v8 }
 0x3db   :  { %v4291_v27 = vpop.permute.xlu1 %1357 }
 0x3dc   :  { %v4241_v30 = vld [vmem:[#allocation2 + $0xf1] sm:$0xff] }
 0x3dd   :  { %5788 = vst [vmem:[#allocation70_spill] sm:$0xff] %v4241_v30  ;;  %1787 = vrot.lane.b32.xlu2 %v4241_v30, %s2839_s0  ;;  %v4259_v53 = vpop.permute.xlu2 %1365 }
 0x3de   :  { %vm1393_vm0 = vcmp.ne.s32.totalorder %v4259_v53, 0 }
 0x3df   :  { %v4249_v40 = vld [vmem:[#allocation2 + $0xe9] sm:$0xff]  ;;  %v4307_v25 = vpop.permute.xlu0 %1361 }
 0x3e0   :  { %5789 = vst [vmem:[#allocation71_spill] sm:$0xff] %v4249_v40  ;;  %1783 = vrot.lane.b32.xlu0 %v4247_v49, %s2839_s0  ;;  %1785 = vrot.lane.b32.xlu1 %v4249_v40, %s2839_s0  ;;  %v4315_v63 = vld [vmem:[#allocation2 + $0xe7] sm:$0xff] }
 0x3e1   :  { %5802 = vst [vmem:[#allocation84_spill] sm:$0xff] %v4315_v63 }
 0x3e3   :  { %v4313_v14 = vpop.permute.xlu1 %1363 }
 0x3e4   :  { %vm1392_vm7 = vcmp.ne.s32.totalorder %v4313_v14, 0  ;;  %v4657_v14 = vld [vmem:[#allocation2 + $0xc8] sm:$0xff] }
 0x3e5   :  { %1841 = vrot.lane.b32.xlu2 %v4255_v54, %s2841_s14  ;;  %v4281_v20 = vpop.permute.xlu2 %1371 }
 0x3e7   :  { %v4329_v43 = vpop.permute.xlu0 %1367 }
 0x3e8   :  { %1837 = vrot.lane.b32.xlu0 %v4261_v61, %s2841_s14  ;;  %1839 = vrot.lane.b32.xlu1 %v4263_v45, %s2841_s14 }
 0x3eb   :  { %v4333_v17 = vpop.permute.xlu1 %1369 }
 0x3ec   :  { %5806 = vst [vmem:[#allocation88_spill] sm:$0xff] %v4333_v17 }
 0x3ed   :  { %1847 = vrot.lane.b32.xlu2 %v4269_v52, %s2841_s14  ;;  %v4299_v16 = vpop.permute.xlu2 %1377 }
 0x3ef   :  { %v4345_v51 = vpop.permute.xlu0 %1373 }
 0x3f0   :  { %1843 = vrot.lane.b32.xlu0 %v4273_v24, %s2841_s14  ;;  %1845 = vrot.lane.b32.xlu1 %v4275_v34, %s2841_s14 }
 0x3f5   :  { %1853 = vrot.lane.b32.xlu2 %v4283_v35, %s2841_s14  ;;  %v4319_v32 = vpop.permute.xlu2 %1383 }
 0x3f6   :  { %5803 = vst [vmem:[#allocation85_spill] sm:$0xff] %v4319_v32  ;;  %v4337_v32 = vld [vmem:[#allocation2 + $0xef] sm:$0xff] }
 0x3f7   :  { %5807 = vst [vmem:[#allocation89_spill] sm:$0xff] %v4337_v32  ;;  %v4359_v17 = vpop.permute.xlu0 %1379 }
 0x3f8   :  { %1849 = vrot.lane.b32.xlu0 %v4287_v0, %s2841_s14  ;;  %1851 = vrot.lane.b32.xlu1 %v4289_v62, %s2841_s14 }
 0x3fd   :  { %1859 = vrot.lane.b32.xlu2 %v4297_v8, %s2841_s14 }
 0x400   :  { %1855 = vrot.lane.b32.xlu0 %v4303_v55, %s2841_s14  ;;  %1857 = vrot.lane.b32.xlu1 %v4305_v37, %s2841_s14 }
 0x405   :  { %1865 = vrot.lane.b32.xlu2 %v4315_v63, %s2841_s14 }
 0x408   :  { %1861 = vrot.lane.b32.xlu0 %v4321_v15, %s2841_s14  ;;  %1863 = vrot.lane.b32.xlu1 %v4323_v5, %s2841_s14 }
 0x40d   :  { %2049 = vrot.lane.b32.xlu2 %v4255_v54, %s2839_s0  ;;  %v4349_v54 = vpop.permute.xlu1 %1375 }
 0x40e   :  { %v4335_v1 = vpop.permute.xlu2 %1757 }
 0x410   :  { %2047 = vrot.lane.b32.xlu1 %v4263_v45, %s2839_s0  ;;  %1867 = vrot.lane.b32.xlu0 %v4337_v32, %s2841_s14 }
 0x415   :  { %2055 = vrot.lane.b32.xlu2 %v4269_v52, %s2839_s0  ;;  %v4361_v52 = vpop.permute.xlu1 %1381 }
 0x416   :  { %v4347_v38 = vpop.permute.xlu2 %1763 }
 0x418   :  { %2053 = vrot.lane.b32.xlu1 %v4275_v34, %s2839_s0  ;;  %2045 = vrot.lane.b32.xlu0 %v4261_v61, %s2839_s0  ;;  %v4371_v61 = vpop.permute.xlu0 %1385 }
 0x419   :  { %5808 = vst [vmem:[#allocation90_spill] sm:$0xff] %v4371_v61 }
 0x41d   :  { %2061 = vrot.lane.b32.xlu2 %v4283_v35, %s2839_s0  ;;  %v4377_v35 = vpop.permute.xlu1 %1387 }
 0x41e   :  { %v4357_v45 = vpop.permute.xlu2 %1769  ;;  %5809 = vst [vmem:[#allocation91_spill] sm:$0xff] %v4377_v35 }
 0x420   :  { %2059 = vrot.lane.b32.xlu1 %v4289_v62, %s2839_s0  ;;  %2051 = vrot.lane.b32.xlu0 %v4273_v24, %s2839_s0 }
 0x425   :  { %2067 = vrot.lane.b32.xlu2 %v4297_v8, %s2839_s0  ;;  %v4387_v8 = vpop.permute.xlu0 %1759 }
 0x426   :  { %v4369_v34 = vpop.permute.xlu2 %1775 }
 0x428   :  { %2065 = vrot.lane.b32.xlu1 %v4305_v37, %s2839_s0  ;;  %2057 = vrot.lane.b32.xlu0 %v4287_v0, %s2839_s0 }
 0x42d   :  { %2073 = vrot.lane.b32.xlu2 %v4315_v63, %s2839_s0 }
 0x42e   :  { %v4381_v62 = vpop.permute.xlu2 %1781 }
 0x42f   :  { %5810 = vst [vmem:[#allocation92_spill] sm:$0xff] %v4381_v62 }
 0x430   :  { %2071 = vrot.lane.b32.xlu1 %v4323_v5, %s2839_s0  ;;  %2063 = vrot.lane.b32.xlu0 %v4303_v55, %s2839_s0 }
 0x432   :  { %v4389_v24 = vpop.permute.xlu1 %1761 }
 0x435   :  { %2111 = vrot.lane.b32.xlu2 %v4163_v58, %s2841_s14 }
 0x437   :  { %v4393_v37 = vpop.permute.xlu2 %1787 }
 0x438   :  { %5811 = vst [vmem:[#allocation93_spill] sm:$0xff] %v4393_v37  ;;  %2109 = vrot.lane.b32.xlu1 %v4183_v60, %s2841_s14  ;;  %2069 = vrot.lane.b32.xlu0 %v4321_v15, %s2839_s0 }
 0x43a   :  { %v4399_v63 = vpop.permute.xlu1 %1767  ;;  %v4401_v5 = vpop.permute.xlu0 %1765 }
 0x43d   :  { %2117 = vrot.lane.b32.xlu2 %v4206_v4, %s2841_s14 }
 0x43f   :  { %v4405_v55 = vpop.permute.xlu2 %1841 }
 0x440   :  { %5812 = vst [vmem:[#allocation94_spill] sm:$0xff] %v4405_v55  ;;  %2115 = vrot.lane.b32.xlu1 %v4189_v46, %s2841_s14  ;;  %2075 = vrot.lane.b32.xlu0 %v4337_v32, %s2839_s0 }
 0x442   :  { %v4411_v0 = vpop.permute.xlu1 %1773  ;;  %v4413_v37 = vpop.permute.xlu0 %1771 }
 0x443   :  { %5813 = vst [vmem:[#allocation95_spill] sm:$0xff] %v4411_v0  ;;  %v4451_v0 = vld [vmem:[#allocation2 + $0x28] sm:$0xff] }
 0x444   :  { %5821 = vst [vmem:[#allocation103_spill] sm:$0xff] %v4451_v0 }
 0x445   :  { %2123 = vrot.lane.b32.xlu2 %v4218_v10, %s2841_s14 }
 0x447   :  { %v4417_v15 = vpop.permute.xlu2 %1847 }
 0x448   :  { %5814 = vst [vmem:[#allocation96_spill] sm:$0xff] %v4417_v15  ;;  %2121 = vrot.lane.b32.xlu1 %v4199_v31, %s2841_s14  ;;  %2113 = vrot.lane.b32.xlu0 %v4194_v33, %s2841_s14 }
 0x44a   :  { %v4423_v55 = vpop.permute.xlu1 %1779  ;;  %v4425_v62 = vpop.permute.xlu0 %1777 }
 0x44b   :  { %5815 = vst [vmem:[#allocation97_spill] sm:$0xff] %v4423_v55 }
 0x44d   :  { %2129 = vrot.lane.b32.xlu2 %v4234_v6, %s2841_s14 }
 0x44f   :  { %v4429_v32 = vpop.permute.xlu2 %1853 }
 0x450   :  { %5816 = vst [vmem:[#allocation98_spill] sm:$0xff] %v4429_v32  ;;  %2127 = vrot.lane.b32.xlu1 %v4213_v13, %s2841_s14  ;;  %2119 = vrot.lane.b32.xlu0 %v4204_v9, %s2841_s14 }
 0x452   :  { %v4435_v15 = vpop.permute.xlu1 %1785  ;;  %v4437_v35 = vpop.permute.xlu0 %1783 }
 0x453   :  { %5817 = vst [vmem:[#allocation99_spill] sm:$0xff] %v4435_v15 }
 0x455   :  { %2135 = vrot.lane.b32.xlu2 %v4247_v49, %s2841_s14 }
 0x457   :  { %v4441_v55 = vpop.permute.xlu2 %1859 }
 0x458   :  { %5818 = vst [vmem:[#allocation100_spill] sm:$0xff] %v4441_v55  ;;  %2133 = vrot.lane.b32.xlu1 %v4227_v23, %s2841_s14  ;;  %2125 = vrot.lane.b32.xlu0 %v4220_v47, %s2841_s14 }
 0x45a   :  { %v4447_v32 = vpop.permute.xlu1 %1839  ;;  %v4449_v61 = vpop.permute.xlu0 %1837 }
 0x45b   :  { %5819 = vst [vmem:[#allocation101_spill] sm:$0xff] %v4447_v32  ;;  %v4465_v32 = vld [vmem:[#allocation2 + $0x50] sm:$0xff] }
 0x45c   :  { %5820 = vst [vmem:[#allocation102_spill] sm:$0xff] %v4449_v61 }
 0x45d   :  { %2257 = vrot.lane.b32.xlu2 %v4451_v0, %s2839_s0  ;;  %5825 = vst [vmem:[#allocation107_spill] sm:$0xff] %v4465_v32  ;;  %v4471_v0 = vld [vmem:[#allocation2 + $0x10] sm:$0xff] }
 0x45e   :  { %5827 = vst [vmem:[#allocation109_spill] sm:$0xff] %v4471_v0 }
 0x45f   :  { %v4455_v15 = vpop.permute.xlu2 %1865 }
 0x460   :  { %5822 = vst [vmem:[#allocation104_spill] sm:$0xff] %v4455_v15  ;;  %2139 = vrot.lane.b32.xlu1 %v4241_v30, %s2841_s14  ;;  %2131 = vrot.lane.b32.xlu0 %v4232_v2, %s2841_s14  ;;  %v4489_v30 = vld [vmem:[#allocation2 + $0x8] sm:$0xff] }
 0x461   :  { %5833 = vst [vmem:[#allocation115_spill] sm:$0xff] %v4489_v30 }
 0x462   :  { %v4461_v55 = vpop.permute.xlu1 %1845  ;;  %v4463_v23 = vpop.permute.xlu0 %1843 }
 0x463   :  { %5823 = vst [vmem:[#allocation105_spill] sm:$0xff] %v4461_v55 }
 0x464   :  { %5824 = vst [vmem:[#allocation106_spill] sm:$0xff] %v4463_v23  ;;  %v4481_v23 = vld [vmem:[#allocation2 + $0x88] sm:$0xff] }
 0x465   :  { %2263 = vrot.lane.b32.xlu2 %v4465_v32, %s2839_s0  ;;  %5830 = vst [vmem:[#allocation112_spill] sm:$0xff] %v4481_v23 }
 0x467   :  { %v4469_v61 = vpop.permute.xlu2 %2049 }
 0x468   :  { %5826 = vst [vmem:[#allocation108_spill] sm:$0xff] %v4469_v61  ;;  %2255 = vrot.lane.b32.xlu1 %v4471_v0, %s2839_s0  ;;  %2137 = vrot.lane.b32.xlu0 %v4249_v40, %s2841_s14  ;;  %v4487_v61 = vld [vmem:[#allocation2 + $0x48] sm:$0xff]  ;;  %v4508_v40 = vld [vmem:[#allocation2 + $0x30] sm:$0xff] }
 0x469   :  { %5832 = vst [vmem:[#allocation114_spill] sm:$0xff] %v4487_v61 }
 0x46a   :  { %v4477_v15 = vpop.permute.xlu1 %1851  ;;  %v4479_v55 = vpop.permute.xlu0 %1849  ;;  %5837 = vst [vmem:[#allocation119_spill] sm:$0xff] %v4508_v40 }
 0x46b   :  { %5828 = vst [vmem:[#allocation110_spill] sm:$0xff] %v4477_v15  ;;  %v4499_v15 = vld [vmem:[#allocation2 + $0xb0] sm:$0xff] }
 0x46c   :  { %5829 = vst [vmem:[#allocation111_spill] sm:$0xff] %v4479_v55 }
 0x46d   :  { %2269 = vrot.lane.b32.xlu2 %v4481_v23, %s2839_s0  ;;  %5835 = vst [vmem:[#allocation117_spill] sm:$0xff] %v4499_v15 }
 0x46f   :  { %v4485_v32 = vpop.permute.xlu2 %2055 }
 0x470   :  { %5831 = vst [vmem:[#allocation113_spill] sm:$0xff] %v4485_v32  ;;  %2261 = vrot.lane.b32.xlu1 %v4487_v61, %s2839_s0  ;;  %2253 = vrot.lane.b32.xlu0 %v4489_v30, %s2839_s0  ;;  %v4506_v32 = vld [vmem:[#allocation2 + $0x70] sm:$0xff]  ;;  %v5838_v61 = vand.u32 2147483647, %v3595_v11  ;;  %v5839_v30 = vmov 0 }
 0x471   :  { %5836 = vst [vmem:[#allocation118_spill] sm:$0xff] %v4506_v32 }
 0x472   :  { %v4495_v0 = vpop.permute.xlu1 %1857  ;;  %v4497_v55 = vpop.permute.xlu0 %1855  ;;  %vm4517_vm4 = vcmp.le.f32.partialorder %v5838_v61, %v3716_v26  ;;  %v4536_v26 = vld [vmem:[#allocation2 + $0xa8] sm:$0xff] }
 0x473   :  { %5834 = vst [vmem:[#allocation116_spill] sm:$0xff] %v4497_v55  ;;  %v5840_v30 = vsel %vm4517_vm4, 4294967295, %v5839_v30  ;;  %vm1406_vm1 = vmor %vm4517_vm4, %vm1390_vm2  ;;  %v4527_v55 = vld [vmem:[#allocation2 + $0xe8] sm:$0xff] }
 0x474   :  { %5841 = vst [vmem:[#allocation120_spill] sm:$0xff] %v4527_v55  ;;  %vm1422_vm14 = vmxor %vm1406_vm1, %vm5619_vm3  ;;  %v4538_v61 = vld [vmem:[#allocation2 + $0x68] sm:$0xff] }
 0x475   :  { %2275 = vrot.lane.b32.xlu2 %v4499_v15, %s2839_s0  ;;  %vm4547_vm4 = vmand %vm1422_vm14, %vm1582_vm11  ;;  %vm1396_vm11 = vcmp.ne.s32.totalorder %v4281_v20, 0  ;;  %v5850_v20 = vand.u32 2147483647, %v3564_v12 }
 0x477   :  { %v4503_v23 = vpop.permute.xlu2 %2061 }
 0x478   :  { %2267 = vrot.lane.b32.xlu1 %v4506_v32, %s2839_s0  ;;  %2259 = vrot.lane.b32.xlu0 %v4508_v40, %s2839_s0  ;;  %v5842_v32 = vand.u32 2147483647, %v3611_v22  ;;  %v5843_v40 = vmov 0  ;;  %v1806_v22 = vsel %vm4547_vm4, %v4387_v8, %v4163_v58  ;;  %v5851_v58 = vmov 0 }
 0x47a   :  { %v4523_v56 = vpop.permute.xlu1 %1863  ;;  %v4525_v15 = vpop.permute.xlu0 %1861  ;;  %vm4543_vm2 = vcmp.le.f32.partialorder %v5842_v32, %v3736_v21  ;;  %v5847_v32 = vand.u32 2147483647, %v3627_v19  ;;  %v5853_v19 = vmov 0 }
 0x47b   :  { %v5844_v40 = vsel %vm4543_vm2, 4294967295, %v5843_v40  ;;  %vm1409_vm1 = vmor %vm4543_vm2, %vm1393_vm0  ;;  %vm1389_vm0 = vcmp.ne.s32.totalorder %v4291_v27, 0  ;;  %vm1585_vm2 = vcmp.ne.s32.totalorder %v4142_v57, 0  ;;  %v4594_v27 = vld [vmem:[#allocation2 + $0x90] sm:$0xff] }
 0x47c   :  { %vm1425_vm14 = vmxor %vm1409_vm1, %vm5619_vm3  ;;  %vm4571_vm13 = vcmp.le.f32.partialorder %v5847_v32, %v3758_v50  ;;  %vm4584_vm1 = vcmp.le.f32.partialorder %v5850_v20, %v3613_v42  ;;  %v4592_v50 = vld [vmem:[#allocation2 + $0xd0] sm:$0xff]  ;;  %v5875_v32 = vld [vmem:[#allocation22_spill] sm:$0xff] }
 0x47d   :  { %2281 = vrot.lane.b32.xlu2 %v4527_v55, %s2839_s0  ;;  %v5849_v44 = vsel %vm4571_vm13, 4294967295, %v5848_v44  ;;  %vm1412_vm15 = vmor %vm4571_vm13, %vm1396_vm11  ;;  %v5852_v58 = vsel %vm4584_vm1, 4294967295, %v5851_v58  ;;  %vm5855_vm11 = vmmov 1   ;;  %v5876_v20 = vld [vmem:[#allocation12_spill] sm:$0xff]  ;;  %v5978_v55 = vld [vmem:[#allocation75_spill] sm:$0xff] }
 0x47e   :  { %vm4588_vm3 = vmand %vm1425_vm14, %vm1585_vm2  ;;  %vm1399_vm2 = vcmp.ne.s32.totalorder %v4299_v16, 0  ;;  %vm1588_vm14 = vcmp.ne.s32.totalorder %v4161_v41, 0  ;;  %v5857_v16 = vmov 0  ;;  %v5867_v41 = vmov 0 }
 0x47f   :  { %v4532_v11 = vpop.permute.xlu2 %2067  ;;  %v5854_v19 = vsel %vm4588_vm3, 4294967295, %v5853_v19  ;;  %vm1405_vm8 = vmor %vm4584_vm1, %vm1389_vm0  ;;  %v1809_v12 = vsel %vm4588_vm3, %v4401_v5, %v4206_v4  ;;  %vm1391_vm1 = vcmp.ne.s32.totalorder %v4307_v25, 0  ;;  %v5859_v5 = vmov 0  ;;  %v5941_v25 = vld [vmem:[#allocation25_spill] sm:$0xff] }
 0x480   :  { %2273 = vrot.lane.b32.xlu1 %v4536_v26, %s2839_s0  ;;  %2265 = vrot.lane.b32.xlu0 %v4538_v61, %s2839_s0  ;;  %vm1428_vm13 = vmxor %vm1412_vm15, %vm5855_vm11 }
 0x481   :  { %vm1421_vm0 = vmxor %vm1405_vm8, %vm5855_vm11 }
 0x482   :  { %v4561_v21 = vpop.permute.xlu1 %2047  ;;  %v4563_v53 = vpop.permute.xlu0 %1867  ;;  %vm4623_vm10 = vmand %vm1428_vm13, %vm1588_vm14  ;;  %vm4647_vm14 = vcmp.le.f32.partialorder %v5866_v3, %v3629_v18  ;;  %v5885_v3 = vld [vmem:[#allocation9_spill] sm:$0xff] }
 0x483   :  { %v5860_v5 = vsel %vm4623_vm10, 4294967295, %v5859_v5  ;;  %vm4640_vm13 = vmand %vm1421_vm0, %vm1581_vm12  ;;  %v5868_v41 = vsel %vm4647_vm14, 4294967295, %v5867_v41  ;;  %v1812_v59 = vsel %vm4623_vm10, %v4413_v37, %v4218_v10  ;;  %v5872_v37 = vld [vmem:[#allocation88_spill] sm:$0xff] }
 0x484   :  { %vm1408_vm12 = vmor %vm4647_vm14, %vm1392_vm7  ;;  %vm1591_vm7 = vcmp.ne.s32.totalorder %v4170_v48, 0  ;;  %vm1395_vm6 = vcmp.ne.s32.totalorder %v5872_v37, 0 }
 0x485   :  { %1903 = vrot.lane.b32.xlu2 %v1806_v22, %s2842_s15  ;;  %v5856_v22 = vand.u32 2147483647, %v3643_v29  ;;  %v5861_v29 = vand.u32 2147483647, %v3586_v28  ;;  %v1805_v28 = vsel %vm4640_vm13, %v4335_v1, %v4183_v60  ;;  %v5871_v60 = vld [vmem:[#allocation63_spill] sm:$0xff] }
 0x486   :  { %vm1584_vm14 = vcmp.ne.s32.totalorder %v5871_v60, 0 }
 0x487   :  { %v4576_v8 = vpop.permute.xlu2 %2073  ;;  %vm4618_vm15 = vcmp.le.f32.partialorder %v5856_v22, %v3772_v36  ;;  %vm4636_vm9 = vcmp.le.f32.partialorder %v5861_v29, %v3705_v39  ;;  %v5862_v36 = vmov 0  ;;  %v5869_v39 = vmov 0  ;;  %v5884_v29 = vld [vmem:[#allocation16_spill] sm:$0xff] }
 0x488   :  { %2279 = vrot.lane.b32.xlu1 %v4592_v50, %s2839_s0  ;;  %2271 = vrot.lane.b32.xlu0 %v4594_v27, %s2839_s0  ;;  %v5858_v16 = vsel %vm4618_vm15, 4294967295, %v5857_v16  ;;  %vm1415_vm8 = vmor %vm4618_vm15, %vm1399_vm2  ;;  %v5863_v36 = vsel %vm4636_vm9, 4294967295, %v5862_v36 }
 0x489   :  { %vm1407_vm2 = vmor %vm4636_vm9, %vm1391_vm1  ;;  %vm1583_vm9 = vcmp.ne.s32.totalorder %v3982_v7, 0  ;;  %v5878_v7 = vmov 0 }
 0x48a   :  { %v4608_v42 = vpop.permute.xlu1 %2053  ;;  %v4610_v57 = vpop.permute.xlu0 %2045  ;;  %vm1431_vm0 = vmxor %vm1415_vm8, %vm5855_vm11  ;;  %vm1394_vm8 = vcmp.ne.s32.totalorder %v4329_v43, 0  ;;  %v5881_v43 = vld [vmem:[#allocation85_spill] sm:$0xff] }
 0x48b   :  { %vm1423_vm15 = vmxor %vm1407_vm2, %vm5855_vm11 }
 0x48c   :  { %vm1424_vm1 = vmxor %vm1408_vm12, %vm5855_vm11 }
 0x48d   :  { %1909 = vrot.lane.b32.xlu2 %v1809_v12, %s2842_s15  ;;  %vm4679_vm2 = vmand %vm1431_vm0, %vm1591_vm7  ;;  %v5877_v12 = vand.u32 2147483647, %v5876_v20  ;;  %vm1402_vm0 = vcmp.ne.s32.totalorder %v5881_v43, 0  ;;  %v5890_v20 = vld [vmem:[#allocation18_spill] sm:$0xff]  ;;  %v5892_v43 = vmov 0 }
 0x48e   :  { %v5870_v39 = vsel %vm4679_vm2, 4294967295, %v5869_v39  ;;  %vm4685_vm5 = vmand %vm1423_vm15, %vm1583_vm9 }
 0x48f   :  { %v4631_v4 = vpop.permute.xlu2 %2111  ;;  %vm4694_vm12 = vcmp.le.f32.partialorder %v5877_v12, %v5875_v32  ;;  %vm4699_vm7 = vmand %vm1424_vm1, %vm1584_vm14  ;;  %v1807_v37 = vsel %vm4685_vm5, %v4389_v24, %v4194_v33  ;;  %v5889_v32 = vld [vmem:[#allocation26_spill] sm:$0xff]  ;;  %v5891_v12 = vand.u32 2147483647, %v5890_v20  ;;  %v1815_v24 = vsel %vm4679_vm2, %v4425_v62, %v4234_v6  ;;  %v5894_v33 = vld [vmem:[#allocation47_spill] sm:$0xff] }
 0x490   :  { %1901 = vrot.lane.b32.xlu1 %v1805_v28, %s2842_s15  ;;  %2277 = vrot.lane.b32.xlu0 %v4657_v14, %s2839_s0  ;;  %v5879_v7 = vsel %vm4694_vm12, 4294967295, %v5878_v7  ;;  %v5886_v28 = vand.u32 2147483647, %v5885_v3  ;;  %vm1410_vm15 = vmor %vm4694_vm12, %vm1394_vm8  ;;  %v1808_v60 = vsel %vm4699_vm7, %v4347_v38, %v4189_v46  ;;  %v5897_v3 = vld [vmem:[#allocation64_spill] sm:$0xff]  ;;  %v5982_v62 = vld [vmem:[#allocation78_spill] sm:$0xff] }
 0x491   :  { %5880 = vst [vmem:[#allocation63_spill] sm:$0xff] %v5879_v7  ;;  %vm4723_vm14 = vcmp.le.f32.partialorder %v5891_v12, %v5889_v32  ;;  %vm1426_vm12 = vmxor %vm1410_vm15, %vm5855_vm11  ;;  %vm1587_vm15 = vcmp.ne.s32.totalorder %v5897_v3, 0  ;;  %v5903_v32 = vmov 0  ;;  %v5909_v12 = vld [vmem:[#allocation10_spill] sm:$0xff] }
 0x492   :  { %v4670_v1 = vpop.permute.xlu1 %2059  ;;  %v4672_v18 = vpop.permute.xlu0 %2051  ;;  %vm4706_vm9 = vcmp.le.f32.partialorder %v5886_v28, %v5884_v29  ;;  %v5893_v43 = vsel %vm4723_vm14, 4294967295, %v5892_v43  ;;  %vm1418_vm8 = vmor %vm4723_vm14, %vm1402_vm0  ;;  %vm1397_vm0 = vcmp.ne.s32.totalorder %v4345_v51, 0  ;;  %vm1398_vm14 = vcmp.ne.s32.totalorder %v4349_v54, 0  ;;  %v5900_v28 = vld [vmem:[#allocation23_spill] sm:$0xff]  ;;  %v5917_v29 = vld [vmem:[#allocation65_spill] sm:$0xff] }
 0x493   :  { %vm1411_vm1 = vmor %vm4706_vm9, %vm1395_vm6  ;;  %v5908_v51 = vld [vmem:[#allocation19_spill] sm:$0xff]  ;;  %v5910_v54 = vand.u32 2147483647, %v5909_v12 }
 0x494   :  { %vm1427_vm6 = vmxor %vm1411_vm1, %vm5855_vm11 }
 0x495   :  { %1915 = vrot.lane.b32.xlu2 %v1812_v59, %s2842_s15  ;;  %v5887_v59 = vmov 0  ;;  %vm4746_vm10 = vmxor %vm1418_vm8, %vm5855_vm11 }
 0x496   :  { %v5888_v59 = vsel %vm4706_vm9, 4294967295, %v5887_v59  ;;  %vm1586_vm9 = vcmp.ne.s32.totalorder %v5894_v33, 0  ;;  %vm4766_vm8 = vmand %vm1427_vm6, %vm1587_vm15 }
 0x497   :  { %v4689_v48 = vpop.permute.xlu2 %2117  ;;  %vm4753_vm2 = vmand %vm1426_vm12, %vm1586_vm9  ;;  %vm4773_vm12 = vcmp.le.f32.partialorder %v5910_v54, %v5908_v51  ;;  %v1811_v33 = vsel %vm4766_vm8, %v4357_v45, %v4199_v31  ;;  %v5921_v51 = vld [vmem:[#allocation15_spill] sm:$0xff]  ;;  %v5923_v54 = vmov 0 }
 0x498   :  { %1907 = vrot.lane.b32.xlu1 %v1808_v60, %s2842_s15  ;;  %1905 = vrot.lane.b32.xlu0 %v1807_v37, %s2842_s15  ;;  %v5901_v60 = vld [vmem:[#allocation14_spill] sm:$0xff]  ;;  %v1810_v3 = vsel %vm4753_vm2, %v4399_v63, %v4204_v9  ;;  %vm1414_vm15 = vmor %vm4773_vm12, %vm1398_vm14  ;;  %v5916_v9 = vld [vmem:[#allocation51_spill] sm:$0xff]  ;;  %v5922_v12 = vand.u32 2147483647, %v5921_v51 }
 0x499   :  { %v5902_v37 = vand.u32 2147483647, %v5901_v60  ;;  %v5914_v60 = vmov 0  ;;  %vm1430_vm14 = vmxor %vm1414_vm15, %vm5855_vm11 }
 0x49a   :  { %v4738_v46 = vpop.permute.xlu1 %2065  ;;  %v4740_v38 = vpop.permute.xlu0 %2057 }
 0x49b   :  { %vm4762_vm1 = vcmp.le.f32.partialorder %v5902_v37, %v5900_v28  ;;  %v5913_v28 = vld [vmem:[#allocation66_spill] sm:$0xff]  ;;  %v5918_v37 = vmov 0 }
 0x49c   :  { %v5904_v32 = vsel %vm4762_vm1, 4294967295, %v5903_v32  ;;  %vm1413_vm9 = vmor %vm4762_vm1, %vm1397_vm0  ;;  %vm1594_vm6 = vcmp.ne.s32.totalorder %v5913_v28, 0  ;;  %v5931_v28 = vmov 0 }
 0x49d   :  { %1921 = vrot.lane.b32.xlu2 %v1815_v24, %s2842_s15  ;;  %5905 = vst [vmem:[#allocation88_spill] sm:$0xff] %v5904_v32  ;;  %v5911_v24 = vmov 0  ;;  %vm4794_vm0 = vmand %vm4746_vm10, %vm1594_vm6  ;;  %vm1589_vm10 = vcmp.ne.s32.totalorder %v5916_v9, 0  ;;  %vm1400_vm6 = vcmp.ne.s32.totalorder %v4359_v17, 0  ;;  %v5928_v17 = vld [vmem:[#allocation20_spill] sm:$0xff]  ;;  %v5933_v9 = vld [vmem:[#allocation95_spill] sm:$0xff] }
 0x49e   :  { %v5912_v24 = vsel %vm4773_vm12, 4294967295, %v5911_v24  ;;  %v5915_v60 = vsel %vm4794_vm0, 4294967295, %v5914_v60  ;;  %vm1429_vm1 = vmxor %vm1413_vm9, %vm5855_vm11  ;;  %v1818_v31 = vsel %vm4794_vm0, %v4437_v35, %v4247_v49  ;;  %vm1590_vm12 = vcmp.ne.s32.totalorder %v5917_v29, 0  ;;  %v5920_v49 = vld [vmem:[#allocation24_spill] sm:$0xff] }
 0x49f   :  { %v4757_v6 = vpop.permute.xlu2 %2123  ;;  %vm1401_vm9 = vcmp.ne.s32.totalorder %v4361_v52, 0  ;;  %vm4813_vm3 = vmand %vm1429_vm1, %vm1589_vm10  ;;  %vm4822_vm15 = vcmp.le.f32.partialorder %v5922_v12, %v5920_v49  ;;  %v5934_v49 = vld [vmem:[#allocation73_spill] sm:$0xff]  ;;  %v5936_v12 = vld [vmem:[#allocation90_spill] sm:$0xff] }
 0x4a0   :  { %1913 = vrot.lane.b32.xlu1 %v1811_v33, %s2842_s15  ;;  %1911 = vrot.lane.b32.xlu0 %v1810_v3, %s2842_s15  ;;  %v5919_v37 = vsel %vm4813_vm3, 4294967295, %v5918_v37  ;;  %v5924_v54 = vsel %vm4822_vm15, 4294967295, %v5923_v54  ;;  %vm4826_vm0 = vmand %vm1430_vm14, %vm1590_vm12  ;;  %v5929_v3 = vld [vmem:[#allocation11_spill] sm:$0xff]  ;;  %v1813_v29 = vsel %vm4813_vm3, %v5933_v9, %v4220_v47  ;;  %v2093_v51 = vsel %vm4640_vm13, %v5934_v49, %v4610_v57 }
 0x4a1   :  { %5925 = vst [vmem:[#allocation22_spill] sm:$0xff] %v5924_v54  ;;  %v5930_v52 = vand.u32 2147483647, %v5929_v3  ;;  %vm1416_vm10 = vmor %vm4822_vm15, %vm1400_vm6  ;;  %v5935_v47 = vld [vmem:[#allocation55_spill] sm:$0xff]  ;;  %vm1403_vm15 = vcmp.ne.s32.totalorder %v5936_v12, 0 }
 0x4a2   :  { %v4803_v45 = vpop.permute.xlu1 %2071  ;;  %v4805_v63 = vpop.permute.xlu0 %2063  ;;  %vm1432_vm14 = vmxor %vm1416_vm10, %vm5855_vm11  ;;  %v5938_v3 = vld [vmem:[#allocation91_spill] sm:$0xff] }
 0x4a3   :  { %vm4833_vm1 = vcmp.le.f32.partialorder %v5930_v52, %v5928_v17  ;;  %v5937_v17 = vld [vmem:[#allocation67_spill] sm:$0xff]  ;;  %vm1404_vm10 = vcmp.ne.s32.totalorder %v5938_v3, 0  ;;  %v5955_v3 = vld [vmem:[#allocation69_spill] sm:$0xff] }
 0x4a4   :  { %v5932_v28 = vsel %vm4833_vm1, 4294967295, %v5931_v28  ;;  %vm1417_vm12 = vmor %vm4833_vm1, %vm1401_vm9  ;;  %vm1592_vm9 = vcmp.ne.s32.totalorder %v5935_v47, 0  ;;  %vm1593_vm1 = vcmp.ne.s32.totalorder %v5937_v17, 0  ;;  %v5950_v47 = vld [vmem:[#allocation13_spill] sm:$0xff]  ;;  %v5952_v17 = vmov 0  ;;  %v5993_v52 = vld [vmem:[#allocation87_spill] sm:$0xff] }
 0x4a5   :  { %1927 = vrot.lane.b32.xlu2 %v1818_v31, %s2842_s15  ;;  %v1814_v31 = vsel %vm4826_vm0, %v4369_v34, %v4213_v13  ;;  %vm1433_vm6 = vmxor %vm1417_vm12, %vm5855_vm11  ;;  %v5951_v12 = vand.u32 2147483647, %v5950_v47 }
 0x4a6   :  { %vm4864_vm3 = vmand %vm1432_vm14, %vm1592_vm9 }
 0x4a7   :  { %v4817_v35 = vpop.permute.xlu2 %2129  ;;  %vm4877_vm12 = vmand %vm1433_vm6, %vm1593_vm1 }
 0x4a8   :  { %1919 = vrot.lane.b32.xlu1 %v1814_v31, %s2842_s15  ;;  %1917 = vrot.lane.b32.xlu0 %v1813_v29, %s2842_s15  ;;  %v5942_v31 = vld [vmem:[#allocation17_spill] sm:$0xff]  ;;  %v5944_v29 = vmov 0 }
 0x4a9   :  { %v5943_v9 = vand.u32 2147483647, %v5942_v31  ;;  %v5956_v31 = vld [vmem:[#allocation92_spill] sm:$0xff] }
 0x4aa   :  { %v4856_v13 = vpop.permute.xlu1 %2109  ;;  %v2070_v34 = vpop.permute.xlu0 %2069 }
 0x4ab   :  { %vm4873_vm13 = vcmp.le.f32.partialorder %v5943_v9, %v5941_v25  ;;  %v1817_v25 = vsel %vm4877_vm12, %v5956_v31, %v5955_v3  ;;  %v5957_v9 = vld [vmem:[#allocation97_spill] sm:$0xff]  ;;  %v5960_v31 = vld [vmem:[#allocation68_spill] sm:$0xff] }
 0x4ac   :  { %v5945_v29 = vsel %vm4873_vm13, 4294967295, %v5944_v29  ;;  %vm1419_vm9 = vmor %vm4873_vm13, %vm1403_vm15  ;;  %v1816_v54 = vsel %vm4864_vm3, %v5957_v9, %v4232_v2  ;;  %v5959_v2 = vld [vmem:[#allocation59_spill] sm:$0xff]  ;;  %vm1596_vm13 = vcmp.ne.s32.totalorder %v5960_v31, 0  ;;  %v5967_v9 = vld [vmem:[#allocation93_spill] sm:$0xff] }
 0x4ad   :  { %2173 = vrot.lane.b32.xlu2 %v2093_v51, %s2842_s15  ;;  %5946 = vst [vmem:[#allocation12_spill] sm:$0xff] %v5945_v29  ;;  %v5949_v51 = vld [vmem:[#allocation21_spill] sm:$0xff]  ;;  %vm1435_vm6 = vmxor %vm1419_vm9, %vm5855_vm11  ;;  %v5969_v29 = vld [vmem:[#allocation99_spill] sm:$0xff] }
 0x4ae   :  { %vm4884_vm14 = vcmp.le.f32.partialorder %v5951_v12, %v5949_v51  ;;  %v5958_v51 = vld [vmem:[#allocation76_spill] sm:$0xff]  ;;  %v5970_v31 = vld [vmem:[#allocation79_spill] sm:$0xff] }
 0x4af   :  { %v4868_v57 = vpop.permute.xlu2 %2135  ;;  %v5953_v17 = vsel %vm4884_vm14, 4294967295, %v5952_v17  ;;  %vm1420_vm1 = vmor %vm4884_vm14, %vm1404_vm10  ;;  %v2096_v47 = vsel %vm4699_vm7, %v5958_v51, %v4672_v18  ;;  %vm1595_vm10 = vcmp.ne.s32.totalorder %v5959_v2, 0  ;;  %v5966_v18 = vld [vmem:[#allocation70_spill] sm:$0xff] }
 0x4b0   :  { %5954 = vst [vmem:[#allocation85_spill] sm:$0xff] %v5953_v17  ;;  %1925 = vrot.lane.b32.xlu1 %v1817_v25, %s2842_s15  ;;  %1923 = vrot.lane.b32.xlu0 %v1816_v54, %s2842_s15  ;;  %vm1436_vm15 = vmxor %vm1420_vm1, %vm5855_vm11  ;;  %v5973_v17 = vld [vmem:[#allocation72_spill] sm:$0xff]  ;;  %vm5985_vm11 = vnez %v5860_v5 }
 0x4b1   :  { %vm4913_vm14 = vmand %vm1435_vm6, %vm1595_vm10 }
 0x4b2   :  { %v4907_v12 = vpop.permute.xlu1 %2115  ;;  %v2076_v3 = vpop.permute.xlu0 %2075  ;;  %vm4919_vm9 = vmand %vm1436_vm15, %vm1596_vm13 }
 0x4b3   :  { %v1820_v51 = vsel %vm4919_vm9, %v5967_v9, %v5966_v18  ;;  %v5972_v9 = vld [vmem:[#allocation108_spill] sm:$0xff] }
 0x4b5   :  { %2179 = vrot.lane.b32.xlu2 %v2096_v47, %s2842_s15  ;;  %v5968_v47 = vld [vmem:[#allocation71_spill] sm:$0xff] }
 0x4b6   :  { %v1819_v2 = vsel %vm4913_vm14, %v5969_v29, %v5968_v47  ;;  %v2095_v29 = vsel %vm4685_vm5, %v5973_v17, %v5972_v9  ;;  %v5977_v17 = vld [vmem:[#allocation113_spill] sm:$0xff]  ;;  %vm5980_vm5 = vnez %v5854_v19 }
 0x4b7   :  { %v4917_v25 = vpop.permute.xlu2 %2257 }
 0x4b8   :  { %5963 = vst [vmem:[#allocation16_spill] sm:$0xff] %v4917_v25  ;;  %1931 = vrot.lane.b32.xlu1 %v1820_v51, %s2842_s15  ;;  %1929 = vrot.lane.b32.xlu0 %v1819_v2, %s2842_s15  ;;  %v2099_v25 = vsel %vm4766_vm8, %v5970_v31, %v4740_v38  ;;  %v5974_v51 = vld [vmem:[#allocation74_spill] sm:$0xff]  ;;  %v5979_v31 = vld [vmem:[#allocation77_spill] sm:$0xff] }
 0x4b9   :  { %v2094_v47 = vsel %vm4547_vm4, %v5974_v51, %v4561_v21  ;;  %v5975_v38 = vld [vmem:[#allocation82_spill] sm:$0xff]  ;;  %v2098_v21 = vsel %vm4753_vm2, %v5978_v55, %v5977_v17  ;;  %v2097_v9 = vsel %vm5980_vm5, %v5979_v31, %v4608_v42  ;;  %vm5983_vm4 = vnez %v5919_v37  ;;  %v5984_v42 = vld [vmem:[#allocation80_spill] sm:$0xff] }
 0x4ba   :  { %v4937_v32 = vpop.permute.xlu1 %2121  ;;  %v4939_v7 = vpop.permute.xlu0 %2113  ;;  %v2102_v20 = vsel %vm4826_vm0, %v5975_v38, %v4805_v63  ;;  %v5981_v63 = vld [vmem:[#allocation86_spill] sm:$0xff]  ;;  %v2101_v19 = vsel %vm5983_vm4, %v5982_v62, %v4503_v23  ;;  %v5988_v23 = vld [vmem:[#allocation81_spill] sm:$0xff]  ;;  %vm5990_vm2 = vnez %v5870_v39 }
 0x4bb   :  { %v2105_v33 = vsel %vm4877_vm12, %v5981_v63, %v2070_v34  ;;  %v5987_v34 = vld [vmem:[#allocation89_spill] sm:$0xff]  ;;  %v2104_v5 = vsel %vm4864_vm3, %v5988_v23, %v4532_v11  ;;  %vm5994_vm3 = vnez %v5915_v60  ;;  %v5033_v63 = vld [vmem:[#allocation2 + $0xf0] sm:$0xff] }
 0x4bc   :  { %v2108_v49 = vsel %vm4919_vm9, %v5987_v34, %v2076_v3  ;;  %v2106_v39 = vsel %vm5994_vm3, %v5993_v52, %v4803_v45  ;;  %v5998_v45 = vld [vmem:[#allocation101_spill] sm:$0xff]  ;;  %v6004_v34 = vld [vmem:[#allocation44_spill] sm:$0xff] }
 0x4bd   :  { %2185 = vrot.lane.b32.xlu2 %v2099_v25, %s2842_s15  ;;  %vm6005_vm8 = vnez %v6004_v34 }
 0x4bf   :  { %v4942_v18 = vpop.permute.xlu2 %2263 }
 0x4c0   :  { %5971 = vst [vmem:[#allocation9_spill] sm:$0xff] %v4942_v18  ;;  %2177 = vrot.lane.b32.xlu1 %v2095_v29, %s2842_s15  ;;  %2175 = vrot.lane.b32.xlu0 %v2094_v47, %s2842_s15  ;;  %v2100_v47 = vsel %vm5985_vm11, %v5984_v42, %v4670_v1  ;;  %v5989_v1 = vld [vmem:[#allocation83_spill] sm:$0xff]  ;;  %v6040_v18 = vld [vmem:[#allocation58_spill] sm:$0xff] }
 0x4c1   :  { %v2103_v37 = vsel %vm5990_vm2, %v5989_v1, %v4738_v46  ;;  %vm6041_vm11 = vnez %v6040_v18 }
 0x4c2   :  { %v4958_v25 = vpop.permute.xlu1 %2127  ;;  %v4960_v2 = vpop.permute.xlu0 %2119 }
 0x4c5   :  { %2191 = vrot.lane.b32.xlu2 %v2102_v20, %s2842_s15 }
 0x4c7   :  { %v4963_v10 = vpop.permute.xlu2 %2269 }
 0x4c8   :  { %5976 = vst [vmem:[#allocation26_spill] sm:$0xff] %v4963_v10  ;;  %2183 = vrot.lane.b32.xlu1 %v2098_v21, %s2842_s15  ;;  %2181 = vrot.lane.b32.xlu0 %v2097_v9, %s2842_s15  ;;  %v5992_v21 = vld [vmem:[#allocation84_spill] sm:$0xff]  ;;  %v6029_v10 = vld [vmem:[#allocation50_spill] sm:$0xff] }
 0x4c9   :  { %v2107_v11 = vsel %vm4913_vm14, %v5992_v21, %v4576_v8  ;;  %v6009_v21 = vld [vmem:[#allocation48_spill] sm:$0xff]  ;;  %vm6030_vm10 = vnez %v6029_v10 }
 0x4ca   :  { %v4978_v29 = vpop.permute.xlu1 %2133  ;;  %v4980_v51 = vpop.permute.xlu0 %2125  ;;  %vm6010_vm0 = vnez %v6009_v21 }
 0x4cd   :  { %2197 = vrot.lane.b32.xlu2 %v2105_v33, %s2842_s15  ;;  %v5999_v33 = vld [vmem:[#allocation41_spill] sm:$0xff] }
 0x4ce   :  { %vm6000_vm7 = vnez %v5999_v33 }
 0x4cf   :  { %v4991_v38 = vpop.permute.xlu2 %2275 }
 0x4d0   :  { %5986 = vst [vmem:[#allocation18_spill] sm:$0xff] %v4991_v38  ;;  %2189 = vrot.lane.b32.xlu1 %v2101_v19, %s2842_s15  ;;  %2187 = vrot.lane.b32.xlu0 %v2100_v47, %s2842_s15  ;;  %v6003_v47 = vld [vmem:[#allocation105_spill] sm:$0xff]  ;;  %v6020_v38 = vld [vmem:[#allocation94_spill] sm:$0xff] }
 0x4d2   :  { %v4998_v20 = vpop.permute.xlu1 %2139  ;;  %v5000_v17 = vpop.permute.xlu0 %2131 }
 0x4d5   :  { %2203 = vrot.lane.b32.xlu2 %v2108_v49, %s2842_s15 }
 0x4d7   :  { %v5013_v3 = vpop.permute.xlu2 %2281 }
 0x4d8   :  { %2195 = vrot.lane.b32.xlu1 %v2104_v5, %s2842_s15  ;;  %2193 = vrot.lane.b32.xlu0 %v2103_v37, %s2842_s15  ;;  %5991 = vst [vmem:[#allocation47_spill] sm:$0xff] %v5013_v3  ;;  %v6008_v37 = vld [vmem:[#allocation110_spill] sm:$0xff] }
 0x4da   :  { %v5015_v22 = vpop.permute.xlu1 %2255  ;;  %v5017_v55 = vpop.permute.xlu0 %2137 }
 0x4df   :  { %v1904_v9 = vpop.permute.xlu2 %1903 }
 0x4e0   :  { %2201 = vrot.lane.b32.xlu1 %v2107_v11, %s2842_s15  ;;  %2199 = vrot.lane.b32.xlu0 %v2106_v39, %s2842_s15  ;;  %v1950_v62 = vsel %vm6000_vm7, %v5998_v45, %v1904_v9  ;;  %v6012_v45 = vld [vmem:[#allocation102_spill] sm:$0xff] }
 0x4e2   :  { %v5029_v46 = vpop.permute.xlu1 %2261  ;;  %v5031_v31 = vpop.permute.xlu0 %2253 }
 0x4e3   :  { %5995 = vst [vmem:[#allocation64_spill] sm:$0xff] %v5029_v46 }
 0x4e7   :  { %v1910_v60 = vpop.permute.xlu2 %1909 }
 0x4e8   :  { %2283 = vrot.lane.b32.xlu0 %v5033_v63, %s2839_s0  ;;  %v1953_v49 = vsel %vm6005_vm8, %v6003_v47, %v1910_v60  ;;  %v6015_v47 = vld [vmem:[#allocation52_spill] sm:$0xff] }
 0x4e9   :  { %vm6016_vm12 = vnez %v6015_v47 }
 0x4ea   :  { %v5037_v8 = vpop.permute.xlu1 %2267  ;;  %v5039_v54 = vpop.permute.xlu0 %2259 }
 0x4eb   :  { %5996 = vst [vmem:[#allocation23_spill] sm:$0xff] %v5037_v8 }
 0x4ec   :  { %5997 = vst [vmem:[#allocation14_spill] sm:$0xff] %v5039_v54 }
 0x4ef   :  { %v1916_v23 = vpop.permute.xlu2 %1915 }
 0x4f0   :  { %1983 = vrot.lane.b32.xlu0 %v1950_v62, %s2839_s0  ;;  %v1956_v11 = vsel %vm6010_vm0, %v6008_v37, %v1916_v23  ;;  %v6013_v62 = vld [vmem:[#allocation45_spill] sm:$0xff]  ;;  %v6017_v37 = vld [vmem:[#allocation106_spill] sm:$0xff] }
 0x4f1   :  { %vm6014_vm13 = vnez %v6013_v62 }
 0x4f2   :  { %v5045_v19 = vpop.permute.xlu1 %2273  ;;  %v5047_v42 = vpop.permute.xlu0 %2265 }
 0x4f3   :  { %6001 = vst [vmem:[#allocation19_spill] sm:$0xff] %v5045_v19 }
 0x4f4   :  { %6002 = vst [vmem:[#allocation10_spill] sm:$0xff] %v5047_v42  ;;  %v6035_v42 = vld [vmem:[#allocation54_spill] sm:$0xff] }
 0x4f5   :  { %vm6036_vm5 = vnez %v6035_v42 }
 0x4f7   :  { %v1922_v52 = vpop.permute.xlu2 %1921 }
 0x4f8   :  { %1989 = vrot.lane.b32.xlu0 %v1953_v49, %s2839_s0  ;;  %v1959_v49 = vsel %vm6016_vm12, %v4495_v0, %v1922_v52 }
 0x4fa   :  { %v5053_v5 = vpop.permute.xlu1 %2279  ;;  %v5055_v1 = vpop.permute.xlu0 %2271 }
 0x4fb   :  { %6006 = vst [vmem:[#allocation66_spill] sm:$0xff] %v5053_v5 }
 0x4fc   :  { %6007 = vst [vmem:[#allocation51_spill] sm:$0xff] %v5055_v1 }
 0x4ff   :  { %v1928_v19 = vpop.permute.xlu2 %1927 }
 0x500   :  { %1995 = vrot.lane.b32.xlu0 %v1956_v11, %s2839_s0  ;;  %v6018_v11 = vld [vmem:[#allocation49_spill] sm:$0xff] }
 0x501   :  { %vm6019_vm14 = vnez %v6018_v11 }
 0x502   :  { %v1902_v39 = vpop.permute.xlu1 %1901  ;;  %v5061_v9 = vpop.permute.xlu0 %2277 }
 0x503   :  { %6011 = vst [vmem:[#allocation65_spill] sm:$0xff] %v5061_v9  ;;  %v1949_v60 = vsel %vm6014_vm13, %v6012_v45, %v1902_v39  ;;  %v6021_v9 = vld [vmem:[#allocation46_spill] sm:$0xff]  ;;  %v6023_v39 = vld [vmem:[#allocation56_spill] sm:$0xff] }
 0x504   :  { %1981 = vrot.lane.b32.xlu2 %v1949_v60, %s2839_s0  ;;  %vm6022_vm1 = vnez %v6021_v9  ;;  %vm6024_vm6 = vnez %v6023_v39  ;;  %v6025_v60 = vld [vmem:[#allocation111_spill] sm:$0xff] }
 0x505   :  { %v1962_v0 = vsel %vm6024_vm6, %v4523_v56, %v1928_v19  ;;  %v6032_v56 = vld [vmem:[#allocation57_spill] sm:$0xff] }
 0x506   :  { %vm6033_vm9 = vnez %v6032_v56  ;;  %v6049_v56 = vld [vmem:[#allocation109_spill] sm:$0xff] }
 0x508   :  { %2001 = vrot.lane.b32.xlu0 %v1959_v49, %s2839_s0  ;;  %v6026_v49 = vld [vmem:[#allocation53_spill] sm:$0xff] }
 0x509   :  { %vm6027_vm15 = vnez %v6026_v49  ;;  %v6047_v49 = vld [vmem:[#allocation115_spill] sm:$0xff] }
 0x50a   :  { %v1908_v3 = vpop.permute.xlu1 %1907  ;;  %v1906_v23 = vpop.permute.xlu0 %1905 }
 0x50b   :  { %v1952_v5 = vsel %vm6019_vm14, %v6017_v37, %v1908_v3  ;;  %v1951_v1 = vsel %vm6022_vm1, %v6020_v38, %v1906_v23  ;;  %v6028_v37 = vld [vmem:[#allocation96_spill] sm:$0xff] }
 0x50c   :  { %1987 = vrot.lane.b32.xlu2 %v1952_v5, %s2839_s0  ;;  %1985 = vrot.lane.b32.xlu1 %v1951_v1, %s2839_s0  ;;  %v6031_v23 = vld [vmem:[#allocation116_spill] sm:$0xff] }
 0x510   :  { %2007 = vrot.lane.b32.xlu0 %v1962_v0, %s2839_s0  ;;  %v6034_v0 = vld [vmem:[#allocation98_spill] sm:$0xff] }
 0x512   :  { %v1914_v52 = vpop.permute.xlu1 %1913  ;;  %v1912_v45 = vpop.permute.xlu0 %1911 }
 0x513   :  { %v1955_v3 = vsel %vm6027_vm15, %v6025_v60, %v1914_v52  ;;  %v1954_v38 = vsel %vm6030_vm10, %v6028_v37, %v1912_v45  ;;  %v2174_v60 = vpop.permute.xlu2 %2173 }
 0x514   :  { %1993 = vrot.lane.b32.xlu2 %v1955_v3, %s2839_s0  ;;  %1991 = vrot.lane.b32.xlu1 %v1954_v38, %s2839_s0  ;;  %v6037_v3 = vld [vmem:[#allocation60_spill] sm:$0xff] }
 0x515   :  { %vm6038_vm4 = vnez %v6037_v3  ;;  %v6039_v38 = vld [vmem:[#allocation100_spill] sm:$0xff] }
 0x51a   :  { %v1920_v5 = vpop.permute.xlu1 %1919  ;;  %v1918_v1 = vpop.permute.xlu0 %1917 }
 0x51b   :  { %v1958_v19 = vsel %vm6033_vm9, %v6031_v23, %v1920_v5  ;;  %v1957_v8 = vsel %vm6036_vm5, %v6034_v0, %v1918_v1  ;;  %v6042_v23 = vld [vmem:[#allocation62_spill] sm:$0xff]  ;;  %v6045_v0 = vld [vmem:[#allocation61_spill] sm:$0xff] }
 0x51c   :  { %1999 = vrot.lane.b32.xlu2 %v1958_v19, %s2839_s0  ;;  %1997 = vrot.lane.b32.xlu1 %v1957_v8, %s2839_s0  ;;  %vm6043_vm2 = vnez %v6042_v23  ;;  %v6044_v19 = vld [vmem:[#allocation104_spill] sm:$0xff]  ;;  %vm6046_vm3 = vnez %v6045_v0 }
 0x522   :  { %v1926_v52 = vpop.permute.xlu1 %1925  ;;  %v1924_v45 = vpop.permute.xlu0 %1923 }
 0x523   :  { %v1961_v37 = vsel %vm6038_vm4, %v4525_v15, %v1926_v52  ;;  %v1960_v54 = vsel %vm6041_vm11, %v6039_v38, %v1924_v45  ;;  %v2180_v15 = vpop.permute.xlu2 %2179 }
 0x524   :  { %2005 = vrot.lane.b32.xlu2 %v1961_v37, %s2839_s0  ;;  %2003 = vrot.lane.b32.xlu1 %v1960_v54, %s2839_s0  ;;  %v2221_v54 = vsel %vm6014_vm13, %v4856_v13, %v2174_v60  ;;  %v2224_v13 = vsel %vm6019_vm14, %v4907_v12, %v2180_v15  ;;  %vm6054_vm13 = vnez %v5844_v40  ;;  %vm6057_vm14 = vnez %v5849_v44 }
 0x52a   :  { %v1932_v5 = vpop.permute.xlu1 %1931  ;;  %v1930_v1 = vpop.permute.xlu0 %1929 }
 0x52b   :  { %v1964_v8 = vsel %vm6043_vm2, %v4563_v53, %v1932_v5  ;;  %v1963_v46 = vsel %vm6046_vm3, %v6044_v19, %v1930_v1  ;;  %v6051_v1 = vld [vmem:[#allocation119_spill] sm:$0xff] }
 0x52c   :  { %2011 = vrot.lane.b32.xlu2 %v1964_v8, %s2839_s0  ;;  %2009 = vrot.lane.b32.xlu1 %v1963_v46, %s2839_s0  ;;  %v2186_v46 = vpop.permute.xlu2 %2185  ;;  %v6053_v8 = vld [vmem:[#allocation114_spill] sm:$0xff] }
 0x52d   :  { %v2227_v12 = vsel %vm6027_vm15, %v4937_v32, %v2186_v46  ;;  %vm6060_vm15 = vnez %v5932_v28 }
 0x532   :  { %v2178_v52 = vpop.permute.xlu1 %2177  ;;  %v2176_v45 = vpop.permute.xlu0 %2175 }
 0x533   :  { %v2223_v37 = vsel %vm6022_vm1, %v4939_v7, %v2178_v52  ;;  %v2222_v53 = vsel %vm6000_vm7, %v4631_v4, %v2176_v45  ;;  %vm6048_vm7 = vnez %v5852_v58  ;;  %v6056_v45 = vld [vmem:[#allocation118_spill] sm:$0xff]  ;;  %vm6058_vm1 = vnez %v5912_v24 }
 0x534   :  { %2321 = vrot.lane.b32.xlu0 %v2223_v37, %s2839_s0  ;;  %2317 = vrot.lane.b32.xlu1 %v2221_v54, %s2839_s0  ;;  %v2192_v33 = vpop.permute.xlu2 %2191 }
 0x535   :  { %2319 = vrot.lane.b32.xlu2 %v2222_v53, %s2839_s0  ;;  %v2230_v32 = vsel %vm6033_vm9, %v4958_v25, %v2192_v33  ;;  %vm6063_vm9 = vnez %v5893_v43 }
 0x53a   :  { %v2184_v38 = vpop.permute.xlu1 %2183  ;;  %v2182_v5 = vpop.permute.xlu0 %2181 }
 0x53b   :  { %v2226_v7 = vsel %vm6030_vm10, %v4960_v2, %v2184_v38  ;;  %v2225_v4 = vsel %vm6005_vm8, %v4689_v48, %v2182_v5  ;;  %vm6050_vm8 = vnez %v5840_v30  ;;  %vm6062_vm10 = vnez %v5863_v36 }
 0x53c   :  { %2327 = vrot.lane.b32.xlu0 %v2226_v7, %s2839_s0  ;;  %2323 = vrot.lane.b32.xlu1 %v2224_v13, %s2839_s0  ;;  %v2198_v42 = vpop.permute.xlu2 %2197  ;;  %v6061_v7 = vld [vmem:[#allocation103_spill] sm:$0xff] }
 0x53d   :  { %2325 = vrot.lane.b32.xlu2 %v2225_v4, %s2839_s0  ;;  %v2233_v25 = vsel %vm6038_vm4, %v4978_v29, %v2198_v42  ;;  %v6073_v42 = vld [vmem:[#allocation22_spill] sm:$0xff] }
 0x542   :  { %v2190_v9 = vpop.permute.xlu1 %2189  ;;  %v2188_v62 = vpop.permute.xlu0 %2187 }
 0x543   :  { %v2229_v2 = vsel %vm6036_vm5, %v4980_v51, %v2190_v9  ;;  %v2228_v48 = vsel %vm6010_vm0, %v4757_v6, %v2188_v62  ;;  %vm6052_vm0 = vnez %v5868_v41  ;;  %v6064_v62 = vld [vmem:[#allocation85_spill] sm:$0xff] }
 0x544   :  { %2333 = vrot.lane.b32.xlu0 %v2229_v2, %s2839_s0  ;;  %2329 = vrot.lane.b32.xlu1 %v2227_v12, %s2839_s0  ;;  %vm6065_vm5 = vnez %v6064_v62  ;;  %v6066_v12 = vld [vmem:[#allocation107_spill] sm:$0xff] }
 0x545   :  { %2331 = vrot.lane.b32.xlu2 %v2228_v48, %s2839_s0  ;;  %v6067_v2 = vld [vmem:[#allocation63_spill] sm:$0xff] }
 0x546   :  { %vm6068_vm4 = vnez %v6067_v2 }
 0x54a   :  { %v2196_v10 = vpop.permute.xlu1 %2195  ;;  %v2194_v34 = vpop.permute.xlu0 %2193 }
 0x54b   :  { %v2232_v51 = vsel %vm6041_vm11, %v5000_v17, %v2196_v10  ;;  %v2231_v6 = vsel %vm6016_vm12, %v4817_v35, %v2194_v34  ;;  %v2204_v17 = vpop.permute.xlu2 %2203  ;;  %vm6055_vm12 = vnez %v5888_v59  ;;  %v6069_v34 = vld [vmem:[#allocation112_spill] sm:$0xff] }
 0x54c   :  { %2339 = vrot.lane.b32.xlu0 %v2232_v51, %s2839_s0  ;;  %2335 = vrot.lane.b32.xlu1 %v2230_v32, %s2839_s0  ;;  %v2236_v29 = vsel %vm6043_vm2, %v4998_v20, %v2204_v17  ;;  %v6070_v32 = vld [vmem:[#allocation88_spill] sm:$0xff]  ;;  %vm6074_vm2 = vnez %v6073_v42 }
 0x54d   :  { %2337 = vrot.lane.b32.xlu2 %v2231_v6, %s2839_s0  ;;  %vm6071_vm11 = vnez %v6070_v32  ;;  %v6072_v6 = vld [vmem:[#allocation117_spill] sm:$0xff]  ;;  %v6091_v42 = vld [vmem:[#allocation32_spill] sm:$0xff] }
 0x552   :  { %v2202_v21 = vpop.permute.xlu1 %2201  ;;  %v2200_v11 = vpop.permute.xlu0 %2199 }
 0x553   :  { %v2235_v18 = vsel %vm6046_vm3, %v5017_v55, %v2202_v21  ;;  %v2234_v35 = vsel %vm6024_vm6, %v4868_v57, %v2200_v11  ;;  %vm6059_vm6 = vnez %v5858_v16 }
 0x554   :  { %2345 = vrot.lane.b32.xlu0 %v2235_v18, %s2839_s0  ;;  %2341 = vrot.lane.b32.xlu1 %v2233_v25, %s2839_s0  ;;  %v6075_v25 = vld [vmem:[#allocation120_spill] sm:$0xff] }
 0x555   :  { %2343 = vrot.lane.b32.xlu2 %v2234_v35, %s2839_s0  ;;  %v6076_v18 = vld [vmem:[#allocation12_spill] sm:$0xff] }
 0x556   :  { %vm6077_vm3 = vnez %v6076_v18 }
 0x55a   :  { %v5175_v47 = vpop.permute.xlu0 %2283 }
 0x55c   :  { %2347 = vrot.lane.b32.xlu1 %v2236_v29, %s2839_s0 }
 0x55e   :  { %v1982_v55 = vpop.permute.xlu2 %1981 }
 0x55f   :  { %v2029_v57 = vsel %vm6048_vm7, %v6047_v49, %v1982_v55 }
 0x560   :  { %2397 = vrot.lane.b32.xlu2 %v2029_v57, %s2842_s15 }
 0x562   :  { %v1984_v39 = vpop.permute.xlu0 %1983 }
 0x563   :  { %v2030_v60 = vsel %vm6050_vm8, %v6049_v56, %v1984_v39  ;;  %v6078_v39 = vld [vmem:[#allocation16_spill] sm:$0xff] }
 0x564   :  { %2399 = vrot.lane.b32.xlu0 %v2030_v60, %s2842_s15 }
 0x566   :  { %v1988_v3 = vpop.permute.xlu2 %1987 }
 0x567   :  { %v2032_v20 = vsel %vm6052_vm0, %v6051_v1, %v1988_v3 }
 0x568   :  { %2403 = vrot.lane.b32.xlu2 %v2032_v20, %s2842_s15  ;;  %v6079_v20 = vld [vmem:[#allocation64_spill] sm:$0xff] }
 0x56a   :  { %v1990_v23 = vpop.permute.xlu0 %1989 }
 0x56b   :  { %v2033_v19 = vsel %vm6054_vm13, %v6053_v8, %v1990_v23 }
 0x56c   :  { %2405 = vrot.lane.b32.xlu0 %v2033_v19, %s2842_s15  ;;  %v6082_v19 = vld [vmem:[#allocation23_spill] sm:$0xff] }
 0x56e   :  { %v1994_v0 = vpop.permute.xlu2 %1993 }
 0x56f   :  { %v2035_v15 = vsel %vm6055_vm12, %v4538_v61, %v1994_v0 }
 0x570   :  { %2409 = vrot.lane.b32.xlu2 %v2035_v15, %s2842_s15  ;;  %v6083_v15 = vld [vmem:[#allocation10_spill] sm:$0xff] }
 0x572   :  { %v1996_v52 = vpop.permute.xlu0 %1995 }
 0x573   :  { %v2036_v54 = vsel %vm6057_vm14, %v6056_v45, %v1996_v52  ;;  %v6084_v52 = vld [vmem:[#allocation26_spill] sm:$0xff] }
 0x574   :  { %2411 = vrot.lane.b32.xlu0 %v2036_v54, %s2842_s15 }
 0x576   :  { %v2000_v37 = vpop.permute.xlu2 %1999 }
 0x577   :  { %v2038_v53 = vsel %vm6058_vm1, %v4594_v27, %v2000_v37 }
 0x578   :  { %2415 = vrot.lane.b32.xlu2 %v2038_v53, %s2842_s15  ;;  %v6085_v53 = vld [vmem:[#allocation19_spill] sm:$0xff] }
 0x57a   :  { %v2002_v46 = vpop.permute.xlu0 %2001 }
 0x57b   :  { %v2039_v61 = vsel %vm6059_vm6, %v4536_v26, %v2002_v46  ;;  %v6086_v46 = vld [vmem:[#allocation51_spill] sm:$0xff] }
 0x57c   :  { %2417 = vrot.lane.b32.xlu0 %v2039_v61, %s2842_s15  ;;  %v6087_v61 = vld [vmem:[#allocation18_spill] sm:$0xff] }
 0x57e   :  { %v2006_v38 = vpop.permute.xlu2 %2005  ;;  %v1986_v5 = vpop.permute.xlu1 %1985 }
 0x57f   :  { %v2041_v13 = vsel %vm6060_vm15, %v4657_v14, %v2006_v38  ;;  %v2031_v4 = vsel %vm6062_vm10, %v6061_v7, %v1986_v5 }
 0x580   :  { %2401 = vrot.lane.b32.xlu1 %v2031_v4, %s2842_s15  ;;  %2421 = vrot.lane.b32.xlu2 %v2041_v13, %s2842_s15  ;;  %v6088_v4 = vld [vmem:[#allocation66_spill] sm:$0xff] }
 0x582   :  { %v2008_v27 = vpop.permute.xlu0 %2007 }
 0x583   :  { %v2042_v26 = vsel %vm6063_vm9, %v4592_v50, %v2008_v27  ;;  %v6089_v27 = vld [vmem:[#allocation65_spill] sm:$0xff] }
 0x584   :  { %2423 = vrot.lane.b32.xlu0 %v2042_v26, %s2842_s15  ;;  %v6090_v26 = vld [vmem:[#allocation47_spill] sm:$0xff] }
 0x586   :  { %v2012_v33 = vpop.permute.xlu2 %2011  ;;  %v1992_v9 = vpop.permute.xlu1 %1991 }
 0x587   :  { %v2044_v14 = vsel %vm6065_vm5, %v5033_v63, %v2012_v33  ;;  %v2034_v48 = vsel %vm6068_vm4, %v6066_v12, %v1992_v9 }
 0x588   :  { %2407 = vrot.lane.b32.xlu1 %v2034_v48, %s2842_s15  ;;  %2427 = vrot.lane.b32.xlu2 %v2044_v14, %s2842_s15 }
 0x58e   :  { %v1998_v10 = vpop.permute.xlu1 %1997 }
 0x58f   :  { %v2037_v50 = vsel %vm6071_vm11, %v6069_v34, %v1998_v10  ;;  %v2320_v21 = vpop.permute.xlu2 %2319 }
 0x590   :  { %2413 = vrot.lane.b32.xlu1 %v2037_v50, %s2842_s15  ;;  %v2366_v49 = vsel %vm6050_vm8, %v5015_v22, %v2320_v21  ;;  %v6080_v22 = vld [vmem:[#allocation14_spill] sm:$0xff]  ;;  %v6092_v21 = vmov 0.0  }
 0x596   :  { %v2004_v51 = vpop.permute.xlu1 %2003 }
 0x597   :  { %v2040_v63 = vsel %vm6074_vm2, %v6072_v6, %v2004_v51  ;;  %v2326_v17 = vpop.permute.xlu2 %2325 }
 0x598   :  { %2419 = vrot.lane.b32.xlu1 %v2040_v63, %s2842_s15  ;;  %v2369_v30 = vsel %vm6054_vm13, %v6079_v20, %v2326_v17 }
 0x59e   :  { %v2010_v11 = vpop.permute.xlu1 %2009 }
 0x59f   :  { %v2043_v35 = vsel %vm6077_vm3, %v6075_v25, %v2010_v11  ;;  %v2332_v60 = vpop.permute.xlu2 %2331 }
 0x5a0   :  { %2425 = vrot.lane.b32.xlu1 %v2043_v35, %s2842_s15  ;;  %v2372_v40 = vsel %vm6057_vm14, %v6082_v19, %v2332_v60  ;;  %v6097_v19 = vld [vmem:[#allocation29_spill] sm:$0xff] }
 0x5a6   :  { %v2318_v29 = vpop.permute.xlu1 %2317  ;;  %v2322_v55 = vpop.permute.xlu0 %2321 }
 0x5a7   :  { %v2365_v57 = vsel %vm6048_vm7, %v5031_v31, %v2318_v29  ;;  %v2367_v56 = vsel %vm6062_vm10, %v6078_v39, %v2322_v55  ;;  %v6081_v31 = vld [vmem:[#allocation9_spill] sm:$0xff]  ;;  %v2338_v0 = vpop.permute.xlu2 %2337  ;;  %v6093_v29 = vld [vmem:[#allocation35_spill] sm:$0xff] }
 0x5a8   :  { %2479 = vrot.lane.b32.xlu1 %v2366_v49, %s2842_s15  ;;  %2477 = vrot.lane.b32.xlu0 %v2365_v57, %s2842_s15  ;;  %v2375_v44 = vsel %vm6059_vm6, %v6085_v53, %v2338_v0  ;;  %vm2562_vm10 = vcmp.ge.f32.partialorder %v6093_v29, 0.09 }
 0x5a9   :  { %2481 = vrot.lane.b32.xlu2 %v2367_v56, %s2842_s15 }
 0x5ae   :  { %v2324_v3 = vpop.permute.xlu1 %2323  ;;  %v2328_v1 = vpop.permute.xlu0 %2327 }
 0x5af   :  { %v2368_v58 = vsel %vm6052_vm0, %v6080_v22, %v2324_v3  ;;  %v2370_v36 = vsel %vm6068_vm4, %v6081_v31, %v2328_v1  ;;  %v2344_v5 = vpop.permute.xlu2 %2343  ;;  %vm2559_vm0 = vcmp.ge.f32.partialorder %v6091_v42, 0.09  ;;  %v6094_v3 = vld [vmem:[#allocation38_spill] sm:$0xff]  ;;  %v6095_v31 = vld [vmem:[#allocation27_spill] sm:$0xff] }
 0x5b0   :  { %2485 = vrot.lane.b32.xlu1 %v2369_v30, %s2842_s15  ;;  %2483 = vrot.lane.b32.xlu0 %v2368_v58, %s2842_s15  ;;  %v2378_v16 = vsel %vm6063_vm9, %v6088_v4, %v2344_v5  ;;  %v6100_v5 = vld [vmem:[#allocation31_spill] sm:$0xff] }
 0x5b1   :  { %2487 = vrot.lane.b32.xlu2 %v2370_v36, %s2842_s15 }
 0x5b6   :  { %v2330_v23 = vpop.permute.xlu1 %2329  ;;  %v2334_v8 = vpop.permute.xlu0 %2333 }
 0x5b7   :  { %v2371_v41 = vsel %vm6055_vm12, %v6083_v15, %v2330_v23  ;;  %v2373_v45 = vsel %vm6071_vm11, %v6084_v52, %v2334_v8  ;;  %vm2591_vm12 = vcmp.ge.f32.partialorder %v6091_v42, 0.01  ;;  %v6096_v23 = vld [vmem:[#allocation40_spill] sm:$0xff] }
 0x5b8   :  { %2491 = vrot.lane.b32.xlu1 %v2372_v40, %s2842_s15  ;;  %2489 = vrot.lane.b32.xlu0 %v2371_v41, %s2842_s15 }
 0x5b9   :  { %2493 = vrot.lane.b32.xlu2 %v2373_v45, %s2842_s15 }
 0x5ba   :  { %v5304_v9 = vpop.permute.xlu2 %2397 }
 0x5be   :  { %v2336_v54 = vpop.permute.xlu1 %2335  ;;  %v2340_v37 = vpop.permute.xlu0 %2339 }
 0x5bf   :  { %v2374_v59 = vsel %vm6058_vm1, %v6086_v46, %v2336_v54  ;;  %v2376_v38 = vsel %vm6074_vm2, %v6087_v61, %v2340_v37  ;;  %v6098_v54 = vld [vmem:[#allocation28_spill] sm:$0xff]  ;;  %v6099_v46 = vld [vmem:[#allocation43_spill] sm:$0xff] }
 0x5c0   :  { %2497 = vrot.lane.b32.xlu1 %v2375_v44, %s2842_s15  ;;  %2495 = vrot.lane.b32.xlu0 %v2374_v59, %s2842_s15 }
 0x5c1   :  { %2499 = vrot.lane.b32.xlu2 %v2376_v38, %s2842_s15 }
 0x5c2   :  { %v5311_v28 = vpop.permute.xlu2 %2403 }
 0x5c6   :  { %v2342_v13 = vpop.permute.xlu1 %2341  ;;  %v2346_v7 = vpop.permute.xlu0 %2345 }
 0x5c7   :  { %v2377_v24 = vsel %vm6060_vm15, %v6089_v27, %v2342_v13  ;;  %v2379_v33 = vsel %vm6077_vm3, %v6090_v26, %v2346_v7 }
 0x5c8   :  { %2503 = vrot.lane.b32.xlu1 %v2378_v16, %s2842_s15  ;;  %2501 = vrot.lane.b32.xlu0 %v2377_v24, %s2842_s15  ;;  %v6101_v24 = vld [vmem:[#allocation30_spill] sm:$0xff] }
 0x5c9   :  { %2505 = vrot.lane.b32.xlu2 %v2379_v33, %s2842_s15 }
 0x5ca   :  { %v5313_v12 = vpop.permute.xlu2 %2409 }
 0x5ce   :  { %v2348_v14 = vpop.permute.xlu1 %2347 }
 0x5cf   :  { %v2380_v43 = vsel %vm6065_vm5, %v5175_v47, %v2348_v14  ;;  %vm2594_vm5 = vcmp.ge.f32.partialorder %v6093_v29, 0.01  ;;  %v6102_v14 = vld [vmem:[#allocation34_spill] sm:$0xff] }
 0x5d0   :  { %2507 = vrot.lane.b32.xlu0 %v2380_v43, %s2842_s15 }
 0x5d2   :  { %v5315_v2 = vpop.permute.xlu2 %2415 }
 0x5d6   :  { %v2400_v48 = vpop.permute.xlu0 %2399 }
 0x5da   :  { %v5317_v10 = vpop.permute.xlu2 %2421 }
 0x5de   :  { %v5319_v32 = vpop.permute.xlu0 %2405 }
 0x5e2   :  { %v5321_v51 = vpop.permute.xlu2 %2427 }
 0x5e6   :  { %v5323_v6 = vpop.permute.xlu0 %2411 }
 0x5ee   :  { %v5329_v63 = vpop.permute.xlu0 %2417 }
 0x5f2   :  { %v2402_v34 = vpop.permute.xlu1 %2401 }
 0x5f3   :  { %vm2447_vm7 = vcmp.ge.f32.partialorder %v6091_v42, %v2402_v34 }
 0x5f6   :  { %v5338_v57 = vpop.permute.xlu0 %2423 }
 0x5fa   :  { %v2408_v50 = vpop.permute.xlu1 %2407 }
 0x5fb   :  { %vm2450_vm6 = vcmp.ge.f32.partialorder %v6093_v29, %v2408_v50 }
 0x602   :  { %v2414_v47 = vpop.permute.xlu1 %2413 }
 0x603   :  { %v2482_v62 = vpop.permute.xlu2 %2481  ;;  %vm2453_vm2 = vcmp.ge.f32.partialorder %v6094_v3, %v2414_v47 }
 0x604   :  { %vm2527_vm8 = vcmp.ge.f32.partialorder %v6091_v42, %v2482_v62  ;;  %v6104_v62 = vld [vmem:[#allocation37_spill] sm:$0xff] }
 0x605   :  { %vm2543_vm13 = vmand %vm2447_vm7, %vm2527_vm8  ;;  %vm2565_vm7 = vcmp.ge.f32.partialorder %v6094_v3, 0.09 }
 0x606   :  { %vm2575_vm14 = vmand %vm2543_vm13, %vm2559_vm0  ;;  %vm2597_vm0 = vcmp.ge.f32.partialorder %v6094_v3, 0.01 }
 0x607   :  { %vm2607_vm1 = vmand %vm2543_vm13, %vm2591_vm12 }
 0x608   :  { %v2623_v11 = vsel %vm2607_vm1, 0.5, %v6092_v21 }
 0x609   :  { %v2639_v25 = vsel %vm2575_vm14, 1.0, %v2623_v11  ;;  %vm2446_vm14 = vcmp.ge.f32.partialorder %v6095_v31, %v2400_v48 }
 0x60a   :  { %v2655_v18 = vpack.c.bf16 %v2639_v25, %v2639_v25  ;;  %v2420_v35 = vpop.permute.xlu1 %2419 }
 0x60b   :  { %v2488_v17 = vpop.permute.xlu2 %2487 }
 0x60c   :  { %2689 = vrot.lane.b32.xlu0 %v2655_v18, %s2845_s16  ;;  %vm2530_vm15 = vcmp.ge.f32.partialorder %v6093_v29, %v2488_v17 }
 0x60d   :  { %vm2546_vm9 = vmand %vm2450_vm6, %vm2530_vm15  ;;  %vm2558_vm6 = vcmp.ge.f32.partialorder %v6095_v31, 0.09 }
 0x60e   :  { %vm2578_vm4 = vmand %vm2546_vm9, %vm2562_vm10 }
 0x60f   :  { %vm2610_vm11 = vmand %vm2546_vm9, %vm2594_vm5  ;;  %vm2590_vm9 = vcmp.ge.f32.partialorder %v6095_v31, 0.01 }
 0x610   :  { %v2626_v55 = vsel %vm2610_vm11, 0.5, %v6092_v21 }
 0x611   :  { %v2642_v49 = vsel %vm2578_vm4, 1.0, %v2626_v55  ;;  %vm2456_vm4 = vcmp.ge.f32.partialorder %v6096_v23, %v2420_v35 }
 0x612   :  { %v2658_v39 = vpack.c.bf16 %v2642_v49, %v2642_v49  ;;  %v5340_v56 = vpop.permute.xlu1 %2425  ;;  %v6106_v49 = vld [vmem:[#allocation39_spill] sm:$0xff] }
 0x613   :  { %v2494_v60 = vpop.permute.xlu2 %2493 }
 0x614   :  { %2695 = vrot.lane.b32.xlu0 %v2658_v39, %s2845_s16  ;;  %vm2533_vm3 = vcmp.ge.f32.partialorder %v6094_v3, %v2494_v60 }
 0x615   :  { %vm2549_vm8 = vmand %vm2453_vm2, %vm2533_vm3  ;;  %vm2568_vm2 = vcmp.ge.f32.partialorder %v6096_v23, 0.09 }
 0x616   :  { %vm2581_vm13 = vmand %vm2549_vm8, %vm2565_vm7 }
 0x617   :  { %vm2613_vm12 = vmand %vm2549_vm8, %vm2597_vm0  ;;  %vm2600_vm8 = vcmp.ge.f32.partialorder %v6096_v23, 0.01 }
 0x618   :  { %v2629_v1 = vsel %vm2613_vm12, 0.5, %v6092_v21 }
 0x619   :  { %v2645_v20 = vsel %vm2581_vm13, 1.0, %v2629_v1  ;;  %vm2445_vm13 = vcmp.ge.f32.partialorder %v6097_v19, %v5304_v9 }
 0x61a   :  { %v2661_v30 = vpack.c.bf16 %v2645_v20, %v2645_v20  ;;  %v2480_v22 = vpop.permute.xlu1 %2479  ;;  %v2478_v58 = vpop.permute.xlu0 %2477 }
 0x61b   :  { %vm2526_vm1 = vcmp.ge.f32.partialorder %v6095_v31, %v2480_v22  ;;  %v2500_v36 = vpop.permute.xlu2 %2499  ;;  %vm2525_vm7 = vcmp.ge.f32.partialorder %v6097_v19, %v2478_v58 }
 0x61c   :  { %vm2542_vm15 = vmand %vm2446_vm14, %vm2526_vm1  ;;  %2701 = vrot.lane.b32.xlu0 %v2661_v30, %s2845_s16  ;;  %vm2536_vm10 = vcmp.ge.f32.partialorder %v6096_v23, %v2500_v36  ;;  %vm2557_vm14 = vcmp.ge.f32.partialorder %v6097_v19, 0.09 }
 0x61d   :  { %vm2574_vm5 = vmand %vm2542_vm15, %vm2558_vm6  ;;  %vm2589_vm6 = vcmp.ge.f32.partialorder %v6097_v19, 0.01 }
 0x61e   :  { %vm2606_vm11 = vmand %vm2542_vm15, %vm2590_vm9  ;;  %vm2449_vm9 = vcmp.ge.f32.partialorder %v6098_v54, %v5319_v32 }
 0x61f   :  { %v2622_v8 = vsel %vm2606_vm11, 0.5, %v6092_v21  ;;  %vm2552_vm3 = vmand %vm2456_vm4, %vm2536_vm10  ;;  %vm2561_vm4 = vcmp.ge.f32.partialorder %v6098_v54, 0.09 }
 0x620   :  { %v2638_v40 = vsel %vm2574_vm5, 1.0, %v2622_v8  ;;  %vm2584_vm0 = vmand %vm2552_vm3, %vm2568_vm2 }
 0x621   :  { %v2654_v0 = vpack.c.bf16 %v2638_v40, %v2638_v40  ;;  %vm2616_vm12 = vmand %vm2552_vm3, %vm2600_vm8  ;;  %vm2593_vm3 = vcmp.ge.f32.partialorder %v6098_v54, 0.01  ;;  %vm2459_vm8 = vcmp.ge.f32.partialorder %v6099_v46, %v5340_v56 }
 0x622   :  { %v2632_v15 = vsel %vm2616_vm12, 0.5, %v6092_v21  ;;  %vm2541_vm1 = vmand %vm2445_vm13, %vm2525_vm7  ;;  %v2486_v41 = vpop.permute.xlu1 %2485  ;;  %v2484_v52 = vpop.permute.xlu0 %2483  ;;  %vm2571_vm13 = vcmp.ge.f32.partialorder %v6099_v46, 0.09 }
 0x623   :  { %v2648_v45 = vsel %vm2584_vm0, 1.0, %v2632_v15  ;;  %vm2573_vm15 = vmand %vm2541_vm1, %vm2557_vm14  ;;  %vm2529_vm10 = vcmp.ge.f32.partialorder %v6098_v54, %v2486_v41  ;;  %v2506_v37 = vpop.permute.xlu2 %2505  ;;  %2687 = vrot.lane.b32.xlu2 %v2654_v0, %s2845_s16  ;;  %vm2528_vm14 = vcmp.ge.f32.partialorder %v6100_v5, %v2484_v52 }
 0x624   :  { %v2664_v53 = vpack.c.bf16 %v2648_v45, %v2648_v45  ;;  %vm2605_vm5 = vmand %vm2541_vm1, %vm2589_vm6  ;;  %vm2539_vm2 = vcmp.ge.f32.partialorder %v6099_v46, %v2506_v37  ;;  %vm2603_vm1 = vcmp.ge.f32.partialorder %v6099_v46, 0.01 }
 0x625   :  { %v2621_v44 = vsel %vm2605_vm5, 0.5, %v6092_v21  ;;  %vm2545_vm11 = vmand %vm2449_vm9, %vm2529_vm10  ;;  %vm2560_vm9 = vcmp.ge.f32.partialorder %v6100_v5, 0.09 }
 0x626   :  { %v2637_v59 = vsel %vm2573_vm15, 1.0, %v2621_v44  ;;  %vm2577_vm7 = vmand %vm2545_vm11, %vm2561_vm4  ;;  %2707 = vrot.lane.b32.xlu0 %v2664_v53, %s2845_s16  ;;  %vm2448_vm15 = vcmp.ge.f32.partialorder %v6100_v5, %v5311_v28 }
 0x627   :  { %v2653_v61 = vpack.c.bf16 %v2637_v59, %v2637_v59  ;;  %vm2609_vm0 = vmand %vm2545_vm11, %vm2593_vm3  ;;  %vm2592_vm11 = vcmp.ge.f32.partialorder %v6100_v5, 0.01  ;;  %vm2452_vm3 = vcmp.ge.f32.partialorder %v6101_v24, %v5323_v6  ;;  %v6103_v6 = vld [vmem:[#allocation33_spill] sm:$0xff] }
 0x628   :  { %v2625_v38 = vsel %vm2609_vm0, 0.5, %v6092_v21  ;;  %vm2555_vm12 = vmand %vm2459_vm8, %vm2539_vm2  ;;  %vm2564_vm8 = vcmp.ge.f32.partialorder %v6101_v24, 0.09 }
 0x629   :  { %v2641_v13 = vsel %vm2577_vm7, 1.0, %v2625_v38  ;;  %vm2587_vm6 = vmand %vm2555_vm12, %vm2571_vm13  ;;  %2685 = vrot.lane.b32.xlu1 %v2653_v61, %s2845_s16 }
 0x62a   :  { %v2657_v7 = vpack.c.bf16 %v2641_v13, %v2641_v13  ;;  %vm2619_vm10 = vmand %vm2555_vm12, %vm2603_vm1  ;;  %v2492_v4 = vpop.permute.xlu1 %2491  ;;  %v2490_v16 = vpop.permute.xlu0 %2489  ;;  %vm2596_vm12 = vcmp.ge.f32.partialorder %v6101_v24, 0.01  ;;  %vm2451_vm1 = vcmp.ge.f32.partialorder %v6102_v14, %v5313_v12 }
 0x62b   :  { %v2635_v27 = vsel %vm2619_vm10, 0.5, %v6092_v21  ;;  %vm2544_vm5 = vmand %vm2448_vm15, %vm2528_vm14  ;;  %vm2532_vm4 = vcmp.ge.f32.partialorder %v6101_v24, %v2492_v4  ;;  %vm2531_vm13 = vcmp.ge.f32.partialorder %v6102_v14, %v2490_v16  ;;  %vm2563_vm15 = vcmp.ge.f32.partialorder %v6102_v14, 0.09 }
 0x62c   :  { %v2651_v26 = vsel %vm2587_vm6, 1.0, %v2635_v27  ;;  %vm2576_vm2 = vmand %vm2544_vm5, %vm2560_vm9  ;;  %2693 = vrot.lane.b32.xlu2 %v2657_v7, %s2845_s16  ;;  %vm2595_vm9 = vcmp.ge.f32.partialorder %v6102_v14, 0.01 }
 0x62d   :  { %v2667_v33 = vpack.c.bf16 %v2651_v26, %v2651_v26  ;;  %vm2608_vm7 = vmand %vm2544_vm5, %vm2592_vm11 }
 0x62e   :  { %v2624_v9 = vsel %vm2608_vm7, 0.5, %v6092_v21  ;;  %vm2548_vm0 = vmand %vm2452_vm3, %vm2532_vm4  ;;  %vm2455_vm4 = vcmp.ge.f32.partialorder %v6103_v6, %v5329_v63  ;;  %vm2567_vm3 = vcmp.ge.f32.partialorder %v6103_v6, 0.09 }
 0x62f   :  { %v2640_v43 = vsel %vm2576_vm2, 1.0, %v2624_v9  ;;  %vm2580_vm14 = vmand %vm2548_vm0, %vm2564_vm8  ;;  %2713 = vrot.lane.b32.xlu0 %v2667_v33, %s2845_s16 }
 0x630   :  { %v2656_v28 = vpack.c.bf16 %v2640_v43, %v2640_v43  ;;  %vm2612_vm6 = vmand %vm2548_vm0, %vm2596_vm12  ;;  %vm2599_vm0 = vcmp.ge.f32.partialorder %v6103_v6, 0.01  ;;  %vm2454_vm12 = vcmp.ge.f32.partialorder %v6104_v62, %v5315_v2  ;;  %v6105_v2 = vld [vmem:[#allocation36_spill] sm:$0xff] }
 0x631   :  { %v2628_v48 = vsel %vm2612_vm6, 0.5, %v6092_v21  ;;  %vm2547_vm10 = vmand %vm2451_vm1, %vm2531_vm13  ;;  %vm2566_vm1 = vcmp.ge.f32.partialorder %v6104_v62, 0.09 }
 0x632   :  { %v2644_v34 = vsel %vm2580_vm14, 1.0, %v2628_v48  ;;  %2691 = vrot.lane.b32.xlu1 %v2656_v28, %s2845_s16  ;;  %vm2579_vm5 = vmand %vm2547_vm10, %vm2563_vm15  ;;  %v2498_v32 = vpop.permute.xlu1 %2497  ;;  %v2496_v50 = vpop.permute.xlu0 %2495  ;;  %vm2598_vm15 = vcmp.ge.f32.partialorder %v6104_v62, 0.01 }
 0x633   :  { %v2660_v47 = vpack.c.bf16 %v2644_v34, %v2644_v34  ;;  %vm2611_vm11 = vmand %vm2547_vm10, %vm2595_vm9  ;;  %vm2535_vm2 = vcmp.ge.f32.partialorder %v6103_v6, %v2498_v32  ;;  %vm2534_vm8 = vcmp.ge.f32.partialorder %v6104_v62, %v2496_v50 }
 0x634   :  { %v2627_v12 = vsel %vm2611_vm11, 0.5, %v6092_v21  ;;  %vm2551_vm7 = vmand %vm2455_vm4, %vm2535_vm2  ;;  %vm2570_vm11 = vcmp.ge.f32.partialorder %v6105_v2, 0.09 }
 0x635   :  { %v2643_v42 = vsel %vm2579_vm5, 1.0, %v2627_v12  ;;  %vm2583_vm13 = vmand %vm2551_vm7, %vm2567_vm3  ;;  %2699 = vrot.lane.b32.xlu2 %v2660_v47, %s2845_s16  ;;  %vm2458_vm5 = vcmp.ge.f32.partialorder %v6105_v2, %v5338_v57 }
 0x636   :  { %v2659_v63 = vpack.c.bf16 %v2643_v42, %v2643_v42  ;;  %vm2615_vm14 = vmand %vm2551_vm7, %vm2599_vm0  ;;  %vm2602_vm7 = vcmp.ge.f32.partialorder %v6105_v2, 0.01  ;;  %vm2457_vm0 = vcmp.ge.f32.partialorder %v6106_v49, %v5317_v10  ;;  %v6107_v10 = vld [vmem:[#allocation42_spill] sm:$0xff] }
 0x637   :  { %v2631_v11 = vsel %vm2615_vm14, 0.5, %v6092_v21  ;;  %vm2550_vm6 = vmand %vm2454_vm12, %vm2534_vm8  ;;  %vm2569_vm12 = vcmp.ge.f32.partialorder %v6106_v49, 0.09 }
 0x638   :  { %v2647_v25 = vsel %vm2583_vm13, 1.0, %v2631_v11  ;;  %vm2582_vm10 = vmand %vm2550_vm6, %vm2566_vm1  ;;  %vm2601_vm1 = vcmp.ge.f32.partialorder %v6106_v49, 0.01 }
 0x639   :  { %v2663_v18 = vpack.c.bf16 %v2647_v25, %v2647_v25  ;;  %vm2614_vm9 = vmand %vm2550_vm6, %vm2598_vm15 }
 0x63a   :  { %2697 = vrot.lane.b32.xlu1 %v2659_v63, %s2845_s16  ;;  %v2630_v35 = vsel %vm2614_vm9, 0.5, %v6092_v21  ;;  %v2504_v17 = vpop.permute.xlu1 %2503  ;;  %v2502_v29 = vpop.permute.xlu0 %2501 }
 0x63b   :  { %v2646_v55 = vsel %vm2582_vm10, 1.0, %v2630_v35  ;;  %vm2538_vm4 = vcmp.ge.f32.partialorder %v6105_v2, %v2504_v17  ;;  %vm2537_vm3 = vcmp.ge.f32.partialorder %v6106_v49, %v2502_v29  ;;  %vm2460_vm10 = vcmp.ge.f32.partialorder %v6107_v10, %v5321_v51 }
 0x63c   :  { %vm2554_vm2 = vmand %vm2458_vm5, %vm2538_vm4  ;;  %v2662_v39 = vpack.c.bf16 %v2646_v55, %v2646_v55  ;;  %vm2604_vm4 = vcmp.ge.f32.partialorder %v6107_v10, 0.01 }
 0x63d   :  { %vm2586_vm8 = vmand %vm2554_vm2, %vm2570_vm11  ;;  %2705 = vrot.lane.b32.xlu2 %v2663_v18, %s2845_s16 }
 0x63e   :  { %vm2618_vm13 = vmand %vm2554_vm2, %vm2602_vm7  ;;  %vm2572_vm2 = vcmp.ge.f32.partialorder %v6107_v10, 0.09  ;;  %vm2733_vm7 = vcmask 125952  }
 0x63f   :  { %v2634_v57 = vsel %vm2618_vm13, 0.5, %v6092_v21  ;;  %vm2553_vm14 = vmand %vm2457_vm0, %vm2537_vm3 }
 0x640   :  { %v2650_v56 = vsel %vm2586_vm8, 1.0, %v2634_v57  ;;  %vm2585_vm6 = vmand %vm2553_vm14, %vm2569_vm12 }
 0x641   :  { %v2666_v60 = vpack.c.bf16 %v2650_v56, %v2650_v56  ;;  %vm2617_vm15 = vmand %vm2553_vm14, %vm2601_vm1 }
 0x642   :  { %2703 = vrot.lane.b32.xlu1 %v2662_v39, %s2845_s16  ;;  %v2633_v3 = vsel %vm2617_vm15, 0.5, %v6092_v21  ;;  %v2508_v1 = vpop.permute.xlu0 %2507 }
 0x643   :  { %v2649_v20 = vsel %vm2585_vm6, 1.0, %v2633_v3  ;;  %vm2540_vm9 = vcmp.ge.f32.partialorder %v6107_v10, %v2508_v1 }
 0x644   :  { %vm2556_vm5 = vmand %vm2460_vm10, %vm2540_vm9  ;;  %v2665_v30 = vpack.c.bf16 %v2649_v20, %v2649_v20 }
 0x645   :  { %2711 = vrot.lane.b32.xlu2 %v2666_v60, %s2845_s16  ;;  %vm2620_vm11 = vmand %vm2556_vm5, %vm2604_vm4 }
 0x646   :  { %vm2588_vm3 = vmand %vm2556_vm5, %vm2572_vm2  ;;  %v2636_v22 = vsel %vm2620_vm11, 0.5, %v6092_v21 }
 0x647   :  { %v2652_v58 = vsel %vm2588_vm3, 1.0, %v2636_v22 }
 0x648   :  { %v2668_v31 = vpack.c.bf16 %v2652_v58, %v2652_v58 }
 0x64a   :  { %2709 = vrot.lane.b32.xlu1 %v2665_v30, %s2845_s16 }
 0x652   :  { %2715 = vrot.lane.b32.xlu1 %v2668_v31, %s2845_s16 }
 0x67d   :  { %v2688_v51 = vpop.permute.xlu2 %2687 }
 0x67e   :  { %2735 = vst.msk [vmem:[#allocation6 + $0x4] sm:$0xf] %vm2733_vm7, %v2688_v51  ;;  %v2690_v36 = vpop.permute.xlu0 %2689 }
 0x67f   :  { %2736 = vst.msk [vmem:[#allocation6 + $0x8] sm:$0xf] %vm2733_vm7, %v2690_v36 }
 0x686   :  { %v2694_v23 = vpop.permute.xlu2 %2693  ;;  %v2696_v8 = vpop.permute.xlu0 %2695 }
 0x687   :  { %2738 = vst.msk [vmem:[#allocation6 + $0x10] sm:$0xf] %vm2733_vm7, %v2694_v23 }
 0x688   :  { %2739 = vst.msk [vmem:[#allocation6 + $0x14] sm:$0xf] %vm2733_vm7, %v2696_v8 }
 0x68e   :  { %v2702_v21 = vpop.permute.xlu0 %2701 }
 0x68f   :  { %v2700_v19 = vpop.permute.xlu2 %2699  ;;  %2742 = vst.msk [vmem:[#allocation6 + $0x20] sm:$0xf] %vm2733_vm7, %v2702_v21 }
 0x690   :  { %2741 = vst.msk [vmem:[#allocation6 + $0x1c] sm:$0xf] %vm2733_vm7, %v2700_v19 }
 0x697   :  { %v2706_v40 = vpop.permute.xlu2 %2705 }
 0x698   :  { %2744 = vst.msk [vmem:[#allocation6 + $0x28] sm:$0xf] %vm2733_vm7, %v2706_v40  ;;  %v2708_v0 = vpop.permute.xlu0 %2707 }
 0x699   :  { %2745 = vst.msk [vmem:[#allocation6 + $0x2c] sm:$0xf] %vm2733_vm7, %v2708_v0 }
 0x69b   :  { %v2686_v15 = vpop.permute.xlu1 %2685 }
 0x69c   :  { %2734 = vst.msk [vmem:[#allocation6] sm:$0xf] %vm2733_vm7, %v2686_v15 }
 0x69f   :  { %v2712_v41 = vpop.permute.xlu2 %2711 }
 0x6a0   :  { %2747 = vst.msk [vmem:[#allocation6 + $0x34] sm:$0xf] %vm2733_vm7, %v2712_v41 }
 0x6a1   :  { %v2714_v52 = vpop.permute.xlu0 %2713 }
 0x6a2   :  { %2748 = vst.msk [vmem:[#allocation6 + $0x38] sm:$0xf] %vm2733_vm7, %v2714_v52 }
 0x6a4   :  { %v2692_v45 = vpop.permute.xlu1 %2691 }
 0x6a5   :  { %2737 = vst.msk [vmem:[#allocation6 + $0xc] sm:$0xf] %vm2733_vm7, %v2692_v45 }
 0x6ac   :  { %v2698_v54 = vpop.permute.xlu1 %2697 }
 0x6ad   :  { %2740 = vst.msk [vmem:[#allocation6 + $0x18] sm:$0xf] %vm2733_vm7, %v2698_v54 }
 0x6b4   :  { %v2704_v37 = vpop.permute.xlu1 %2703 }
 0x6b5   :  { %2743 = vst.msk [vmem:[#allocation6 + $0x24] sm:$0xf] %vm2733_vm7, %v2704_v37 }
 0x6bc   :  { %v2710_v53 = vpop.permute.xlu1 %2709 }
 0x6bd   :  { %2746 = vst.msk [vmem:[#allocation6 + $0x30] sm:$0xf] %vm2733_vm7, %v2710_v53 }
 0x6c4   :  { %v2716_v44 = vpop.permute.xlu1 %2715 }
 0x6c5   :  { %2749 = vst.msk [vmem:[#allocation6 + $0x3c] sm:$0xf] %vm2733_vm7, %v2716_v44 }
 0x6c6   :  { %2762 = dma.vmem_to_hbm [thread:$0]  %s2755_s18, 1024, %s2757_s21, [#allocation5], %s2847_s22, %s2847_s22, %s2848_s23  }
 0x6c7   :  { %2833 = dma.done.wait [#allocation5], 1024  }
 0x6c8   :  { %2834 = vsyncadd [#allocation5], 4294966272 }
 0x6c9   :  { %2767 = vsyncpa [#allocation4], 1 }
 0x6ca   :  { %2768 = vsyncpa [#allocation5], 1 }

</bundles_post_ra>
